<compile_context>
chip_gen: v7x
topology: tpu7x:2x2x1
jax: 0.10.0
libtpu: 0.0.40
codegen_flags: <defaults>
</compile_context>

<pallas_src>
import functools

import jax
import jax.numpy as jnp
from jax.experimental import pallas as pl
from jax.experimental.pallas import tpu as pltpu


def _fused_dual_conv_kernel(x_ref, cond_ref, w1_ref, b1_ref, fw1_ref, fb1_ref,
                            w2_ref, b2_ref, fw2_ref, fb2_ref, o_ref,
                            xp_ref, col1_ref, hp_ref, col2_ref,
                            *, KH, KW, pad, dil, H, W, H1, W1, H2, W2):
    """One batch element per grid step. Both conv blocks computed fully in VMEM."""
    Cin = x_ref.shape[1]
    C1 = w1_ref.shape[1]
    C2 = w2_ref.shape[1]

    # ---------------- FiLM affine params (tiny in-kernel dots) -------------------
    # Conv bias folded into the FiLM shift: g*(conv+b)+be == g*conv + (g*b+be).
    cond = cond_ref[0]                                                  # (1, E)
    gb1 = jnp.dot(cond, fw1_ref[...],
                  preferred_element_type=jnp.float32) + fb1_ref[...]   # (1, 2*C1)
    g1, be1 = gb1[:, :C1], gb1[:, C1:]
    be1 = g1 * b1_ref[...] + be1
    gb2 = jnp.dot(cond, fw2_ref[...],
                  preferred_element_type=jnp.float32) + fb2_ref[...]   # (1, 2*C2)
    g2, be2 = gb2[:, :C2], gb2[:, C2:]
    be2 = g2 * b2_ref[...] + be2

    # ------------------- block 1: conv -> FiLM(+bias) -> ReLU --------------------
    # Zero halo + interior copy in VMEM (replaces a jnp.pad HBM pass in the wrapper).
    xp_ref[...] = jnp.zeros_like(xp_ref)
    xp_ref[pad:pad + H, pad:pad + W, :] = x_ref[0].T.reshape(H, W, Cin)

    # im2col: fold the KH*KW taps into one contraction-dense MXU matmul.
    for t in range(KH * KW):
        i, j = divmod(t, KW)
        patch = xp_ref[i * dil:i * dil + H1, j * dil:j * dil + W1, :]
        col1_ref[:, t * Cin:(t + 1) * Cin] = patch.reshape(H1 * W1, Cin)

    h1 = jnp.dot(col1_ref[...], w1_ref[...], preferred_element_type=jnp.float32)
    h1 = jnp.maximum(g1 * h1 + be1, 0.0)       # fused FiLM (+ folded bias) + ReLU

    # ------------------- block 2 (intermediate never leaves VMEM) ----------------
    hp_ref[...] = jnp.zeros_like(hp_ref)
    hp_ref[pad:pad + H1, pad:pad + W1, :] = h1.reshape(H1, W1, C1)

    for t in range(KH * KW):
        i, j = divmod(t, KW)
        patch = hp_ref[i * dil:i * dil + H2, j * dil:j * dil + W2, :]
        col2_ref[:, t * C1:(t + 1) * C1] = patch.reshape(H2 * W2, C1)

    h2 = jnp.dot(col2_ref[...], w2_ref[...], preferred_element_type=jnp.float32)
    h2 = jnp.maximum(g2 * h2 + be2, 0.0)

    # Lane-dense NCHW store: (H2*W2, C2) -> (C2, H2*W2); last (lane) dim = H2*W2.
    o_ref[0] = h2.T.astype(o_ref.dtype)


def cond_dual_conv_block(x_nchw, condition, params1, params2, *,
                         padding=1, dilation=1):
    """Matches CondDualConvBlock.forward (stride=1, dropout=0). x_nchw: (N,Cin,H,W)."""
    N, Cin, H, W = x_nchw.shape
    KH, KW, _, C1 = params1["w"].shape
    C2 = params2["w"].shape[-1]
    E = condition.shape[-1]
    p, d = padding, dilation
    H1 = H + 2 * p - d * (KH - 1)
    W1 = W + 2 * p - d * (KW - 1)
    H2 = H1 + 2 * p - d * (KH - 1)
    W2 = W1 + 2 * p - d * (KW - 1)
    K1 = KH * KW * Cin
    K2 = KH * KW * C1

    # Free (metadata-only / tiny weight) reshapes; all per-call compute is in-kernel.
    # (KH,KW,Cin,Cout) -> (KH*KW*Cin, Cout): row order matches im2col column order.
    w1 = params1["w"].reshape(K1, C1)
    w2 = params2["w"].reshape(K2, C2)
    b1 = params1["b"].reshape(1, C1)
    b2 = params2["b"].reshape(1, C2)
    fw1 = params1["film_w"]                    # (E, 2*C1)
    fw2 = params2["film_w"]                    # (E, 2*C2)
    fb1 = params1["film_b"].reshape(1, 2 * C1)
    fb2 = params2["film_b"].reshape(1, 2 * C2)
    x_flat = x_nchw.reshape(N, Cin, H * W)     # input stays NCHW in HBM
    cond3 = condition.reshape(N, 1, E)         # per-batch (1,E) blocks

    kernel = functools.partial(
        _fused_dual_conv_kernel, KH=KH, KW=KW, pad=p, dil=d,
        H=H, W=W, H1=H1, W1=W1, H2=H2, W2=W2)

    scratch_shapes = [
        pltpu.VMEM((H + 2 * p, W + 2 * p, Cin), jnp.float32),    # padded input
        pltpu.VMEM((H1 * W1, K1), jnp.float32),                  # im2col for conv1
        pltpu.VMEM((H1 + 2 * p, W1 + 2 * p, C1), jnp.float32),   # padded block-1 act
        pltpu.VMEM((H2 * W2, K2), jnp.float32),                  # im2col for conv2
    ]

    # Per-step VMEM estimate (double-buffered I/O + scratch); only raise the scoped
    # limit when the default would be exceeded (keeps small shapes untouched).
    vmem_est = 4 * (2 * Cin * H * W + 2 * C2 * H2 * W2
                    + (H + 2 * p) * (W + 2 * p) * Cin + H1 * W1 * K1
                    + (H1 + 2 * p) * (W1 + 2 * p) * C1 + H2 * W2 * K2
                    + 2 * (K1 * C1 + K2 * C2 + E * 2 * (C1 + C2) + 4 * (C1 + C2)))
    cparams = dict(dimension_semantics=("parallel",))
    if vmem_est > 24 * 1024 * 1024:
        cparams["vmem_limit_bytes"] = min(int(1.5 * vmem_est), 96 * 1024 * 1024)

    flops = 2 * N * (H1 * W1 * K1 * C1 + H2 * W2 * K2 * C2 + E * 2 * (C1 + C2))
    bytes_accessed = 4 * (x_flat.size + N * C2 * H2 * W2 + w1.size + w2.size
                          + fw1.size + fw2.size + fb1.size + fb2.size
                          + cond3.size + b1.size + b2.size)

    out = pl.pallas_call(
        kernel,
        out_shape=jax.ShapeDtypeStruct((N, C2, H2 * W2), x_nchw.dtype),
        grid_spec=pltpu.PrefetchScalarGridSpec(
            num_scalar_prefetch=0,
            grid=(N,),
            in_specs=[
                pl.BlockSpec((1, Cin, H * W), lambda n: (n, 0, 0)),   # x (NCHW, flat HW)
                pl.BlockSpec((1, 1, E), lambda n: (n, 0, 0)),         # condition row
                pl.BlockSpec((K1, C1), lambda n: (0, 0)),             # w1 (im2col form)
                pl.BlockSpec((1, C1), lambda n: (0, 0)),              # b1
                pl.BlockSpec((E, 2 * C1), lambda n: (0, 0)),          # film_w1
                pl.BlockSpec((1, 2 * C1), lambda n: (0, 0)),          # film_b1
                pl.BlockSpec((K2, C2), lambda n: (0, 0)),             # w2
                pl.BlockSpec((1, C2), lambda n: (0, 0)),              # b2
                pl.BlockSpec((E, 2 * C2), lambda n: (0, 0)),          # film_w2
                pl.BlockSpec((1, 2 * C2), lambda n: (0, 0)),          # film_b2
            ],
            out_specs=pl.BlockSpec((1, C2, H2 * W2), lambda n: (n, 0, 0)),
            scratch_shapes=scratch_shapes),
        compiler_params=pltpu.CompilerParams(**cparams),
        cost_estimate=pl.CostEstimate(flops=flops, transcendentals=0,
                                      bytes_accessed=bytes_accessed),
    )(x_flat, cond3, w1, b1, fw1, fb1, w2, b2, fw2, fb2)

    return out.reshape(N, C2, H2, W2)          # free reshape back to NCHW


def init_cond_conv_params(key, in_ch, out_ch, emb_dim, kernel_size=3):
    k1, k2, k3, k4 = jax.random.split(key, 4)
    fan_in = in_ch * kernel_size * kernel_size
    bound = 1.0 / float(fan_in) ** 0.5
    w = jax.random.uniform(k1, (kernel_size, kernel_size, in_ch, out_ch),
                           jnp.float32, -bound, bound)
    b = jax.random.uniform(k2, (out_ch,), jnp.float32, -bound, bound)
    fb = 1.0 / float(emb_dim) ** 0.5
    film_w = jax.random.uniform(k3, (emb_dim, 2 * out_ch), jnp.float32, -fb, fb)
    film_b = jax.random.uniform(k4, (2 * out_ch,), jnp.float32, -fb, fb)
    return dict(w=w, b=b, film_w=film_w, film_b=film_b)


# ------------------------------ pure-JAX reference ------------------------------
def _ref_block(x_nhwc, p, cond, padding, dilation):
    y = jax.lax.conv_general_dilated(
        x_nhwc, p["w"], window_strides=(1, 1),
        padding=[(padding, padding), (padding, padding)],
        rhs_dilation=(dilation, dilation),
        dimension_numbers=("NHWC", "HWIO", "NHWC"))
    y = y + p["b"]
    C = p["w"].shape[-1]
    gb = cond @ p["film_w"] + p["film_b"]
    gamma = gb[:, :C][:, None, None, :]
    beta = gb[:, C:][:, None, None, :]
    return jnp.maximum(gamma * y + beta, 0.0)


def _ref_dual(x_nchw, cond, p1, p2, padding=1, dilation=1):
    x = jnp.transpose(x_nchw, (0, 2, 3, 1))
    x = _ref_block(x, p1, cond, padding, dilation)
    x = _ref_block(x, p2, cond, padding, dilation)
    return jnp.transpose(x, (0, 3, 1, 2))


if __name__ == "__main__":
    N, Cin, Cout, H, W, E = 2, 4, 8, 16, 16, 32

    key = jax.random.PRNGKey(0)
    kx, kc, kp1, kp2 = jax.random.split(key, 4)
    x = jax.random.normal(kx, (N, Cin, H, W), jnp.float32)        # PyTorch NCHW input
    condition = jax.random.normal(kc, (N, E), jnp.float32)

    params1 = init_cond_conv_params(kp1, Cin, Cout, E)
    params2 = init_cond_conv_params(kp2, Cout, Cout, E)

    out = cond_dual_conv_block(x, condition, params1, params2)
    out = jax.block_until_ready(out)

    ref = jax.block_until_ready(_ref_dual(x, condition, params1, params2))
    assert out.shape == (N, Cout, H, W), out.shape
    assert jnp.allclose(out, ref, rtol=1e-4, atol=1e-4), float(jnp.max(jnp.abs(out - ref)))

    print("KERNEL_OK")
</pallas_src>

<mosaic_0001>
module attributes {stable_mosaic.version = 11 : i64} {
  func.func @_fused_dual_conv_kernel(%arg0: i32, %arg1: memref<1x4x256xf32, #tpu.memory_space<vmem>>, %arg2: memref<1x1x32xf32, #tpu.memory_space<vmem>>, %arg3: memref<36x8xf32, #tpu.memory_space<vmem>>, %arg4: memref<1x8xf32, #tpu.memory_space<vmem>>, %arg5: memref<32x16xf32, #tpu.memory_space<vmem>>, %arg6: memref<1x16xf32, #tpu.memory_space<vmem>>, %arg7: memref<72x8xf32, #tpu.memory_space<vmem>>, %arg8: memref<1x8xf32, #tpu.memory_space<vmem>>, %arg9: memref<32x16xf32, #tpu.memory_space<vmem>>, %arg10: memref<1x16xf32, #tpu.memory_space<vmem>>, %arg11: memref<1x8x256xf32, #tpu.memory_space<vmem>>, %arg12: memref<18x18x4xf32, #tpu.memory_space<vmem>>, %arg13: memref<256x36xf32, #tpu.memory_space<vmem>>, %arg14: memref<18x18x8xf32, #tpu.memory_space<vmem>>, %arg15: memref<256x72xf32, #tpu.memory_space<vmem>>) attributes {dimension_semantics = [#tpu.dimension_semantics<parallel>], iteration_bounds = array<i64: 2>, scalar_prefetch = 0 : i64, scratch_operands = 4 : i64, tpu.core_type = #tpu.core_type<tc>, window_params = [{transform_indices = @transform_0, window_bounds = array<i64: 1, 4, 256>}, {transform_indices = @transform_1, window_bounds = array<i64: 1, 1, 32>}, {pipeline_mode = #tpu.pipeline_mode<synchronous>, transform_indices = @transform_2, window_bounds = array<i64: 36, 8>}, {pipeline_mode = #tpu.pipeline_mode<synchronous>, transform_indices = @transform_3, window_bounds = array<i64: 1, 8>}, {pipeline_mode = #tpu.pipeline_mode<synchronous>, transform_indices = @transform_4, window_bounds = array<i64: 32, 16>}, {pipeline_mode = #tpu.pipeline_mode<synchronous>, transform_indices = @transform_5, window_bounds = array<i64: 1, 16>}, {pipeline_mode = #tpu.pipeline_mode<synchronous>, transform_indices = @transform_6, window_bounds = array<i64: 72, 8>}, {pipeline_mode = #tpu.pipeline_mode<synchronous>, transform_indices = @transform_7, window_bounds = array<i64: 1, 8>}, {pipeline_mode = #tpu.pipeline_mode<synchronous>, transform_indices = @transform_8, window_bounds = array<i64: 32, 16>}, {pipeline_mode = #tpu.pipeline_mode<synchronous>, transform_indices = @transform_9, window_bounds = array<i64: 1, 16>}, {transform_indices = @transform_10, window_bounds = array<i64: 1, 8, 256>}]} {
    %c0 = arith.constant 0 : index
    %c0_0 = arith.constant 0 : index
    %c0_1 = arith.constant 0 : index
    %0 = vector.load %arg2[%c0, %c0_0, %c0_1] : memref<1x1x32xf32, #tpu.memory_space<vmem>>, vector<1x1x32xf32>
    %1 = vector.shape_cast %0 : vector<1x1x32xf32> to vector<1x32xf32>
    %c0_2 = arith.constant 0 : index
    %c0_3 = arith.constant 0 : index
    %2 = vector.load %arg5[%c0_2, %c0_3] : memref<32x16xf32, #tpu.memory_space<vmem>>, vector<32x16xf32>
    %cst = arith.constant dense<0.000000e+00> : vector<1x16xf32>
    %3 = tpu.matmul %1, %2, %cst {dimension_numbers = #tpu.dot_dimension_numbers<[1], [0], [0], [1], [0, 0, 1, 1], [], []>} : vector<1x32xf32>, vector<32x16xf32>, vector<1x16xf32> -> vector<1x16xf32>
    %c0_4 = arith.constant 0 : index
    %c0_5 = arith.constant 0 : index
    %4 = vector.load %arg6[%c0_4, %c0_5] : memref<1x16xf32, #tpu.memory_space<vmem>>, vector<1x16xf32>
    %5 = arith.addf %3, %4 : vector<1x16xf32>
    %6 = vector.extract_strided_slice %5 {offsets = [0, 0], sizes = [1, 8], strides = [1, 1]} : vector<1x16xf32> to vector<1x8xf32>
    %7 = vector.extract_strided_slice %5 {offsets = [0, 8], sizes = [1, 8], strides = [1, 1]} : vector<1x16xf32> to vector<1x8xf32>
    %c0_6 = arith.constant 0 : index
    %c0_7 = arith.constant 0 : index
    %8 = vector.load %arg4[%c0_6, %c0_7] : memref<1x8xf32, #tpu.memory_space<vmem>>, vector<1x8xf32>
    %9 = arith.mulf %6, %8 : vector<1x8xf32>
    %10 = arith.addf %9, %7 : vector<1x8xf32>
    %c0_8 = arith.constant 0 : index
    %c0_9 = arith.constant 0 : index
    %11 = vector.load %arg9[%c0_8, %c0_9] : memref<32x16xf32, #tpu.memory_space<vmem>>, vector<32x16xf32>
    %cst_10 = arith.constant dense<0.000000e+00> : vector<1x16xf32>
    %12 = tpu.matmul %1, %11, %cst_10 {dimension_numbers = #tpu.dot_dimension_numbers<[1], [0], [0], [1], [0, 0, 1, 1], [], []>} : vector<1x32xf32>, vector<32x16xf32>, vector<1x16xf32> -> vector<1x16xf32>
    %c0_11 = arith.constant 0 : index
    %c0_12 = arith.constant 0 : index
    %13 = vector.load %arg10[%c0_11, %c0_12] : memref<1x16xf32, #tpu.memory_space<vmem>>, vector<1x16xf32>
    %14 = arith.addf %12, %13 : vector<1x16xf32>
    %15 = vector.extract_strided_slice %14 {offsets = [0, 0], sizes = [1, 8], strides = [1, 1]} : vector<1x16xf32> to vector<1x8xf32>
    %16 = vector.extract_strided_slice %14 {offsets = [0, 8], sizes = [1, 8], strides = [1, 1]} : vector<1x16xf32> to vector<1x8xf32>
    %c0_13 = arith.constant 0 : index
    %c0_14 = arith.constant 0 : index
    %17 = vector.load %arg8[%c0_13, %c0_14] : memref<1x8xf32, #tpu.memory_space<vmem>>, vector<1x8xf32>
    %18 = arith.mulf %15, %17 : vector<1x8xf32>
    %19 = arith.addf %18, %16 : vector<1x8xf32>
    %cst_15 = arith.constant 0.000000e+00 : f32
    %20 = vector.broadcast %cst_15 : f32 to vector<18x18x4xf32>
    %c0_16 = arith.constant 0 : index
    %c0_17 = arith.constant 0 : index
    %c0_18 = arith.constant 0 : index
    %21 = vector.load %arg12[%c0_16, %c0_17, %c0_18] : memref<18x18x4xf32, #tpu.memory_space<vmem>>, vector<18x18x4xf32>
    tpu.vector_store %arg12[%c0_16, %c0_17, %c0_18], %20 {strides = array<i32>} : memref<18x18x4xf32, #tpu.memory_space<vmem>>, vector<18x18x4xf32>,
    %c0_19 = arith.constant 0 : index
    %c0_20 = arith.constant 0 : index
    %c0_21 = arith.constant 0 : index
    %22 = vector.load %arg1[%c0_19, %c0_20, %c0_21] : memref<1x4x256xf32, #tpu.memory_space<vmem>>, vector<1x4x256xf32>
    %23 = vector.shape_cast %22 : vector<1x4x256xf32> to vector<4x256xf32>
    %24 = tpu.transpose %23, [1, 0] : vector<4x256xf32> -> vector<256x4xf32>
    %25 = vector.shape_cast %24 : vector<256x4xf32> to vector<16x16x4xf32>
    %c1 = arith.constant 1 : index
    %c1_22 = arith.constant 1 : index
    %c0_23 = arith.constant 0 : index
    %26 = vector.load %arg12[%c1, %c1_22, %c0_23] : memref<18x18x4xf32, #tpu.memory_space<vmem>>, vector<16x16x4xf32>
    tpu.vector_store %arg12[%c1, %c1_22, %c0_23], %25 {strides = array<i32>} : memref<18x18x4xf32, #tpu.memory_space<vmem>>, vector<16x16x4xf32>,
    %c0_24 = arith.constant 0 : index
    %c0_25 = arith.constant 0 : index
    %c0_26 = arith.constant 0 : index
    %27 = vector.load %arg12[%c0_24, %c0_25, %c0_26] : memref<18x18x4xf32, #tpu.memory_space<vmem>>, vector<16x16x4xf32>
    %28 = vector.shape_cast %27 : vector<16x16x4xf32> to vector<256x4xf32>
    %c0_27 = arith.constant 0 : index
    %c0_28 = arith.constant 0 : index
    %29 = vector.load %arg13[%c0_27, %c0_28] : memref<256x36xf32, #tpu.memory_space<vmem>>, vector<256x4xf32>
    tpu.vector_store %arg13[%c0_27, %c0_28], %28 {strides = array<i32>} : memref<256x36xf32, #tpu.memory_space<vmem>>, vector<256x4xf32>,
    %c0_29 = arith.constant 0 : index
    %c1_30 = arith.constant 1 : index
    %c0_31 = arith.constant 0 : index
    %30 = vector.load %arg12[%c0_29, %c1_30, %c0_31] : memref<18x18x4xf32, #tpu.memory_space<vmem>>, vector<16x16x4xf32>
    %31 = vector.shape_cast %30 : vector<16x16x4xf32> to vector<256x4xf32>
    %c0_32 = arith.constant 0 : index
    %c4 = arith.constant 4 : index
    %32 = vector.load %arg13[%c0_32, %c4] : memref<256x36xf32, #tpu.memory_space<vmem>>, vector<256x4xf32>
    tpu.vector_store %arg13[%c0_32, %c4], %31 {strides = array<i32>} : memref<256x36xf32, #tpu.memory_space<vmem>>, vector<256x4xf32>,
    %c0_33 = arith.constant 0 : index
    %c2 = arith.constant 2 : index
    %c0_34 = arith.constant 0 : index
    %33 = vector.load %arg12[%c0_33, %c2, %c0_34] : memref<18x18x4xf32, #tpu.memory_space<vmem>>, vector<16x16x4xf32>
    %34 = vector.shape_cast %33 : vector<16x16x4xf32> to vector<256x4xf32>
    %c0_35 = arith.constant 0 : index
    %c8 = arith.constant 8 : index
    %35 = vector.load %arg13[%c0_35, %c8] : memref<256x36xf32, #tpu.memory_space<vmem>>, vector<256x4xf32>
    tpu.vector_store %arg13[%c0_35, %c8], %34 {strides = array<i32>} : memref<256x36xf32, #tpu.memory_space<vmem>>, vector<256x4xf32>,
    %c1_36 = arith.constant 1 : index
    %c0_37 = arith.constant 0 : index
    %c0_38 = arith.constant 0 : index
    %36 = vector.load %arg12[%c1_36, %c0_37, %c0_38] : memref<18x18x4xf32, #tpu.memory_space<vmem>>, vector<16x16x4xf32>
    %37 = vector.shape_cast %36 : vector<16x16x4xf32> to vector<256x4xf32>
    %c0_39 = arith.constant 0 : index
    %c12 = arith.constant 12 : index
    %38 = vector.load %arg13[%c0_39, %c12] : memref<256x36xf32, #tpu.memory_space<vmem>>, vector<256x4xf32>
    tpu.vector_store %arg13[%c0_39, %c12], %37 {strides = array<i32>} : memref<256x36xf32, #tpu.memory_space<vmem>>, vector<256x4xf32>,
    %c1_40 = arith.constant 1 : index
    %c1_41 = arith.constant 1 : index
    %c0_42 = arith.constant 0 : index
    %39 = vector.load %arg12[%c1_40, %c1_41, %c0_42] : memref<18x18x4xf32, #tpu.memory_space<vmem>>, vector<16x16x4xf32>
    %40 = vector.shape_cast %39 : vector<16x16x4xf32> to vector<256x4xf32>
    %c0_43 = arith.constant 0 : index
    %c16 = arith.constant 16 : index
    %41 = vector.load %arg13[%c0_43, %c16] : memref<256x36xf32, #tpu.memory_space<vmem>>, vector<256x4xf32>
    tpu.vector_store %arg13[%c0_43, %c16], %40 {strides = array<i32>} : memref<256x36xf32, #tpu.memory_space<vmem>>, vector<256x4xf32>,
    %c1_44 = arith.constant 1 : index
    %c2_45 = arith.constant 2 : index
    %c0_46 = arith.constant 0 : index
    %42 = vector.load %arg12[%c1_44, %c2_45, %c0_46] : memref<18x18x4xf32, #tpu.memory_space<vmem>>, vector<16x16x4xf32>
    %43 = vector.shape_cast %42 : vector<16x16x4xf32> to vector<256x4xf32>
    %c0_47 = arith.constant 0 : index
    %c20 = arith.constant 20 : index
    %44 = vector.load %arg13[%c0_47, %c20] : memref<256x36xf32, #tpu.memory_space<vmem>>, vector<256x4xf32>
    tpu.vector_store %arg13[%c0_47, %c20], %43 {strides = array<i32>} : memref<256x36xf32, #tpu.memory_space<vmem>>, vector<256x4xf32>,
    %c2_48 = arith.constant 2 : index
    %c0_49 = arith.constant 0 : index
    %c0_50 = arith.constant 0 : index
    %45 = vector.load %arg12[%c2_48, %c0_49, %c0_50] : memref<18x18x4xf32, #tpu.memory_space<vmem>>, vector<16x16x4xf32>
    %46 = vector.shape_cast %45 : vector<16x16x4xf32> to vector<256x4xf32>
    %c0_51 = arith.constant 0 : index
    %c24 = arith.constant 24 : index
    %47 = vector.load %arg13[%c0_51, %c24] : memref<256x36xf32, #tpu.memory_space<vmem>>, vector<256x4xf32>
    tpu.vector_store %arg13[%c0_51, %c24], %46 {strides = array<i32>} : memref<256x36xf32, #tpu.memory_space<vmem>>, vector<256x4xf32>,
    %c2_52 = arith.constant 2 : index
    %c1_53 = arith.constant 1 : index
    %c0_54 = arith.constant 0 : index
    %48 = vector.load %arg12[%c2_52, %c1_53, %c0_54] : memref<18x18x4xf32, #tpu.memory_space<vmem>>, vector<16x16x4xf32>
    %49 = vector.shape_cast %48 : vector<16x16x4xf32> to vector<256x4xf32>
    %c0_55 = arith.constant 0 : index
    %c28 = arith.constant 28 : index
    %50 = vector.load %arg13[%c0_55, %c28] : memref<256x36xf32, #tpu.memory_space<vmem>>, vector<256x4xf32>
    tpu.vector_store %arg13[%c0_55, %c28], %49 {strides = array<i32>} : memref<256x36xf32, #tpu.memory_space<vmem>>, vector<256x4xf32>,
    %c2_56 = arith.constant 2 : index
    %c2_57 = arith.constant 2 : index
    %c0_58 = arith.constant 0 : index
    %51 = vector.load %arg12[%c2_56, %c2_57, %c0_58] : memref<18x18x4xf32, #tpu.memory_space<vmem>>, vector<16x16x4xf32>
    %52 = vector.shape_cast %51 : vector<16x16x4xf32> to vector<256x4xf32>
    %c0_59 = arith.constant 0 : index
    %c32 = arith.constant 32 : index
    %53 = vector.load %arg13[%c0_59, %c32] : memref<256x36xf32, #tpu.memory_space<vmem>>, vector<256x4xf32>
    tpu.vector_store %arg13[%c0_59, %c32], %52 {strides = array<i32>} : memref<256x36xf32, #tpu.memory_space<vmem>>, vector<256x4xf32>,
    %c0_60 = arith.constant 0 : index
    %c0_61 = arith.constant 0 : index
    %54 = vector.load %arg13[%c0_60, %c0_61] : memref<256x36xf32, #tpu.memory_space<vmem>>, vector<256x36xf32>
    %c0_62 = arith.constant 0 : index
    %c0_63 = arith.constant 0 : index
    %55 = vector.load %arg3[%c0_62, %c0_63] : memref<36x8xf32, #tpu.memory_space<vmem>>, vector<36x8xf32>
    %cst_64 = arith.constant dense<0.000000e+00> : vector<256x8xf32>
    %56 = tpu.matmul %54, %55, %cst_64 {dimension_numbers = #tpu.dot_dimension_numbers<[1], [0], [0], [1], [0, 0, 1, 1], [], []>} : vector<256x36xf32>, vector<36x8xf32>, vector<256x8xf32> -> vector<256x8xf32>
    %57 = vector.broadcast %6 : vector<1x8xf32> to vector<256x8xf32>
    %58 = arith.mulf %57, %56 : vector<256x8xf32>
    %59 = vector.broadcast %10 : vector<1x8xf32> to vector<256x8xf32>
    %60 = arith.addf %58, %59 : vector<256x8xf32>
    %cst_65 = arith.constant 0.000000e+00 : f32
    %61 = vector.broadcast %cst_65 : f32 to vector<256x8xf32>
    %62 = arith.maximumf %60, %61 : vector<256x8xf32>
    %cst_66 = arith.constant 0.000000e+00 : f32
    %63 = vector.broadcast %cst_66 : f32 to vector<18x18x8xf32>
    %c0_67 = arith.constant 0 : index
    %c0_68 = arith.constant 0 : index
    %c0_69 = arith.constant 0 : index
    %64 = vector.load %arg14[%c0_67, %c0_68, %c0_69] : memref<18x18x8xf32, #tpu.memory_space<vmem>>, vector<18x18x8xf32>
    tpu.vector_store %arg14[%c0_67, %c0_68, %c0_69], %63 {strides = array<i32>} : memref<18x18x8xf32, #tpu.memory_space<vmem>>, vector<18x18x8xf32>,
    %65 = vector.shape_cast %62 : vector<256x8xf32> to vector<16x16x8xf32>
    %c1_70 = arith.constant 1 : index
    %c1_71 = arith.constant 1 : index
    %c0_72 = arith.constant 0 : index
    %66 = vector.load %arg14[%c1_70, %c1_71, %c0_72] : memref<18x18x8xf32, #tpu.memory_space<vmem>>, vector<16x16x8xf32>
    tpu.vector_store %arg14[%c1_70, %c1_71, %c0_72], %65 {strides = array<i32>} : memref<18x18x8xf32, #tpu.memory_space<vmem>>, vector<16x16x8xf32>,
    %c0_73 = arith.constant 0 : index
    %c0_74 = arith.constant 0 : index
    %c0_75 = arith.constant 0 : index
    %67 = vector.load %arg14[%c0_73, %c0_74, %c0_75] : memref<18x18x8xf32, #tpu.memory_space<vmem>>, vector<16x16x8xf32>
    %68 = vector.shape_cast %67 : vector<16x16x8xf32> to vector<256x8xf32>
    %c0_76 = arith.constant 0 : index
    %c0_77 = arith.constant 0 : index
    %69 = vector.load %arg15[%c0_76, %c0_77] : memref<256x72xf32, #tpu.memory_space<vmem>>, vector<256x8xf32>
    tpu.vector_store %arg15[%c0_76, %c0_77], %68 {strides = array<i32>} : memref<256x72xf32, #tpu.memory_space<vmem>>, vector<256x8xf32>,
    %c0_78 = arith.constant 0 : index
    %c1_79 = arith.constant 1 : index
    %c0_80 = arith.constant 0 : index
    %70 = vector.load %arg14[%c0_78, %c1_79, %c0_80] : memref<18x18x8xf32, #tpu.memory_space<vmem>>, vector<16x16x8xf32>
    %71 = vector.shape_cast %70 : vector<16x16x8xf32> to vector<256x8xf32>
    %c0_81 = arith.constant 0 : index
    %c8_82 = arith.constant 8 : index
    %72 = vector.load %arg15[%c0_81, %c8_82] : memref<256x72xf32, #tpu.memory_space<vmem>>, vector<256x8xf32>
    tpu.vector_store %arg15[%c0_81, %c8_82], %71 {strides = array<i32>} : memref<256x72xf32, #tpu.memory_space<vmem>>, vector<256x8xf32>,
    %c0_83 = arith.constant 0 : index
    %c2_84 = arith.constant 2 : index
    %c0_85 = arith.constant 0 : index
    %73 = vector.load %arg14[%c0_83, %c2_84, %c0_85] : memref<18x18x8xf32, #tpu.memory_space<vmem>>, vector<16x16x8xf32>
    %74 = vector.shape_cast %73 : vector<16x16x8xf32> to vector<256x8xf32>
    %c0_86 = arith.constant 0 : index
    %c16_87 = arith.constant 16 : index
    %75 = vector.load %arg15[%c0_86, %c16_87] : memref<256x72xf32, #tpu.memory_space<vmem>>, vector<256x8xf32>
    tpu.vector_store %arg15[%c0_86, %c16_87], %74 {strides = array<i32>} : memref<256x72xf32, #tpu.memory_space<vmem>>, vector<256x8xf32>,
    %c1_88 = arith.constant 1 : index
    %c0_89 = arith.constant 0 : index
    %c0_90 = arith.constant 0 : index
    %76 = vector.load %arg14[%c1_88, %c0_89, %c0_90] : memref<18x18x8xf32, #tpu.memory_space<vmem>>, vector<16x16x8xf32>
    %77 = vector.shape_cast %76 : vector<16x16x8xf32> to vector<256x8xf32>
    %c0_91 = arith.constant 0 : index
    %c24_92 = arith.constant 24 : index
    %78 = vector.load %arg15[%c0_91, %c24_92] : memref<256x72xf32, #tpu.memory_space<vmem>>, vector<256x8xf32>
    tpu.vector_store %arg15[%c0_91, %c24_92], %77 {strides = array<i32>} : memref<256x72xf32, #tpu.memory_space<vmem>>, vector<256x8xf32>,
    %c1_93 = arith.constant 1 : index
    %c1_94 = arith.constant 1 : index
    %c0_95 = arith.constant 0 : index
    %79 = vector.load %arg14[%c1_93, %c1_94, %c0_95] : memref<18x18x8xf32, #tpu.memory_space<vmem>>, vector<16x16x8xf32>
    %80 = vector.shape_cast %79 : vector<16x16x8xf32> to vector<256x8xf32>
    %c0_96 = arith.constant 0 : index
    %c32_97 = arith.constant 32 : index
    %81 = vector.load %arg15[%c0_96, %c32_97] : memref<256x72xf32, #tpu.memory_space<vmem>>, vector<256x8xf32>
    tpu.vector_store %arg15[%c0_96, %c32_97], %80 {strides = array<i32>} : memref<256x72xf32, #tpu.memory_space<vmem>>, vector<256x8xf32>,
    %c1_98 = arith.constant 1 : index
    %c2_99 = arith.constant 2 : index
    %c0_100 = arith.constant 0 : index
    %82 = vector.load %arg14[%c1_98, %c2_99, %c0_100] : memref<18x18x8xf32, #tpu.memory_space<vmem>>, vector<16x16x8xf32>
    %83 = vector.shape_cast %82 : vector<16x16x8xf32> to vector<256x8xf32>
    %c0_101 = arith.constant 0 : index
    %c40 = arith.constant 40 : index
    %84 = vector.load %arg15[%c0_101, %c40] : memref<256x72xf32, #tpu.memory_space<vmem>>, vector<256x8xf32>
    tpu.vector_store %arg15[%c0_101, %c40], %83 {strides = array<i32>} : memref<256x72xf32, #tpu.memory_space<vmem>>, vector<256x8xf32>,
    %c2_102 = arith.constant 2 : index
    %c0_103 = arith.constant 0 : index
    %c0_104 = arith.constant 0 : index
    %85 = vector.load %arg14[%c2_102, %c0_103, %c0_104] : memref<18x18x8xf32, #tpu.memory_space<vmem>>, vector<16x16x8xf32>
    %86 = vector.shape_cast %85 : vector<16x16x8xf32> to vector<256x8xf32>
    %c0_105 = arith.constant 0 : index
    %c48 = arith.constant 48 : index
    %87 = vector.load %arg15[%c0_105, %c48] : memref<256x72xf32, #tpu.memory_space<vmem>>, vector<256x8xf32>
    tpu.vector_store %arg15[%c0_105, %c48], %86 {strides = array<i32>} : memref<256x72xf32, #tpu.memory_space<vmem>>, vector<256x8xf32>,
    %c2_106 = arith.constant 2 : index
    %c1_107 = arith.constant 1 : index
    %c0_108 = arith.constant 0 : index
    %88 = vector.load %arg14[%c2_106, %c1_107, %c0_108] : memref<18x18x8xf32, #tpu.memory_space<vmem>>, vector<16x16x8xf32>
    %89 = vector.shape_cast %88 : vector<16x16x8xf32> to vector<256x8xf32>
    %c0_109 = arith.constant 0 : index
    %c56 = arith.constant 56 : index
    %90 = vector.load %arg15[%c0_109, %c56] : memref<256x72xf32, #tpu.memory_space<vmem>>, vector<256x8xf32>
    tpu.vector_store %arg15[%c0_109, %c56], %89 {strides = array<i32>} : memref<256x72xf32, #tpu.memory_space<vmem>>, vector<256x8xf32>,
    %c2_110 = arith.constant 2 : index
    %c2_111 = arith.constant 2 : index
    %c0_112 = arith.constant 0 : index
    %91 = vector.load %arg14[%c2_110, %c2_111, %c0_112] : memref<18x18x8xf32, #tpu.memory_space<vmem>>, vector<16x16x8xf32>
    %92 = vector.shape_cast %91 : vector<16x16x8xf32> to vector<256x8xf32>
    %c0_113 = arith.constant 0 : index
    %c64 = arith.constant 64 : index
    %93 = vector.load %arg15[%c0_113, %c64] : memref<256x72xf32, #tpu.memory_space<vmem>>, vector<256x8xf32>
    tpu.vector_store %arg15[%c0_113, %c64], %92 {strides = array<i32>} : memref<256x72xf32, #tpu.memory_space<vmem>>, vector<256x8xf32>,
    %c0_114 = arith.constant 0 : index
    %c0_115 = arith.constant 0 : index
    %94 = vector.load %arg15[%c0_114, %c0_115] : memref<256x72xf32, #tpu.memory_space<vmem>>, vector<256x72xf32>
    %c0_116 = arith.constant 0 : index
    %c0_117 = arith.constant 0 : index
    %95 = vector.load %arg7[%c0_116, %c0_117] : memref<72x8xf32, #tpu.memory_space<vmem>>, vector<72x8xf32>
    %cst_118 = arith.constant dense<0.000000e+00> : vector<256x8xf32>
    %96 = tpu.matmul %94, %95, %cst_118 {dimension_numbers = #tpu.dot_dimension_numbers<[1], [0], [0], [1], [0, 0, 1, 1], [], []>} : vector<256x72xf32>, vector<72x8xf32>, vector<256x8xf32> -> vector<256x8xf32>
    %97 = vector.broadcast %15 : vector<1x8xf32> to vector<256x8xf32>
    %98 = arith.mulf %97, %96 : vector<256x8xf32>
    %99 = vector.broadcast %19 : vector<1x8xf32> to vector<256x8xf32>
    %100 = arith.addf %98, %99 : vector<256x8xf32>
    %cst_119 = arith.constant 0.000000e+00 : f32
    %101 = vector.broadcast %cst_119 : f32 to vector<256x8xf32>
    %102 = arith.maximumf %100, %101 : vector<256x8xf32>
    %103 = tpu.transpose %102, [1, 0] : vector<256x8xf32> -> vector<8x256xf32>
    %c0_120 = arith.constant 0 : index
    %c0_121 = arith.constant 0 : index
    %c0_122 = arith.constant 0 : index
    %104 = vector.load %arg11[%c0_120, %c0_121, %c0_122] : memref<1x8x256xf32, #tpu.memory_space<vmem>>, vector<1x8x256xf32>
    %105 = vector.shape_cast %104 : vector<1x8x256xf32> to vector<8x256xf32>
    %106 = vector.shape_cast %103 : vector<8x256xf32> to vector<1x8x256xf32>
    tpu.vector_store %arg11[%c0_120, %c0_121, %c0_122], %106 {strides = array<i32>} : memref<1x8x256xf32, #tpu.memory_space<vmem>>, vector<1x8x256xf32>,
    return
  }
  func.func @transform_0(%arg0: i32) -> (i32, i32, i32) {
    %c0_i32 = arith.constant 0 : i32
    %c0_i32_0 = arith.constant 0 : i32
    %c0_i32_1 = arith.constant 0 : i32
    return %arg0, %c0_i32, %c0_i32_0 : i32, i32, i32
  }
  func.func @transform_1(%arg0: i32) -> (i32, i32, i32) {
    %c0_i32 = arith.constant 0 : i32
    %c0_i32_0 = arith.constant 0 : i32
    %c0_i32_1 = arith.constant 0 : i32
    return %arg0, %c0_i32, %c0_i32_0 : i32, i32, i32
  }
  func.func @transform_2(%arg0: i32) -> (i32, i32) {
    %c0_i32 = arith.constant 0 : i32
    %c0_i32_0 = arith.constant 0 : i32
    %c0_i32_1 = arith.constant 0 : i32
    return %c0_i32, %c0_i32_0 : i32, i32
  }
  func.func @transform_3(%arg0: i32) -> (i32, i32) {
    %c0_i32 = arith.constant 0 : i32
    %c0_i32_0 = arith.constant 0 : i32
    %c0_i32_1 = arith.constant 0 : i32
    return %c0_i32, %c0_i32_0 : i32, i32
  }
  func.func @transform_4(%arg0: i32) -> (i32, i32) {
    %c0_i32 = arith.constant 0 : i32
    %c0_i32_0 = arith.constant 0 : i32
    %c0_i32_1 = arith.constant 0 : i32
    return %c0_i32, %c0_i32_0 : i32, i32
  }
  func.func @transform_5(%arg0: i32) -> (i32, i32) {
    %c0_i32 = arith.constant 0 : i32
    %c0_i32_0 = arith.constant 0 : i32
    %c0_i32_1 = arith.constant 0 : i32
    return %c0_i32, %c0_i32_0 : i32, i32
  }
  func.func @transform_6(%arg0: i32) -> (i32, i32) {
    %c0_i32 = arith.constant 0 : i32
    %c0_i32_0 = arith.constant 0 : i32
    %c0_i32_1 = arith.constant 0 : i32
    return %c0_i32, %c0_i32_0 : i32, i32
  }
  func.func @transform_7(%arg0: i32) -> (i32, i32) {
    %c0_i32 = arith.constant 0 : i32
    %c0_i32_0 = arith.constant 0 : i32
    %c0_i32_1 = arith.constant 0 : i32
    return %c0_i32, %c0_i32_0 : i32, i32
  }
  func.func @transform_8(%arg0: i32) -> (i32, i32) {
    %c0_i32 = arith.constant 0 : i32
    %c0_i32_0 = arith.constant 0 : i32
    %c0_i32_1 = arith.constant 0 : i32
    return %c0_i32, %c0_i32_0 : i32, i32
  }
  func.func @transform_9(%arg0: i32) -> (i32, i32) {
    %c0_i32 = arith.constant 0 : i32
    %c0_i32_0 = arith.constant 0 : i32
    %c0_i32_1 = arith.constant 0 : i32
    return %c0_i32, %c0_i32_0 : i32, i32
  }
  func.func @transform_10(%arg0: i32) -> (i32, i32, i32) {
    %c0_i32 = arith.constant 0 : i32
    %c0_i32_0 = arith.constant 0 : i32
    %c0_i32_1 = arith.constant 0 : i32
    return %arg0, %c0_i32, %c0_i32_0 : i32, i32, i32
  }
}

</mosaic_0001>

<bundles_post_ra>
// kernel: tpu_custom_call.1
= control target key start
LH: loop header
LB: loop body
LE: loop exit
PB: predicated region body
PF: predicated region fallthrough
CT: control target
= control target key end

     0   :  { %s8137_s0 = inlined_call_operand.vmem [shape: f32[2,4,256], index: 0, kind: input, shape index: {}]   ;;  %s8138_s1 = inlined_call_operand.vmem [shape: f32[2,1,32], index: 1, kind: input, shape index: {}]   ;;  %s8139_s2 = inlined_call_operand.vmem [shape: f32[36,8], index: 2, kind: input, shape index: {}]   ;;  %s8140_s3 = inlined_call_operand.vmem [shape: f32[1,8], index: 3, kind: input, shape index: {}]   ;;  %s8141_s4 = inlined_call_operand.vmem [shape: f32[32,16], index: 4, kind: input, shape index: {}]   ;;  %s8142_s5 = inlined_call_operand.vmem [shape: f32[1,16], index: 5, kind: input, shape index: {}]   ;;  %s8143_s6 = inlined_call_operand.vmem [shape: f32[72,8], index: 6, kind: input, shape index: {}]   ;;  %s8144_s7 = inlined_call_operand.vmem [shape: f32[1,8], index: 7, kind: input, shape index: {}]   ;;  %s8145_s8 = inlined_call_operand.vmem [shape: f32[32,16], index: 8, kind: input, shape index: {}]   ;;  %s8146_s9 = inlined_call_operand.vmem [shape: f32[1,16], index: 9, kind: input, shape index: {}]   ;;  %s8147_s10 = inlined_call_operand.hbm [shape: f32[2,8,256], index: 10, kind: output, shape index: {}]  }
   0x1   :  { %8181 = sst [smem:[#allocation38_spill]] %s8137_s0 }
   0x2   :  { %15 = vsyncpa [#allocation7], 0 }
   0x3   :  { %17 = vsyncpa [#allocation7 + $0x1], 0  ;;  %s5641_s13 = smov 0   ;;  %s5643_s14 = smov 0  }
   0x4   :  { %s5645_s15 = smov 0   ;;  %s5647_s16 = smov 0  }
   0x5 LB: > { %s5662_s17 = sadd.s32 4294967295, %s5567_s16   ;;  %s5088_s18 = sadd.s32 4294967294, %s5567_s16   ;;  %s5567_s16 = sphi %s5647_s16, %s8248_s16   ;;  %s5563_s15 = sphi %s5645_s15, %s8247_s15   ;;  %s5559_s14 = sphi %s5643_s14, %s8246_s14   ;;  %s5555_s13 = sphi %s5641_s13, %s8245_s13  }
   0x6   : > { %s5666_s19 = sadd.s32 1, %s5567_s16   ;;  %s250_s20 = sadd.s32 1, %s5563_s15 }
   0x7   : > { %s247_s21 = ssub.s32 %s5567_s16, %s5666_s19  ;;  %p260_p0 = scmp.ne.s32.totalorder %s5563_s15, %s5559_s14 }
   0x8   : > { %p248_p1 = scmp.eq.s32.totalorder %s247_s21, 0  ;;  %p261_p2 = scmp.eq.s32.totalorder %s5662_s17, 1 }
   0x9   : > { %p266_p3 = scmp.ne.s32.totalorder %s5559_s14, %s5555_s13  ;;  %p267_p4 = scmp.eq.s32.totalorder %s5088_s18, 1 }
   0xa   : > { %s5677_s22 = scalar_select %p248_p1, %s5563_s15, %s250_s20  }
   0xb   : > { %p5679_p5 = por %p261_p2, %p260_p0  ;;  %p5683_p6 = por %p267_p4, %p266_p3 }
   0xc   : > { %p5091_p7 = scmp.ge.s32.totalorder %s5567_s16, 1  ;;  %p323_p8 = scmp.lt.s32.totalorder %s5567_s16, 3 }
   0xe   : > { %p324_p9 = pnand %p5091_p7, %p323_p8 }
  0x10   : > { %327 = sbr.rel (%p324_p9) target bundleno = 1981 (0x7bd), region = 60 }
  0x17   : > { %p364_p10 = scmp.lt.s32.totalorder %s5662_s17, 1  ;;  %vm541_vm0 = vcmask 31744   ;;  %v8150_v0 = vmov 0.0   ;;  %vm544_vm1 = vcmask 25600   ;;  %s8184_s0 = sld [smem:[#allocation38_spill]]  ;;  %v373_v4 = vld [vmem:[%s8141_s4] sm:$0xff] }
  0x18   : > { %546 = vst.msk [vmem:[#allocation2 + $0x18] sm:$0xff] %vm541_vm0, %v8150_v0  ;;  %547 = vst.msk [vmem:[#allocation2 + $0x20] sm:$0xff] %vm541_vm0, %v8150_v0  ;;  %s8148_s30 = smov 4   ;;  %v374_v5 = vld [vmem:[%s8141_s4 + $0x8] sm:$0xff]  ;;  %v5571_v7 = vmov 0.0|0.0   ;;  %v375_v8 = vld [vmem:[%s8141_s4 + $0x10] sm:$0xff] }
  0x19   : > { %542 = vst.msk [vmem:[#allocation2] sm:$0xff] %vm541_vm0, %v8150_v0  ;;  %543 = vst.msk [vmem:[#allocation2 + $0x8] sm:$0xff] %vm541_vm0, %v8150_v0  ;;  %s5765_s25 = scalar_select %p364_p10, %s5662_s17, 1  ;;  %v5404_v6 = vpack.c.bf16 %v374_v5, %v373_v4  ;;  %5403 = vmatprep.subr.bf16.mxu0 %v5571_v7  ;;  %5409 = vmatprep.subr.bf16.mxu1 %v5571_v7  ;;  %v376_v9 = vld [vmem:[%s8141_s4 + $0x18] sm:$0xff]  ;;  %v459_v10 = vld [vmem:[%s8145_s8] sm:$0xff]  ;;  %vm5572_vm2 = vmmov 0  }
  0x1a   : > { %549 = vst.msk [vmem:[#allocation2 + $0x30] sm:$0xff] %vm541_vm0, %v8150_v0  ;;  %550 = vst.msk [vmem:[#allocation2 + $0x38] sm:$0xff] %vm541_vm0, %v8150_v0  ;;  %v5407_v11 = vpack.c.bf16 %v376_v9, %v375_v8  ;;  %v460_v12 = vld [vmem:[%s8145_s8 + $0x8] sm:$0xff]  ;;  %v461_v14 = vld [vmem:[%s8145_s8 + $0x10] sm:$0xff]  ;;  %5265 = vmatprep.mubr.msk.f32.mxu0 %vm5572_vm2, %v8150_v0  ;;  %vm378_vm3 = vcmask 261120   ;;  %5276 = vmatprep.mubr.msk.f32.mxu1 %vm5572_vm2, %v8150_v0  ;;  %vm922_vm4 = vcmask 64544  }
  0x1b   : > { %552 = vst.msk [vmem:[#allocation2 + $0x48] sm:$0xff] %vm541_vm0, %v8150_v0  ;;  %553 = vst.msk [vmem:[#allocation2 + $0x50] sm:$0xff] %vm541_vm0, %v8150_v0  ;;  %s5167_s26 = sshll.u32 %s5765_s25, 3  ;;  %5405 = vmatpush3.bf16.msra.mxu0 %v5404_v6  ;;  %v5410_v13 = vpack.c.bf16 %v460_v12, %v459_v10  ;;  %s371_s21 = scalar_lea.vmem %s8138_s1, %s5765_s25  ;;  %v462_v15 = vld [vmem:[%s8145_s8 + $0x18] sm:$0xff]  ;;  %vm1115_vm5 = vcmask 97344   ;;  %vm1308_vm6 = vcmask 130144  }
  0x1c   : > { %555 = vst.msk [vmem:[#allocation2 + $0x60] sm:$0xff] %vm541_vm0, %v8150_v0  ;;  %556 = vst.msk [vmem:[#allocation2 + $0x68] sm:$0xff] %vm541_vm0, %v8150_v0  ;;  %5406 = vmatprep.subr.bf16.mxu0 %v5571_v7  ;;  %v372_v16 = vld [vmem:[%s371_s21] sm:$0x1]  ;;  %v5413_v17 = vpack.c.bf16 %v462_v15, %v461_v14  ;;  %s5573_s25 = smov 8   ;;  %s5576_s21 = smov 120  }
  0x1d   : > { %558 = vst.msk [vmem:[#allocation2 + $0x78] sm:$0xff] %vm541_vm0, %v8150_v0  ;;  %559 = vst.msk [vmem:[#allocation2 + $0x80] sm:$0xff] %vm541_vm0, %v8150_v0  ;;  %s368_s29 = scalar_lea.vmem %s8184_s0, %s5167_s26  ;;  %5411 = vmatpush3.bf16.msra.mxu1 %v5410_v13  ;;  %s8185_s0 = smov 4   ;;  %vm1501_vm7 = vcmask 162944   ;;  %vm1694_vm8 = vcmask 195744   ;;  %vm1888_vm9 = vcmask 228544  }
  0x1e   : > { %561 = vst.msk [vmem:[#allocation2 + $0x90] sm:$0xff] %vm541_vm0, %v8150_v0  ;;  %562 = vst.msk [vmem:[#allocation2 + $0x98] sm:$0xff] %vm541_vm0, %v8150_v0  ;;  %v597_v1 = vld [vmem:[%s368_s29] sm:$0xff]  ;;  %5412 = vmatprep.subr.bf16.mxu1 %v5571_v7  ;;  %s5575_s29 = smov 16   ;;  %s5577_s26 = smov 20   ;;  %vm2081_vm10 = vcmask 261344  }
  0x1f   : > { %564 = vst.msk [vmem:[#allocation2 + $0xa8] sm:$0xff] %vm541_vm0, %v8150_v0  ;;  %565 = vst.msk [vmem:[#allocation2 + $0xb0] sm:$0xff] %vm541_vm0, %v8150_v0  ;;  %601 = vxpose.xlu1.b32.start.end [1/1] (short) %v597_v1, 128  ;;  %5408 = vmatpush3.bf16.msra.mxu0 %v5407_v11  ;;  %v599_v18 = vcombine.high %v597_v1, %v597_v1  ;;  %s5578_s27 = smov 24   ;;  %s5579_s28 = smov 28   ;;  %vm2441_vm11 = vcmask 1043456   ;;  %vm2274_vm12 = vcmask 294144  }
  0x20   : > { %567 = vst.msk [vmem:[#allocation2 + $0xc0] sm:$0xff] %vm541_vm0, %v8150_v0  ;;  %568 = vst.msk [vmem:[#allocation2 + $0xc8] sm:$0xff] %vm541_vm0, %v8150_v0  ;;  %v762_v2 = vld [vmem:[#allocation2 + $0x1] sm:$0xff]  ;;  %vm2344_vm13 = vcmask 293888   ;;  %vm2774_vm14 = vcmask 64512   ;;  %vm2777_vm15 = vcmask 58368  }
  0x21   : > { %570 = vst.msk [vmem:[#allocation2 + $0xd8] sm:$0xff] %vm541_vm0, %v8150_v0  ;;  %571 = vst.msk [vmem:[#allocation2 + $0xe0] sm:$0xff] %vm541_vm0, %v8150_v0  ;;  %826 = vrot.lane.b32.xlu0 %v762_v2, %s8148_s30  ;;  %5414 = vmatpush3.bf16.msra.mxu1 %v5413_v17  ;;  %v698_v19 = vld [vmem:[#allocation2] sm:$0xff]  ;;  %v699_v21 = vld [vmem:[#allocation2 + $0x8] sm:$0xff]  ;;  %s5581_s12 = smov 40   ;;  %s5583_s11 = smov 56  }
  0x22   : > { %573 = vst.msk [vmem:[#allocation2 + $0xf0] sm:$0xff] %vm541_vm0, %v8150_v0  ;;  %574 = vst.msk [vmem:[#allocation2 + $0xf8] sm:$0xff] %vm541_vm0, %v8150_v0  ;;  %5266 = vmatmul.mubr.msk.f32.vlgmr.msra.gmra.mrb[0].mxu0 %vm378_vm3, %v372_v16  ;;  %vm3473_vm2 = vcmask 261312  }
  0x23   : > { %576 = vst.msk [vmem:[#allocation2 + $0x108] sm:$0xff] %vm541_vm0, %v8150_v0  ;;  %577 = vst.msk [vmem:[#allocation2 + $0x110] sm:$0xff] %vm541_vm0, %v8150_v0 }
  0x24   : > { %579 = vst.msk [vmem:[#allocation2 + $0x120] sm:$0xff] %vm541_vm0, %v8150_v0  ;;  %580 = vst.msk [vmem:[#allocation2 + $0x128] sm:$0xff] %vm541_vm0, %v8150_v0  ;;  %5277 = vmatmul.mubr.msk.f32.vlgmr.msra.gmra.mrb[0].mxu1 %vm378_vm3, %v372_v16  ;;  %vm3666_vm3 = vcmask 326912  }
  0x25   : > { %582 = vst.msk [vmem:[#allocation2 + $0x138] sm:$0xff] %vm541_vm0, %v8150_v0  ;;  %583 = vst.msk [vmem:[#allocation2 + $0x140] sm:$0xff] %vm541_vm0, %v8150_v0 }
  0x26   : > { %585 = vst.msk [vmem:[#allocation2 + $0x150] sm:$0xff] %vm541_vm0, %v8150_v0  ;;  %586 = vst.msk [vmem:[#allocation2 + $0x158] sm:$0xff] %vm541_vm0, %v8150_v0 }
  0x27   : > { %588 = vst.msk [vmem:[#allocation2 + $0x168] sm:$0xff] %vm541_vm0, %v8150_v0  ;;  %589 = vst.msk [vmem:[#allocation2 + $0x170] sm:$0xff] %vm541_vm0, %v8150_v0 }
  0x28   : > { %591 = vst.msk [vmem:[#allocation2 + $0x180] sm:$0xff] %vm541_vm0, %v8150_v0  ;;  %592 = vst.msk [vmem:[#allocation2 + $0x188] sm:$0xff] %vm541_vm0, %v8150_v0 }
  0x29   : > { %594 = vst.msk [vmem:[#allocation2 + $0x198] sm:$0xff] %vm541_vm0, %v8150_v0  ;;  %595 = vst.msk [vmem:[#allocation2 + $0x1a0] sm:$0xff] %vm541_vm0, %v8150_v0 }
  0x2a   : > { %548 = vst.msk [vmem:[#allocation2 + $0x28] sm:$0x3] %vm544_vm1, %v8150_v0  ;;  %545 = vst.msk [vmem:[#allocation2 + $0x10] sm:$0x3] %vm544_vm1, %v8150_v0 }
  0x2b   : > { %551 = vst.msk [vmem:[#allocation2 + $0x40] sm:$0x3] %vm544_vm1, %v8150_v0  ;;  %554 = vst.msk [vmem:[#allocation2 + $0x58] sm:$0x3] %vm544_vm1, %v8150_v0 }
  0x2c   : > { %557 = vst.msk [vmem:[#allocation2 + $0x70] sm:$0x3] %vm544_vm1, %v8150_v0  ;;  %560 = vst.msk [vmem:[#allocation2 + $0x88] sm:$0x3] %vm544_vm1, %v8150_v0 }
  0x2d   : > { %563 = vst.msk [vmem:[#allocation2 + $0xa0] sm:$0x3] %vm544_vm1, %v8150_v0  ;;  %566 = vst.msk [vmem:[#allocation2 + $0xb8] sm:$0x3] %vm544_vm1, %v8150_v0 }
  0x2e   : > { %569 = vst.msk [vmem:[#allocation2 + $0xd0] sm:$0x3] %vm544_vm1, %v8150_v0  ;;  %572 = vst.msk [vmem:[#allocation2 + $0xe8] sm:$0x3] %vm544_vm1, %v8150_v0 }
  0x2f   : > { %575 = vst.msk [vmem:[#allocation2 + $0x100] sm:$0x3] %vm544_vm1, %v8150_v0  ;;  %578 = vst.msk [vmem:[#allocation2 + $0x118] sm:$0x3] %vm544_vm1, %v8150_v0 }
  0x30   : > { %581 = vst.msk [vmem:[#allocation2 + $0x130] sm:$0x3] %vm544_vm1, %v8150_v0  ;;  %584 = vst.msk [vmem:[#allocation2 + $0x148] sm:$0x3] %vm544_vm1, %v8150_v0 }
  0x31   : > { %587 = vst.msk [vmem:[#allocation2 + $0x160] sm:$0x3] %vm544_vm1, %v8150_v0  ;;  %590 = vst.msk [vmem:[#allocation2 + $0x178] sm:$0x3] %vm544_vm1, %v8150_v0  ;;  %v763_v3 = vld [vmem:[#allocation2 + $0x9] sm:$0xff] }
  0x32   : > { %593 = vst.msk [vmem:[#allocation2 + $0x190] sm:$0x3] %vm544_vm1, %v8150_v0  ;;  %596 = vst.msk [vmem:[#allocation2 + $0x1a8] sm:$0x3] %vm544_vm1, %v8150_v0  ;;  %828 = vrot.lane.b32.xlu0 %v763_v3, %s8148_s30  ;;  %s5574_s30 = smov 12   ;;  %vm3280_vm1 = vcmask 195712  }
  0x33   : > { %730 = vst.msk [vmem:[#allocation3] sm:$0xff] %vm541_vm0, %v698_v19  ;;  %731 = vst.msk [vmem:[#allocation3 + $0x8] sm:$0xff] %vm541_vm0, %v699_v21 }
  0x5c   : > { %633 = vxpose.xlu1.b32.start.end [1/1] (short) %v599_v18, 128 }
  0x93   : > { %v827_v20 = vpop.permute.xlu0 %826 }
  0x94   : > { %923 = vst.msk [vmem:[#allocation3] sm:$0xff] %vm922_vm4, %v827_v20 }
  0x9f   : > { %v617_v23 = vpop.trf.xlu1 }
  0xa0   : > { %666 = vst.msk [vmem:[#allocation2 + $0x19] sm:$0xff] %vm541_vm0, %v617_v23 }
  0xa3   : > { %v618_v24 = vpop.trf.xlu1 }
  0xa4   : > { %v829_v22 = vpop.permute.xlu0 %828  ;;  %667 = vst.msk [vmem:[#allocation2 + $0x21] sm:$0xff] %vm541_vm0, %v618_v24 }
  0xa5   : > { %924 = vst.msk [vmem:[#allocation3 + $0x8] sm:$0xff] %vm922_vm4, %v829_v22 }
  0xa7   : > { %v619_v25 = vpop.trf.xlu1  ;;  %v5845_v26 = vld [vmem:[#allocation2 + $0x19] sm:$0xff] }
  0xa8   : > { %v5847_v27 = vld [vmem:[#allocation2 + $0x18] sm:$0xff]  ;;  %668 = vst.msk [vmem:[#allocation2 + $0x31] sm:$0xff] %vm541_vm0, %v619_v25  ;;  %830 = vrot.lane.b32.xlu0 %v5845_v26, %s8185_s0 }
  0xa9   : > { %732 = vst.msk [vmem:[#allocation3 + $0x10] sm:$0xff] %vm541_vm0, %v5847_v27 }
  0xab   : > { %v620_v28 = vpop.trf.xlu1  ;;  %v765_v29 = vld [vmem:[#allocation2 + $0x21] sm:$0xff] }
  0xac   : > { %v5854_v30 = vld [vmem:[#allocation2 + $0x20] sm:$0xff]  ;;  %669 = vst.msk [vmem:[#allocation2 + $0x39] sm:$0xff] %vm541_vm0, %v620_v28  ;;  %832 = vrot.lane.b32.xlu0 %v765_v29, %s8185_s0 }
  0xad   : > { %733 = vst.msk [vmem:[#allocation3 + $0x18] sm:$0xff] %vm541_vm0, %v5854_v30 }
  0xaf   : > { %v621_v31 = vpop.trf.xlu1  ;;  %v5860_v32 = vld [vmem:[#allocation2 + $0x31] sm:$0xff] }
  0xb0   : > { %v5862_v33 = vld [vmem:[#allocation2 + $0x30] sm:$0xff]  ;;  %670 = vst.msk [vmem:[#allocation2 + $0x49] sm:$0xff] %vm541_vm0, %v621_v31  ;;  %834 = vrot.lane.b32.xlu0 %v5860_v32, %s8185_s0 }
  0xb1   : > { %734 = vst.msk [vmem:[#allocation3 + $0x20] sm:$0xff] %vm541_vm0, %v5862_v33 }
  0xb3   : > { %v622_v34 = vpop.trf.xlu1  ;;  %v5869_v35 = vld [vmem:[#allocation2 + $0x39] sm:$0xff] }
  0xb4   : > { %v5871_v36 = vld [vmem:[#allocation2 + $0x38] sm:$0xff]  ;;  %671 = vst.msk [vmem:[#allocation2 + $0x51] sm:$0xff] %vm541_vm0, %v622_v34  ;;  %836 = vrot.lane.b32.xlu0 %v5869_v35, %s8185_s0 }
  0xb5   : > { %735 = vst.msk [vmem:[#allocation3 + $0x28] sm:$0xff] %vm541_vm0, %v5871_v36 }
  0xb7   : > { %v623_v37 = vpop.trf.xlu1  ;;  %v5878_v38 = vld [vmem:[#allocation2 + $0x49] sm:$0xff] }
  0xb8   : > { %v5880_v39 = vld [vmem:[#allocation2 + $0x48] sm:$0xff]  ;;  %672 = vst.msk [vmem:[#allocation2 + $0x61] sm:$0xff] %vm541_vm0, %v623_v37  ;;  %838 = vrot.lane.b32.xlu0 %v5878_v38, %s8185_s0 }
  0xb9   : > { %736 = vst.msk [vmem:[#allocation3 + $0x30] sm:$0xff] %vm541_vm0, %v5880_v39 }
  0xbb   : > { %v624_v40 = vpop.trf.xlu1  ;;  %v5887_v41 = vld [vmem:[#allocation2 + $0x51] sm:$0xff] }
  0xbc   : > { %v5889_v42 = vld [vmem:[#allocation2 + $0x50] sm:$0xff]  ;;  %673 = vst.msk [vmem:[#allocation2 + $0x69] sm:$0xff] %vm541_vm0, %v624_v40  ;;  %840 = vrot.lane.b32.xlu0 %v5887_v41, %s8185_s0 }
  0xbd   : > { %737 = vst.msk [vmem:[#allocation3 + $0x38] sm:$0xff] %vm541_vm0, %v5889_v42  ;;  %v5968_v5 = vld [vmem:[#allocation2 + $0x4a] sm:$0xff] }
  0xbf   : > { %v625_v43 = vpop.trf.xlu1  ;;  %v5896_v44 = vld [vmem:[#allocation2 + $0x61] sm:$0xff] }
  0xc0   : > { %v5898_v45 = vld [vmem:[#allocation2 + $0x60] sm:$0xff]  ;;  %674 = vst.msk [vmem:[#allocation2 + $0x79] sm:$0xff] %vm541_vm0, %v625_v43  ;;  %842 = vrot.lane.b32.xlu0 %v5896_v44, %s8185_s0 }
  0xc1   : > { %8186 = vst [vmem:[#allocation9_spill] sm:$0xff] %v5898_v45  ;;  %738 = vst.msk [vmem:[#allocation3 + $0x40] sm:$0xff] %vm541_vm0, %v5898_v45 }
  0xc3   : > { %v626_v46 = vpop.trf.xlu1  ;;  %v5905_v47 = vld [vmem:[#allocation2 + $0x69] sm:$0xff] }
  0xc4   : > { %v5907_v48 = vld [vmem:[#allocation2 + $0x68] sm:$0xff]  ;;  %675 = vst.msk [vmem:[#allocation2 + $0x81] sm:$0xff] %vm541_vm0, %v626_v46  ;;  %844 = vrot.lane.b32.xlu0 %v5905_v47, %s8185_s0 }
  0xc5   : > { %739 = vst.msk [vmem:[#allocation3 + $0x48] sm:$0xff] %vm541_vm0, %v5907_v48  ;;  %v5977_v8 = vld [vmem:[#allocation2 + $0x62] sm:$0xff] }
  0xc7   : > { %v627_v49 = vpop.trf.xlu1  ;;  %v5914_v50 = vld [vmem:[#allocation2 + $0x79] sm:$0xff] }
  0xc8   : > { %v5916_v51 = vld [vmem:[#allocation2 + $0x78] sm:$0xff]  ;;  %676 = vst.msk [vmem:[#allocation2 + $0x91] sm:$0xff] %vm541_vm0, %v627_v49  ;;  %846 = vrot.lane.b32.xlu0 %v5914_v50, %s8185_s0 }
  0xc9   : > { %740 = vst.msk [vmem:[#allocation3 + $0x50] sm:$0xff] %vm541_vm0, %v5916_v51 }
  0xcb   : > { %v628_v52 = vpop.trf.xlu1  ;;  %v5923_v53 = vld [vmem:[#allocation2 + $0x81] sm:$0xff] }
  0xcc   : > { %8187 = vst [vmem:[#allocation10_spill] sm:$0xff] %v5923_v53  ;;  %v5925_v54 = vld [vmem:[#allocation2 + $0x80] sm:$0xff]  ;;  %677 = vst.msk [vmem:[#allocation2 + $0x99] sm:$0xff] %vm541_vm0, %v628_v52  ;;  %848 = vrot.lane.b32.xlu0 %v5923_v53, %s8185_s0 }
  0xcd   : > { %741 = vst.msk [vmem:[#allocation3 + $0x58] sm:$0xff] %vm541_vm0, %v5925_v54  ;;  %v5986_v11 = vld [vmem:[#allocation2 + $0x7a] sm:$0xff] }
  0xcf   : > { %v629_v55 = vpop.trf.xlu1  ;;  %v5932_v56 = vld [vmem:[#allocation2 + $0x91] sm:$0xff] }
  0xd0   : > { %v5934_v57 = vld [vmem:[#allocation2 + $0x90] sm:$0xff]  ;;  %678 = vst.msk [vmem:[#allocation2 + $0xa9] sm:$0xff] %vm541_vm0, %v629_v55  ;;  %850 = vrot.lane.b32.xlu0 %v5932_v56, %s8185_s0 }
  0xd1   : > { %8188 = vst [vmem:[#allocation11_spill] sm:$0xff] %v5934_v57  ;;  %742 = vst.msk [vmem:[#allocation3 + $0x60] sm:$0xff] %vm541_vm0, %v5934_v57 }
  0xd3   : > { %v630_v58 = vpop.trf.xlu1  ;;  %v5941_v59 = vld [vmem:[#allocation2 + $0x99] sm:$0xff] }
  0xd4   : > { %8189 = vst [vmem:[#allocation12_spill] sm:$0xff] %v5941_v59  ;;  %v5943_v60 = vld [vmem:[#allocation2 + $0x98] sm:$0xff]  ;;  %679 = vst.msk [vmem:[#allocation2 + $0xb1] sm:$0xff] %vm541_vm0, %v630_v58  ;;  %852 = vrot.lane.b32.xlu0 %v5941_v59, %s8185_s0 }
  0xd5   : > { %743 = vst.msk [vmem:[#allocation3 + $0x68] sm:$0xff] %vm541_vm0, %v5943_v60  ;;  %v5999_v15 = vld [vmem:[#allocation2 + $0x92] sm:$0xff] }
  0xd7   : > { %v631_v61 = vpop.trf.xlu1  ;;  %v5950_v62 = vld [vmem:[#allocation2 + $0xa9] sm:$0xff] }
  0xd8   : > { %v5952_v63 = vld [vmem:[#allocation2 + $0xa8] sm:$0xff]  ;;  %680 = vst.msk [vmem:[#allocation2 + $0xc1] sm:$0xff] %vm541_vm0, %v631_v61  ;;  %854 = vrot.lane.b32.xlu0 %v5950_v62, %s8185_s0 }
  0xd9   : > { %8190 = vst [vmem:[#allocation13_spill] sm:$0xff] %v5952_v63  ;;  %744 = vst.msk [vmem:[#allocation3 + $0x70] sm:$0xff] %vm541_vm0, %v5952_v63 }
  0xdb   : > { %v632_v1 = vpop.trf.xlu1  ;;  %v5959_v2 = vld [vmem:[#allocation2 + $0xb1] sm:$0xff] }
  0xdc   : > { %8191 = vst [vmem:[#allocation14_spill] sm:$0xff] %v5959_v2  ;;  %v5961_v3 = vld [vmem:[#allocation2 + $0xb0] sm:$0xff]  ;;  %681 = vst.msk [vmem:[#allocation2 + $0xc9] sm:$0xff] %vm541_vm0, %v632_v1  ;;  %856 = vrot.lane.b32.xlu1 %v5959_v2, %s8185_s0 }
  0xdd   : > { %745 = vst.msk [vmem:[#allocation3 + $0x78] sm:$0xff] %vm541_vm0, %v5961_v3  ;;  %v6012_v19 = vld [vmem:[#allocation2 + $0xaa] sm:$0xff] }
  0xdf   : > { %v649_v4 = vpop.trf.xlu1  ;;  %v5970_v6 = vld [vmem:[#allocation2 + $0xc0] sm:$0xff] }
  0xe0   : > { %682 = vst.msk [vmem:[#allocation2 + $0xd9] sm:$0xff] %vm541_vm0, %v649_v4  ;;  %1031 = vrot.lane.b32.xlu1 %v5968_v5, %s5573_s25  ;;  %746 = vst.msk [vmem:[#allocation3 + $0x80] sm:$0xff] %vm541_vm0, %v5970_v6 }
  0xe3   : > { %v650_v7 = vpop.trf.xlu1  ;;  %v5982_v9 = vld [vmem:[#allocation2 + $0xc8] sm:$0xff] }
  0xe4   : > { %683 = vst.msk [vmem:[#allocation2 + $0xe1] sm:$0xff] %vm541_vm0, %v650_v7  ;;  %1035 = vrot.lane.b32.xlu1 %v5977_v8, %s5573_s25  ;;  %747 = vst.msk [vmem:[#allocation3 + $0x88] sm:$0xff] %vm541_vm0, %v5982_v9  ;;  %v6025_v23 = vld [vmem:[#allocation2 + $0xc2] sm:$0xff] }
  0xe7   : > { %v651_v10 = vpop.trf.xlu1  ;;  %v5988_v12 = vld [vmem:[#allocation2 + $0xd9] sm:$0xff] }
  0xe8   : > { %v5990_v13 = vld [vmem:[#allocation2 + $0xd8] sm:$0xff]  ;;  %684 = vst.msk [vmem:[#allocation2 + $0xf1] sm:$0xff] %vm541_vm0, %v651_v10  ;;  %1039 = vrot.lane.b32.xlu1 %v5986_v11, %s5573_s25  ;;  %862 = vrot.lane.b32.xlu0 %v5988_v12, %s8185_s0 }
  0xe9   : > { %748 = vst.msk [vmem:[#allocation3 + $0x90] sm:$0xff] %vm541_vm0, %v5990_v13 }
  0xeb   : > { %v652_v14 = vpop.trf.xlu1  ;;  %v6001_v16 = vld [vmem:[#allocation2 + $0xe1] sm:$0xff] }
  0xec   : > { %8192 = vst [vmem:[#allocation15_spill] sm:$0xff] %v6001_v16  ;;  %685 = vst.msk [vmem:[#allocation2 + $0xf9] sm:$0xff] %vm541_vm0, %v652_v14  ;;  %1043 = vrot.lane.b32.xlu1 %v5999_v15, %s5573_s25  ;;  %864 = vrot.lane.b32.xlu0 %v6001_v16, %s8185_s0  ;;  %v6008_v17 = vld [vmem:[#allocation2 + $0xe0] sm:$0xff] }
  0xed   : > { %749 = vst.msk [vmem:[#allocation3 + $0x98] sm:$0xff] %vm541_vm0, %v6008_v17  ;;  %v6038_v29 = vld [vmem:[#allocation2 + $0xda] sm:$0xff] }
  0xef   : > { %v653_v18 = vpop.trf.xlu1  ;;  %v6014_v20 = vld [vmem:[#allocation2 + $0xf1] sm:$0xff] }
  0xf0   : > { %v6016_v21 = vld [vmem:[#allocation2 + $0xf0] sm:$0xff]  ;;  %686 = vst.msk [vmem:[#allocation2 + $0x109] sm:$0xff] %vm541_vm0, %v653_v18  ;;  %1047 = vrot.lane.b32.xlu1 %v6012_v19, %s5573_s25  ;;  %866 = vrot.lane.b32.xlu0 %v6014_v20, %s8185_s0 }
  0xf1   : > { %750 = vst.msk [vmem:[#allocation3 + $0xa0] sm:$0xff] %vm541_vm0, %v6016_v21 }
  0xf3   : > { %v654_v22 = vpop.trf.xlu1  ;;  %v6027_v24 = vld [vmem:[#allocation2 + $0xf9] sm:$0xff] }
  0xf4   : > { %8193 = vst [vmem:[#allocation16_spill] sm:$0xff] %v6027_v24  ;;  %687 = vst.msk [vmem:[#allocation2 + $0x111] sm:$0xff] %vm541_vm0, %v654_v22  ;;  %1051 = vrot.lane.b32.xlu1 %v6025_v23, %s5573_s25  ;;  %868 = vrot.lane.b32.xlu0 %v6027_v24, %s8185_s0  ;;  %v6034_v25 = vld [vmem:[#allocation2 + $0xf8] sm:$0xff] }
  0xf5   : > { %751 = vst.msk [vmem:[#allocation3 + $0xa8] sm:$0xff] %vm541_vm0, %v6034_v25  ;;  %v6051_v40 = vld [vmem:[#allocation2 + $0xf2] sm:$0xff]  ;;  %v6088_v10 = vpop.f32.mrb[0].mxu0 }
  0xf6   : > { %v5267_v14 = vpop.f32.mrb[1].mxu0 }
  0xf7   : > { %v655_v28 = vpop.trf.xlu1  ;;  %v6040_v31 = vld [vmem:[#allocation2 + $0x109] sm:$0xff] }
  0xf8   : > { %v6042_v34 = vld [vmem:[#allocation2 + $0x108] sm:$0xff]  ;;  %688 = vst.msk [vmem:[#allocation2 + $0x121] sm:$0xff] %vm541_vm0, %v655_v28  ;;  %1055 = vrot.lane.b32.xlu1 %v6038_v29, %s5573_s25  ;;  %870 = vrot.lane.b32.xlu0 %v6040_v31, %s8185_s0 }
  0xf9   : > { %752 = vst.msk [vmem:[#allocation3 + $0xb0] sm:$0xff] %vm541_vm0, %v6042_v34 }
  0xfb   : > { %v656_v37 = vpop.trf.xlu1  ;;  %v6053_v43 = vld [vmem:[#allocation2 + $0x111] sm:$0xff] }
  0xfc   : > { %8194 = vst [vmem:[#allocation17_spill] sm:$0xff] %v6053_v43  ;;  %689 = vst.msk [vmem:[#allocation2 + $0x129] sm:$0xff] %vm541_vm0, %v656_v37  ;;  %1059 = vrot.lane.b32.xlu1 %v6051_v40, %s5573_s25  ;;  %872 = vrot.lane.b32.xlu0 %v6053_v43, %s8185_s0  ;;  %v6060_v46 = vld [vmem:[#allocation2 + $0x110] sm:$0xff]  ;;  %v6101_v37 = vpop.f32.mrb[0].mxu1 }
  0xfd   : > { %753 = vst.msk [vmem:[#allocation3 + $0xb8] sm:$0xff] %vm541_vm0, %v6060_v46  ;;  %v6064_v52 = vld [vmem:[#allocation2 + $0x10a] sm:$0xff] }
  0xff   : > { %v657_v49 = vpop.trf.xlu1  ;;  %v6066_v55 = vld [vmem:[#allocation2 + $0x121] sm:$0xff] }
 0x100   : > { %v6068_v58 = vld [vmem:[#allocation2 + $0x120] sm:$0xff]  ;;  %690 = vst.msk [vmem:[#allocation2 + $0x139] sm:$0xff] %vm541_vm0, %v657_v49  ;;  %1063 = vrot.lane.b32.xlu1 %v6064_v52, %s5573_s25  ;;  %874 = vrot.lane.b32.xlu0 %v6066_v55, %s8185_s0  ;;  %v5278_v49 = vpop.f32.mrb[1].mxu1 }
 0x101   : > { %754 = vst.msk [vmem:[#allocation3 + $0xc0] sm:$0xff] %vm541_vm0, %v6068_v58 }
 0x103   : > { %v658_v61 = vpop.trf.xlu1  ;;  %v6077_v1 = vld [vmem:[#allocation2 + $0x122] sm:$0xff] }
 0x104   : > { %8195 = vst [vmem:[#allocation18_spill] sm:$0xff] %v6077_v1  ;;  %v6079_v4 = vld [vmem:[#allocation2 + $0x129] sm:$0xff]  ;;  %691 = vst.msk [vmem:[#allocation2 + $0x141] sm:$0xff] %vm541_vm0, %v658_v61  ;;  %1067 = vrot.lane.b32.xlu1 %v6077_v1, %s5573_s25 }
 0x105   : > { %8196 = vst [vmem:[#allocation19_spill] sm:$0xff] %v6079_v4  ;;  %876 = vrot.lane.b32.xlu0 %v6079_v4, %s8185_s0  ;;  %v6086_v7 = vld [vmem:[#allocation2 + $0x128] sm:$0xff] }
 0x106   : > { %755 = vst.msk [vmem:[#allocation3 + $0xc8] sm:$0xff] %vm541_vm0, %v6086_v7 }
 0x107   : > { %v659_v18 = vpop.trf.xlu1  ;;  %v6092_v22 = vld [vmem:[#allocation2 + $0x139] sm:$0xff] }
 0x108   : > { %v6094_v28 = vld [vmem:[#allocation2 + $0x138] sm:$0xff]  ;;  %692 = vst.msk [vmem:[#allocation2 + $0x151] sm:$0xff] %vm541_vm0, %v659_v18 }
 0x109   : > { %8197 = vst [vmem:[#allocation20_spill] sm:$0xff] %v6094_v28  ;;  %878 = vrot.lane.b32.xlu0 %v6092_v22, %s8185_s0  ;;  %756 = vst.msk [vmem:[#allocation3 + $0xd0] sm:$0xff] %vm541_vm0, %v6094_v28 }
 0x10b   : > { %v660_v61 = vpop.trf.xlu1  ;;  %v6103_v0 = vld [vmem:[#allocation2 + $0x13a] sm:$0xff] }
 0x10c   : > { %8198 = vst [vmem:[#allocation21_spill] sm:$0xff] %v6103_v0  ;;  %v6105_v14 = vld [vmem:[#allocation2 + $0x141] sm:$0xff]  ;;  %693 = vst.msk [vmem:[#allocation2 + $0x159] sm:$0xff] %vm541_vm0, %v660_v61  ;;  %1071 = vrot.lane.b32.xlu1 %v6103_v0, %s5573_s25 }
 0x10d   : > { %8199 = vst [vmem:[#allocation22_spill] sm:$0xff] %v6105_v14  ;;  %880 = vrot.lane.b32.xlu0 %v6105_v14, %s8185_s0  ;;  %v6112_v18 = vld [vmem:[#allocation2 + $0x140] sm:$0xff] }
 0x10e   : > { %757 = vst.msk [vmem:[#allocation3 + $0xd8] sm:$0xff] %vm541_vm0, %v6112_v18 }
 0x10f   : > { %v661_v4 = vpop.trf.xlu1  ;;  %v6116_v49 = vld [vmem:[#allocation2 + $0x151] sm:$0xff] }
 0x110   : > { %v6118_v43 = vld [vmem:[#allocation2 + $0x150] sm:$0xff]  ;;  %694 = vst.msk [vmem:[#allocation2 + $0x169] sm:$0xff] %vm541_vm0, %v661_v4 }
 0x111   : > { %882 = vrot.lane.b32.xlu0 %v6116_v49, %s8185_s0  ;;  %758 = vst.msk [vmem:[#allocation3 + $0xe0] sm:$0xff] %vm541_vm0, %v6118_v43 }
 0x113   : > { %v662_v61 = vpop.trf.xlu1  ;;  %v6125_v14 = vld [vmem:[#allocation2 + $0x152] sm:$0xff] }
 0x114   : > { %8200 = vst [vmem:[#allocation23_spill] sm:$0xff] %v6125_v14  ;;  %v6127_v24 = vld [vmem:[#allocation2 + $0x159] sm:$0xff]  ;;  %695 = vst.msk [vmem:[#allocation2 + $0x171] sm:$0xff] %vm541_vm0, %v662_v61  ;;  %1075 = vrot.lane.b32.xlu1 %v6125_v14, %s5573_s25  ;;  %v955_v61 = vld [vmem:[#allocation2 + $0x2] sm:$0xff] }
 0x115   : > { %8201 = vst [vmem:[#allocation24_spill] sm:$0xff] %v6127_v24  ;;  %884 = vrot.lane.b32.xlu0 %v6127_v24, %s8185_s0  ;;  %v6134_v4 = vld [vmem:[#allocation2 + $0x158] sm:$0xff] }
 0x116   : > { %759 = vst.msk [vmem:[#allocation3 + $0xe8] sm:$0xff] %vm541_vm0, %v6134_v4 }
 0x117   : > { %v6138_v16 = vld [vmem:[#allocation2 + $0x169] sm:$0xff]  ;;  %v663_v2 = vpop.trf.xlu1 }
 0x118   : > { %v6140_v0 = vld [vmem:[#allocation2 + $0x168] sm:$0xff]  ;;  %696 = vst.msk [vmem:[#allocation2 + $0x181] sm:$0xff] %vm541_vm0, %v663_v2 }
 0x119   : > { %8202 = vst [vmem:[#allocation25_spill] sm:$0xff] %v6140_v0  ;;  %886 = vrot.lane.b32.xlu0 %v6138_v16, %s8185_s0  ;;  %760 = vst.msk [vmem:[#allocation3 + $0xf0] sm:$0xff] %vm541_vm0, %v6140_v0  ;;  %v956_v2 = vld [vmem:[#allocation2 + $0xa] sm:$0xff] }
 0x11a   : > { %v831_v24 = vpop.permute.xlu0 %830 }
 0x11b   : > { %925 = vst.msk [vmem:[#allocation3 + $0x10] sm:$0xff] %vm922_vm4, %v831_v24  ;;  %v6148_v14 = vld [vmem:[#allocation2 + $0x16a] sm:$0xff]  ;;  %v664_v59 = vpop.trf.xlu1 }
 0x11c   : > { %1079 = vrot.lane.b32.xlu1 %v6148_v14, %s5573_s25  ;;  %697 = vst.msk [vmem:[#allocation2 + $0x189] sm:$0xff] %vm541_vm0, %v664_v59  ;;  %v6154_v1 = vld [vmem:[#allocation2 + $0x170] sm:$0xff] }
 0x11d   : > { %1019 = vrot.lane.b32.xlu0 %v955_v61, %s5573_s25  ;;  %761 = vst.msk [vmem:[#allocation3 + $0xf8] sm:$0xff] %vm541_vm0, %v6154_v1  ;;  %v6163_v61 = vld [vmem:[#allocation2 + $0x1a] sm:$0xff]  ;;  %vm3087_vm0 = vcmask 130112  }
 0x11e   : > { %v833_v53 = vpop.permute.xlu0 %832 }
 0x11f   : > { %926 = vst.msk [vmem:[#allocation3 + $0x18] sm:$0xff] %vm922_vm4, %v833_v53  ;;  %v6170_v53 = vld [vmem:[#allocation2 + $0x22] sm:$0xff] }
 0x120   : > { %1212 = vrot.lane.b32.xlu1 %v5847_v27, %s5574_s30  ;;  %8203 = vst [vmem:[#allocation26_spill] sm:$0xff] %v6170_v53 }
 0x121   : > { %1021 = vrot.lane.b32.xlu0 %v956_v2, %s5573_s25  ;;  %v6177_v2 = vld [vmem:[#allocation2 + $0x32] sm:$0xff] }
 0x122   : > { %v835_v24 = vpop.permute.xlu0 %834 }
 0x123   : > { %927 = vst.msk [vmem:[#allocation3 + $0x20] sm:$0xff] %vm922_vm4, %v835_v24  ;;  %v6183_v24 = vld [vmem:[#allocation2 + $0x171] sm:$0xff] }
 0x124   : > { %1216 = vrot.lane.b32.xlu1 %v5862_v33, %s5574_s30  ;;  %8204 = vst [vmem:[#allocation27_spill] sm:$0xff] %v6183_v24 }
 0x125   : > { %1023 = vrot.lane.b32.xlu0 %v6163_v61, %s5573_s25 }
 0x126   : > { %v837_v59 = vpop.permute.xlu0 %836 }
 0x127   : > { %928 = vst.msk [vmem:[#allocation3 + $0x28] sm:$0xff] %vm922_vm4, %v837_v59 }
 0x128   : > { %1220 = vrot.lane.b32.xlu1 %v5880_v39, %s5574_s30 }
 0x129   : > { %1025 = vrot.lane.b32.xlu0 %v6170_v53, %s5573_s25  ;;  %v6191_v53 = vld [vmem:[#allocation2 + $0xc1] sm:$0xff] }
 0x12a   : > { %v839_v27 = vpop.permute.xlu0 %838 }
 0x12b   : > { %929 = vst.msk [vmem:[#allocation3 + $0x30] sm:$0xff] %vm922_vm4, %v839_v27 }
 0x12c   : > { %1224 = vrot.lane.b32.xlu1 %v5898_v45, %s5574_s30 }
 0x12d   : > { %1027 = vrot.lane.b32.xlu0 %v6177_v2, %s5573_s25 }
 0x12e   : > { %v841_v59 = vpop.permute.xlu0 %840 }
 0x12f   : > { %930 = vst.msk [vmem:[#allocation3 + $0x38] sm:$0xff] %vm922_vm4, %v841_v59  ;;  %v6198_v59 = vld [vmem:[#allocation2 + $0xc9] sm:$0xff] }
 0x130   : > { %1228 = vrot.lane.b32.xlu1 %v5916_v51, %s5574_s30 }
 0x131   : > { %888 = vrot.lane.b32.xlu0 %v6183_v24, %s8185_s0  ;;  %v6205_v24 = vld [vmem:[#allocation2 + $0x3a] sm:$0xff] }
 0x132   : > { %v843_v27 = vpop.permute.xlu0 %842  ;;  %8205 = vst [vmem:[#allocation28_spill] sm:$0xff] %v6205_v24 }
 0x133   : > { %931 = vst.msk [vmem:[#allocation3 + $0x40] sm:$0xff] %vm922_vm4, %v843_v27 }
 0x134   : > { %1232 = vrot.lane.b32.xlu1 %v5934_v57, %s5574_s30  ;;  %v6212_v57 = vld [vmem:[#allocation2 + $0x52] sm:$0xff] }
 0x135   : > { %858 = vrot.lane.b32.xlu0 %v6191_v53, %s8185_s0  ;;  %8206 = vst [vmem:[#allocation29_spill] sm:$0xff] %v6212_v57 }
 0x136   : > { %v845_v45 = vpop.permute.xlu0 %844 }
 0x137   : > { %932 = vst.msk [vmem:[#allocation3 + $0x48] sm:$0xff] %vm922_vm4, %v845_v45 }
 0x138   : > { %1236 = vrot.lane.b32.xlu1 %v5952_v63, %s5574_s30  ;;  %v6219_v63 = vld [vmem:[#allocation2 + $0x6a] sm:$0xff] }
 0x139   : > { %860 = vrot.lane.b32.xlu0 %v6198_v59, %s8185_s0  ;;  %8207 = vst [vmem:[#allocation30_spill] sm:$0xff] %v6219_v63  ;;  %s5580_s0 = smov 32  }
 0x13a   : > { %v847_v27 = vpop.permute.xlu0 %846 }
 0x13b   : > { %933 = vst.msk [vmem:[#allocation3 + $0x50] sm:$0xff] %vm922_vm4, %v847_v27 }
 0x13c   : > { %1240 = vrot.lane.b32.xlu1 %v5970_v6, %s5574_s30 }
 0x13d   : > { %1029 = vrot.lane.b32.xlu0 %v6205_v24, %s5573_s25  ;;  %v6226_v24 = vld [vmem:[#allocation2 + $0x82] sm:$0xff] }
 0x13e   : > { %v849_v45 = vpop.permute.xlu0 %848  ;;  %8208 = vst [vmem:[#allocation31_spill] sm:$0xff] %v6226_v24 }
 0x13f   : > { %934 = vst.msk [vmem:[#allocation3 + $0x58] sm:$0xff] %vm922_vm4, %v849_v45 }
 0x140   : > { %1244 = vrot.lane.b32.xlu1 %v5990_v13, %s5574_s30 }
 0x141   : > { %1033 = vrot.lane.b32.xlu0 %v6212_v57, %s5573_s25  ;;  %v6233_v57 = vld [vmem:[#allocation2 + $0x9a] sm:$0xff] }
 0x142   : > { %v851_v27 = vpop.permute.xlu0 %850  ;;  %8209 = vst [vmem:[#allocation32_spill] sm:$0xff] %v6233_v57 }
 0x143   : > { %935 = vst.msk [vmem:[#allocation3 + $0x60] sm:$0xff] %vm922_vm4, %v851_v27 }
 0x144   : > { %1248 = vrot.lane.b32.xlu1 %v6016_v21, %s5574_s30 }
 0x145   : > { %1037 = vrot.lane.b32.xlu0 %v6219_v63, %s5573_s25  ;;  %v6240_v63 = vld [vmem:[#allocation2 + $0xb2] sm:$0xff] }
 0x146   : > { %v853_v45 = vpop.permute.xlu0 %852  ;;  %8210 = vst [vmem:[#allocation33_spill] sm:$0xff] %v6240_v63 }
 0x147   : > { %936 = vst.msk [vmem:[#allocation3 + $0x68] sm:$0xff] %vm922_vm4, %v853_v45 }
 0x148   : > { %1252 = vrot.lane.b32.xlu1 %v6042_v34, %s5574_s30 }
 0x149   : > { %1041 = vrot.lane.b32.xlu0 %v6226_v24, %s5573_s25  ;;  %v6247_v24 = vld [vmem:[#allocation2 + $0xca] sm:$0xff] }
 0x14a   : > { %v855_v27 = vpop.permute.xlu0 %854  ;;  %8211 = vst [vmem:[#allocation34_spill] sm:$0xff] %v6247_v24 }
 0x14b   : > { %937 = vst.msk [vmem:[#allocation3 + $0x70] sm:$0xff] %vm922_vm4, %v855_v27 }
 0x14c   : > { %1256 = vrot.lane.b32.xlu1 %v6068_v58, %s5574_s30 }
 0x14d   : > { %1045 = vrot.lane.b32.xlu0 %v6233_v57, %s5573_s25  ;;  %v6254_v57 = vld [vmem:[#allocation2 + $0xe2] sm:$0xff] }
 0x14e   : > { %v857_v45 = vpop.permute.xlu1 %856  ;;  %8212 = vst [vmem:[#allocation35_spill] sm:$0xff] %v6254_v57 }
 0x14f   : > { %938 = vst.msk [vmem:[#allocation3 + $0x78] sm:$0xff] %vm922_vm4, %v857_v45 }
 0x150   : > { %1260 = vrot.lane.b32.xlu1 %v6094_v28, %s5574_s30 }
 0x151   : > { %1049 = vrot.lane.b32.xlu0 %v6240_v63, %s5573_s25 }
 0x152   : > { %v1032_v27 = vpop.permute.xlu1 %1031 }
 0x153   : > { %1122 = vst.msk [vmem:[#allocation3 + $0x30] sm:$0xff] %vm1115_vm5, %v1032_v27  ;;  %v6260_v27 = vld [vmem:[#allocation2 + $0x180] sm:$0xff] }
 0x154   : > { %1264 = vrot.lane.b32.xlu1 %v6118_v43, %s5574_s30 }
 0x155   : > { %1053 = vrot.lane.b32.xlu0 %v6247_v24, %s5573_s25  ;;  %v6264_v24 = vld [vmem:[#allocation2 + $0xfa] sm:$0xff] }
 0x156   : > { %v1036_v45 = vpop.permute.xlu1 %1035  ;;  %8213 = vst [vmem:[#allocation36_spill] sm:$0xff] %v6264_v24 }
 0x157   : > { %1124 = vst.msk [vmem:[#allocation3 + $0x40] sm:$0xff] %vm1115_vm5, %v1036_v45 }
 0x158   : > { %1268 = vrot.lane.b32.xlu1 %v6140_v0, %s5574_s30 }
 0x159   : > { %1057 = vrot.lane.b32.xlu0 %v6254_v57, %s5573_s25  ;;  %v6272_v57 = vld [vmem:[#allocation2 + $0x112] sm:$0xff] }
 0x15a   : > { %v863_v63 = vpop.permute.xlu0 %862  ;;  %v1040_v28 = vpop.permute.xlu1 %1039 }
 0x15b   : > { %941 = vst.msk [vmem:[#allocation3 + $0x90] sm:$0xff] %vm922_vm4, %v863_v63 }
 0x15c   : > { %1126 = vst.msk [vmem:[#allocation3 + $0x50] sm:$0xff] %vm1115_vm5, %v1040_v28  ;;  %1272 = vrot.lane.b32.xlu1 %v6260_v27, %s5574_s30 }
 0x15d   : > { %1061 = vrot.lane.b32.xlu0 %v6264_v24, %s5573_s25  ;;  %v6280_v24 = vld [vmem:[#allocation2 + $0x12a] sm:$0xff] }
 0x15e   : > { %v865_v45 = vpop.permute.xlu0 %864  ;;  %v1044_v0 = vpop.permute.xlu1 %1043  ;;  %8214 = vst [vmem:[#allocation37_spill] sm:$0xff] %v6280_v24 }
 0x15f   : > { %942 = vst.msk [vmem:[#allocation3 + $0x98] sm:$0xff] %vm922_vm4, %v865_v45 }
 0x160   : > { %1128 = vst.msk [vmem:[#allocation3 + $0x60] sm:$0xff] %vm1115_vm5, %v1044_v0  ;;  %1405 = vrot.lane.b32.xlu1 %v5845_v26, %s5575_s29  ;;  %v6289_v26 = vld [vmem:[#allocation2 + $0x142] sm:$0xff] }
 0x161   : > { %1065 = vrot.lane.b32.xlu0 %v6272_v57, %s5573_s25 }
 0x162   : > { %v867_v63 = vpop.permute.xlu0 %866  ;;  %v1048_v28 = vpop.permute.xlu1 %1047 }
 0x163   : > { %943 = vst.msk [vmem:[#allocation3 + $0xa0] sm:$0xff] %vm922_vm4, %v867_v63 }
 0x164   : > { %1130 = vst.msk [vmem:[#allocation3 + $0x70] sm:$0xff] %vm1115_vm5, %v1048_v28  ;;  %1409 = vrot.lane.b32.xlu1 %v5860_v32, %s5575_s29  ;;  %v6297_v32 = vld [vmem:[#allocation2 + $0x15a] sm:$0xff] }
 0x165   : > { %1069 = vrot.lane.b32.xlu0 %v6280_v24, %s5573_s25 }
 0x166   : > { %v869_v0 = vpop.permute.xlu0 %868  ;;  %v6286_v45 = vpop.permute.xlu1 %1051 }
 0x167   : > { %944 = vst.msk [vmem:[#allocation3 + $0xa8] sm:$0xff] %vm922_vm4, %v869_v0 }
 0x168   : > { %1413 = vrot.lane.b32.xlu1 %v5878_v38, %s5575_s29  ;;  %v6305_v38 = vld [vmem:[#allocation2 + $0x172] sm:$0xff] }
 0x169   : > { %1073 = vrot.lane.b32.xlu0 %v6289_v26, %s5573_s25 }
 0x16a   : > { %v871_v63 = vpop.permute.xlu0 %870  ;;  %v1056_v28 = vpop.permute.xlu1 %1055 }
 0x16b   : > { %945 = vst.msk [vmem:[#allocation3 + $0xb0] sm:$0xff] %vm922_vm4, %v871_v63 }
 0x16c   : > { %1134 = vst.msk [vmem:[#allocation3 + $0x90] sm:$0xff] %vm1115_vm5, %v1056_v28  ;;  %1417 = vrot.lane.b32.xlu1 %v5896_v44, %s5575_s29 }
 0x16d   : > { %1077 = vrot.lane.b32.xlu0 %v6297_v32, %s5573_s25 }
 0x16e   : > { %v873_v0 = vpop.permute.xlu0 %872  ;;  %v1060_v24 = vpop.permute.xlu1 %1059 }
 0x16f   : > { %946 = vst.msk [vmem:[#allocation3 + $0xb8] sm:$0xff] %vm922_vm4, %v873_v0 }
 0x170   : > { %1136 = vst.msk [vmem:[#allocation3 + $0xa0] sm:$0xff] %vm1115_vm5, %v1060_v24  ;;  %1421 = vrot.lane.b32.xlu1 %v5914_v50, %s5575_s29 }
 0x171   : > { %1081 = vrot.lane.b32.xlu0 %v6305_v38, %s5573_s25 }
 0x172   : > { %v875_v63 = vpop.permute.xlu0 %874  ;;  %v1064_v28 = vpop.permute.xlu1 %1063 }
 0x173   : > { %947 = vst.msk [vmem:[#allocation3 + $0xc0] sm:$0xff] %vm922_vm4, %v875_v63 }
 0x174   : > { %1138 = vst.msk [vmem:[#allocation3 + $0xb0] sm:$0xff] %vm1115_vm5, %v1064_v28  ;;  %1425 = vrot.lane.b32.xlu1 %v5932_v56, %s5575_s29 }
 0x175   : > { %1214 = vrot.lane.b32.xlu0 %v5854_v30, %s5574_s30 }
 0x176   : > { %v1068_v24 = vpop.permute.xlu1 %1067 }
 0x177   : > { %v877_v44 = vpop.permute.xlu0 %876  ;;  %1140 = vst.msk [vmem:[#allocation3 + $0xc0] sm:$0xff] %vm1115_vm5, %v1068_v24 }
 0x178   : > { %948 = vst.msk [vmem:[#allocation3 + $0xc8] sm:$0xff] %vm922_vm4, %v877_v44  ;;  %1429 = vrot.lane.b32.xlu1 %v5950_v62, %s5575_s29 }
 0x179   : > { %1218 = vrot.lane.b32.xlu0 %v5871_v36, %s5574_s30  ;;  %v377_v36 = vld [vmem:[%s8142_s5] sm:$0x1] }
 0x17a   : > { %v6339_v62 = vadd.f32 %v6088_v10, %v377_v36 }
 0x17b   : > { %v879_v50 = vpop.permute.xlu0 %878 }
 0x17c   : > { %949 = vst.msk [vmem:[#allocation3 + $0xd0] sm:$0xff] %vm922_vm4, %v879_v50  ;;  %1433 = vrot.lane.b32.xlu1 %v6191_v53, %s5575_s29  ;;  %v6426_v50 = vld [vmem:[#allocation2 + $0x188] sm:$0xff] }
 0x17d   : > { %1222 = vrot.lane.b32.xlu0 %v5889_v42, %s5574_s30 }
 0x17e   : > { %v1072_v56 = vpop.permute.xlu1 %1071 }
 0x17f   : > { %v881_v30 = vpop.permute.xlu0 %880  ;;  %1142 = vst.msk [vmem:[#allocation3 + $0xd0] sm:$0xff] %vm1115_vm5, %v1072_v56 }
 0x180   : > { %950 = vst.msk [vmem:[#allocation3 + $0xd8] sm:$0xff] %vm922_vm4, %v881_v30  ;;  %1437 = vrot.lane.b32.xlu1 %v5988_v12, %s5575_s29 }
 0x181   : > { %1226 = vrot.lane.b32.xlu0 %v5907_v48, %s5574_s30  ;;  %v463_v48 = vld [vmem:[%s8146_s9] sm:$0x1] }
 0x182   : > { %v6351_v0 = vadd.f32 %v6101_v37, %v463_v48 }
 0x183   : > { %v883_v42 = vpop.permute.xlu0 %882 }
 0x184   : > { %951 = vst.msk [vmem:[#allocation3 + $0xe0] sm:$0xff] %vm922_vm4, %v883_v42  ;;  %1441 = vrot.lane.b32.xlu1 %v6014_v20, %s5575_s29 }
 0x185   : > { %1230 = vrot.lane.b32.xlu0 %v5925_v54, %s5574_s30 }
 0x186   : > { %v1076_v53 = vpop.permute.xlu1 %1075 }
 0x187   : > { %v885_v12 = vpop.permute.xlu0 %884  ;;  %1144 = vst.msk [vmem:[#allocation3 + $0xe0] sm:$0xff] %vm1115_vm5, %v1076_v53 }
 0x188   : > { %952 = vst.msk [vmem:[#allocation3 + $0xe8] sm:$0xff] %vm922_vm4, %v885_v12  ;;  %1445 = vrot.lane.b32.xlu1 %v6040_v31, %s5575_s29 }
 0x189   : > { %455 = vrot.lane.b32.xlu0 %v6339_v62, %s5576_s21 }
 0x18b   : > { %v887_v54 = vpop.permute.xlu0 %886 }
 0x18c   : > { %953 = vst.msk [vmem:[#allocation3 + $0xf0] sm:$0xff] %vm922_vm4, %v887_v54  ;;  %1449 = vrot.lane.b32.xlu1 %v6066_v55, %s5575_s29 }
 0x18d   : > { %537 = vrot.lane.b32.xlu0 %v6351_v0, %s5576_s21 }
 0x18e   : > { %v1080_v10 = vpop.permute.xlu1 %1079 }
 0x18f   : > { %v1020_v20 = vpop.permute.xlu0 %1019  ;;  %1146 = vst.msk [vmem:[#allocation3 + $0xf0] sm:$0xff] %vm1115_vm5, %v1080_v10  ;;  %v8219_v10 = vld [vmem:[#allocation14_spill] sm:$0xff] }
 0x190   : > { %1116 = vst.msk [vmem:[#allocation3] sm:$0xff] %vm1115_vm5, %v1020_v20  ;;  %1453 = vrot.lane.b32.xlu1 %v6092_v22, %s5575_s29 }
 0x191   : > { %1234 = vrot.lane.b32.xlu0 %v5943_v60, %s5574_s30  ;;  %v6378_v60 = vld [vmem:[#allocation2 + $0x181] sm:$0xff] }
 0x192   : > { %v1213_v37 = vpop.permute.xlu1 %1212 }
 0x193   : > { %v1022_v31 = vpop.permute.xlu0 %1021  ;;  %1309 = vst.msk [vmem:[#allocation3] sm:$0xff] %vm1308_vm6, %v1213_v37 }
 0x194   : > { %1117 = vst.msk [vmem:[#allocation3 + $0x8] sm:$0xff] %vm1115_vm5, %v1022_v31  ;;  %1457 = vrot.lane.b32.xlu1 %v6116_v49, %s5575_s29  ;;  %v8220_v31 = vld [vmem:[#allocation23_spill] sm:$0xff] }
 0x195   : > { %1238 = vrot.lane.b32.xlu0 %v5961_v3, %s5574_s30 }
 0x196   : > { %v1217_v63 = vpop.permute.xlu1 %1216 }
 0x197   : > { %v1024_v55 = vpop.permute.xlu0 %1023 }
 0x198   : > { %1118 = vst.msk [vmem:[#allocation3 + $0x10] sm:$0xff] %vm1115_vm5, %v1024_v55  ;;  %1461 = vrot.lane.b32.xlu1 %v6138_v16, %s5575_s29 }
 0x199   : > { %1311 = vst.msk [vmem:[#allocation3 + $0x10] sm:$0xff] %vm1308_vm6, %v1217_v63  ;;  %1242 = vrot.lane.b32.xlu0 %v5982_v9, %s5574_s30 }
 0x19a   : > { %v1221_v28 = vpop.permute.xlu1 %1220 }
 0x19b   : > { %v1026_v22 = vpop.permute.xlu0 %1025 }
 0x19c   : > { %1119 = vst.msk [vmem:[#allocation3 + $0x18] sm:$0xff] %vm1115_vm5, %v1026_v22  ;;  %1465 = vrot.lane.b32.xlu1 %v6378_v60, %s5575_s29 }
 0x19d   : > { %1246 = vrot.lane.b32.xlu0 %v6008_v17, %s5574_s30 }
 0x19e   : > { %v1225_v49 = vpop.permute.xlu1 %1224 }
 0x19f   : > { %v1028_v3 = vpop.permute.xlu0 %1027  ;;  %1315 = vst.msk [vmem:[#allocation3 + $0x30] sm:$0xff] %vm1308_vm6, %v1225_v49 }
 0x1a0   : > { %1120 = vst.msk [vmem:[#allocation3 + $0x20] sm:$0xff] %vm1115_vm5, %v1028_v3  ;;  %1598 = vrot.lane.b32.xlu1 %v6163_v61, %s5577_s26  ;;  %v8221_v3 = vld [vmem:[#allocation15_spill] sm:$0xff] }
 0x1a1   : > { %1313 = vst.msk [vmem:[#allocation3 + $0x20] sm:$0xff] %vm1308_vm6, %v1221_v28  ;;  %1250 = vrot.lane.b32.xlu0 %v6034_v25, %s5574_s30  ;;  %v6481_v28 = vld [vmem:[#allocation2 + $0x182] sm:$0xff] }
 0x1a2   : > { %v1229_v17 = vpop.permute.xlu1 %1228 }
 0x1a3   : > { %v889_v16 = vpop.permute.xlu0 %888  ;;  %1317 = vst.msk [vmem:[#allocation3 + $0x40] sm:$0xff] %vm1308_vm6, %v1229_v17 }
 0x1a4   : > { %954 = vst.msk [vmem:[#allocation3 + $0xf8] sm:$0xff] %vm922_vm4, %v889_v16  ;;  %1602 = vrot.lane.b32.xlu1 %v6177_v2, %s5577_s26 }
 0x1a5   : > { %1254 = vrot.lane.b32.xlu0 %v6060_v46, %s5574_s30 }
 0x1a6   : > { %v1233_v24 = vpop.permute.xlu1 %1232 }
 0x1a7   : > { %v859_v44 = vpop.permute.xlu0 %858  ;;  %1319 = vst.msk [vmem:[#allocation3 + $0x50] sm:$0xff] %vm1308_vm6, %v1233_v24 }
 0x1a8   : > { %939 = vst.msk [vmem:[#allocation3 + $0x80] sm:$0xff] %vm922_vm4, %v859_v44  ;;  %1606 = vrot.lane.b32.xlu1 %v5968_v5, %s5577_s26  ;;  %v8223_v44 = vld [vmem:[#allocation17_spill] sm:$0xff] }
 0x1a9   : > { %1132 = vst.msk [vmem:[#allocation3 + $0x80] sm:$0xff] %vm1115_vm5, %v6286_v45  ;;  %1258 = vrot.lane.b32.xlu0 %v6086_v7, %s5574_s30 }
 0x1aa   : > { %v1237_v46 = vpop.permute.xlu1 %1236 }
 0x1ab   : > { %v861_v25 = vpop.permute.xlu0 %860  ;;  %1321 = vst.msk [vmem:[#allocation3 + $0x60] sm:$0xff] %vm1308_vm6, %v1237_v46  ;;  %v8225_v46 = vld [vmem:[#allocation9_spill] sm:$0xff] }
 0x1ac   : > { %940 = vst.msk [vmem:[#allocation3 + $0x88] sm:$0xff] %vm922_vm4, %v861_v25  ;;  %1610 = vrot.lane.b32.xlu1 %v5977_v8, %s5577_s26  ;;  %vm3859_vm4 = vcmask 392512  }
 0x1ad   : > { %1262 = vrot.lane.b32.xlu0 %v6112_v18, %s5574_s30 }
 0x1ae   : > { %v1241_v2 = vpop.permute.xlu1 %1240 }
 0x1af   : > { %v1030_v61 = vpop.permute.xlu0 %1029  ;;  %1323 = vst.msk [vmem:[#allocation3 + $0x70] sm:$0xff] %vm1308_vm6, %v1241_v2 }
 0x1b0   : > { %1121 = vst.msk [vmem:[#allocation3 + $0x28] sm:$0xff] %vm1115_vm5, %v1030_v61  ;;  %1614 = vrot.lane.b32.xlu1 %v5986_v11, %s5577_s26 }
 0x1b1   : > { %1266 = vrot.lane.b32.xlu0 %v6134_v4, %s5574_s30 }
 0x1b2   : > { %v1245_v7 = vpop.permute.xlu1 %1244 }
 0x1b3   : > { %v1034_v5 = vpop.permute.xlu0 %1033  ;;  %1325 = vst.msk [vmem:[#allocation3 + $0x80] sm:$0xff] %vm1308_vm6, %v1245_v7 }
 0x1b4   : > { %1123 = vst.msk [vmem:[#allocation3 + $0x38] sm:$0xff] %vm1115_vm5, %v1034_v5  ;;  %1618 = vrot.lane.b32.xlu1 %v5999_v15, %s5577_s26  ;;  %v1342_v15 = vld [vmem:[#allocation2 + $0x21] sm:$0xff] }
 0x1b5   : > { %1270 = vrot.lane.b32.xlu0 %v6154_v1, %s5574_s30 }
 0x1b6   : > { %v1249_v45 = vpop.permute.xlu1 %1248 }
 0x1b7   : > { %v1038_v8 = vpop.permute.xlu0 %1037  ;;  %1327 = vst.msk [vmem:[#allocation3 + $0x90] sm:$0xff] %vm1308_vm6, %v1249_v45  ;;  %v8228_v45 = vld [vmem:[#allocation11_spill] sm:$0xff] }
 0x1b8   : > { %1125 = vst.msk [vmem:[#allocation3 + $0x48] sm:$0xff] %vm1115_vm5, %v1038_v8  ;;  %1622 = vrot.lane.b32.xlu1 %v6012_v19, %s5577_s26  ;;  %v8227_v8 = vld [vmem:[#allocation24_spill] sm:$0xff] }
 0x1b9   : > { %1274 = vrot.lane.b32.xlu0 %v6426_v50, %s5574_s30 }
 0x1ba   : > { %v1253_v30 = vpop.permute.xlu1 %1252 }
 0x1bb   : > { %v1042_v11 = vpop.permute.xlu0 %1041  ;;  %1329 = vst.msk [vmem:[#allocation3 + $0xa0] sm:$0xff] %vm1308_vm6, %v1253_v30 }
 0x1bc   : > { %1127 = vst.msk [vmem:[#allocation3 + $0x58] sm:$0xff] %vm1115_vm5, %v1042_v11  ;;  %1626 = vrot.lane.b32.xlu1 %v6025_v23, %s5577_s26 }
 0x1bd   : > { %1407 = vrot.lane.b32.xlu0 %v1342_v15, %s5575_s29  ;;  %v8230_v15 = vld [vmem:[#allocation13_spill] sm:$0xff] }
 0x1be   : > { %v1257_v36 = vpop.permute.xlu1 %1256 }
 0x1bf   : > { %v1046_v56 = vpop.permute.xlu0 %1045  ;;  %1331 = vst.msk [vmem:[#allocation3 + $0xb0] sm:$0xff] %vm1308_vm6, %v1257_v36 }
 0x1c0   : > { %1129 = vst.msk [vmem:[#allocation3 + $0x68] sm:$0xff] %vm1115_vm5, %v1046_v56  ;;  %1630 = vrot.lane.b32.xlu1 %v6038_v29, %s5577_s26 }
 0x1c1   : > { %1411 = vrot.lane.b32.xlu0 %v5869_v35, %s5575_s29 }
 0x1c2   : > { %v1261_v42 = vpop.permute.xlu1 %1260 }
 0x1c3   : > { %v1050_v19 = vpop.permute.xlu0 %1049  ;;  %1333 = vst.msk [vmem:[#allocation3 + $0xc0] sm:$0xff] %vm1308_vm6, %v1261_v42 }
 0x1c4   : > { %1131 = vst.msk [vmem:[#allocation3 + $0x78] sm:$0xff] %vm1115_vm5, %v1050_v19  ;;  %1634 = vrot.lane.b32.xlu1 %v6051_v40, %s5577_s26  ;;  %v8216_v40 = vld [vmem:[#allocation18_spill] sm:$0xff] }
 0x1c5   : > { %1415 = vrot.lane.b32.xlu0 %v5887_v41, %s5575_s29  ;;  %v8215_v41 = vld [vmem:[#allocation10_spill] sm:$0xff] }
 0x1c6   : > { %v1265_v48 = vpop.permute.xlu1 %1264  ;;  %v6525_v19 = vld [vmem:[#allocation2 + $0x189] sm:$0xff] }
 0x1c7   : > { %v1054_v23 = vpop.permute.xlu0 %1053  ;;  %1335 = vst.msk [vmem:[#allocation3 + $0xd0] sm:$0xff] %vm1308_vm6, %v1265_v48  ;;  %v8231_v48 = vld [vmem:[#allocation26_spill] sm:$0xff] }
 0x1c8   : > { %1133 = vst.msk [vmem:[#allocation3 + $0x88] sm:$0xff] %vm1115_vm5, %v1054_v23  ;;  %1638 = vrot.lane.b32.xlu1 %v6064_v52, %s5577_s26  ;;  %v8218_v52 = vld [vmem:[#allocation21_spill] sm:$0xff] }
 0x1c9   : > { %1419 = vrot.lane.b32.xlu0 %v5905_v47, %s5575_s29  ;;  %v8217_v47 = vld [vmem:[#allocation12_spill] sm:$0xff] }
 0x1ca   : > { %v1269_v29 = vpop.permute.xlu1 %1268 }
 0x1cb   : > { %v1058_v35 = vpop.permute.xlu0 %1057  ;;  %1337 = vst.msk [vmem:[#allocation3 + $0xe0] sm:$0xff] %vm1308_vm6, %v1269_v29 }
 0x1cc   : > { %1135 = vst.msk [vmem:[#allocation3 + $0x98] sm:$0xff] %vm1115_vm5, %v1058_v35  ;;  %1642 = vrot.lane.b32.xlu1 %v8216_v40, %s5577_s26 }
 0x1cd   : > { %1423 = vrot.lane.b32.xlu0 %v8215_v41, %s5575_s29  ;;  %v8232_v41 = vld [vmem:[#allocation28_spill] sm:$0xff] }
 0x1ce   : > { %v1273_v53 = vpop.permute.xlu1 %1272 }
 0x1cf   : > { %v1062_v12 = vpop.permute.xlu0 %1061  ;;  %1339 = vst.msk [vmem:[#allocation3 + $0xf0] sm:$0xff] %vm1308_vm6, %v1273_v53 }
 0x1d0   : > { %1137 = vst.msk [vmem:[#allocation3 + $0xa8] sm:$0xff] %vm1115_vm5, %v1062_v12  ;;  %1646 = vrot.lane.b32.xlu1 %v8218_v52, %s5577_s26  ;;  %v8233_v12 = vld [vmem:[#allocation29_spill] sm:$0xff] }
 0x1d1   : > { %1427 = vrot.lane.b32.xlu0 %v8217_v47, %s5575_s29 }
 0x1d2   : > { %v1406_v20 = vpop.permute.xlu1 %1405 }
 0x1d3   : > { %v1066_v54 = vpop.permute.xlu0 %1065  ;;  %1502 = vst.msk [vmem:[#allocation3] sm:$0xff] %vm1501_vm7, %v1406_v20 }
 0x1d4   : > { %1139 = vst.msk [vmem:[#allocation3 + $0xb8] sm:$0xff] %vm1115_vm5, %v1066_v54  ;;  %1650 = vrot.lane.b32.xlu1 %v8220_v31, %s5577_s26  ;;  %v8236_v54 = vld [vmem:[#allocation20_spill] sm:$0xff] }
 0x1d5   : > { %1431 = vrot.lane.b32.xlu0 %v8219_v10, %s5575_s29 }
 0x1d6   : > { %v1410_v55 = vpop.permute.xlu1 %1409 }
 0x1d7   : > { %v1070_v37 = vpop.permute.xlu0 %1069  ;;  %1504 = vst.msk [vmem:[#allocation3 + $0x10] sm:$0xff] %vm1501_vm7, %v1410_v55  ;;  %v8238_v55 = vld [vmem:[#allocation33_spill] sm:$0xff] }
 0x1d8   : > { %1141 = vst.msk [vmem:[#allocation3 + $0xc8] sm:$0xff] %vm1115_vm5, %v1070_v37  ;;  %1654 = vrot.lane.b32.xlu1 %v6148_v14, %s5577_s26  ;;  %v8222_v14 = vld [vmem:[#allocation16_spill] sm:$0xff] }
 0x1d9   : > { %1435 = vrot.lane.b32.xlu0 %v6198_v59, %s5575_s29 }
 0x1da   : > { %v1414_v22 = vpop.permute.xlu1 %1413 }
 0x1db   : > { %v1074_v63 = vpop.permute.xlu0 %1073  ;;  %1506 = vst.msk [vmem:[#allocation3 + $0x20] sm:$0xff] %vm1501_vm7, %v1414_v22 }
 0x1dc   : > { %1143 = vst.msk [vmem:[#allocation3 + $0xd8] sm:$0xff] %vm1115_vm5, %v1074_v63  ;;  %1658 = vrot.lane.b32.xlu1 %v6481_v28, %s5577_s26  ;;  %v8239_v63 = vld [vmem:[#allocation25_spill] sm:$0xff] }
 0x1dd   : > { %1439 = vrot.lane.b32.xlu0 %v8221_v3, %s5575_s29 }
 0x1de   : > { %v1418_v16 = vpop.permute.xlu1 %1417 }
 0x1df   : > { %v1078_v49 = vpop.permute.xlu0 %1077  ;;  %1508 = vst.msk [vmem:[#allocation3 + $0x30] sm:$0xff] %vm1501_vm7, %v1418_v16 }
 0x1e0   : > { %1145 = vst.msk [vmem:[#allocation3 + $0xe8] sm:$0xff] %vm1115_vm5, %v1078_v49  ;;  %1792 = vrot.lane.b32.xlu1 %v5862_v33, %s5578_s27  ;;  %v8224_v33 = vld [vmem:[#allocation19_spill] sm:$0xff]  ;;  %v1758_v49 = vld [vmem:[#allocation2 + $0x198] sm:$0xff] }
 0x1e1   : > { %1443 = vrot.lane.b32.xlu0 %v8222_v14, %s5575_s29 }
 0x1e2   : > { %v1422_v17 = vpop.permute.xlu1 %1421 }
 0x1e3   : > { %v1082_v59 = vpop.permute.xlu0 %1081  ;;  %1510 = vst.msk [vmem:[#allocation3 + $0x40] sm:$0xff] %vm1501_vm7, %v1422_v17 }
 0x1e4   : > { %1147 = vst.msk [vmem:[#allocation3 + $0xf8] sm:$0xff] %vm1115_vm5, %v1082_v59  ;;  %1796 = vrot.lane.b32.xlu1 %v5880_v39, %s5578_s27  ;;  %v8226_v39 = vld [vmem:[#allocation22_spill] sm:$0xff]  ;;  %v8241_v59 = vld [vmem:[#allocation35_spill] sm:$0xff]  ;;  %vm4053_vm5 = vcmask 458112  }
 0x1e5   : > { %1447 = vrot.lane.b32.xlu0 %v8223_v44, %s5575_s29 }
 0x1e6   : > { %v1426_v25 = vpop.permute.xlu1 %1425 }
 0x1e7   : > { %v1215_v24 = vpop.permute.xlu0 %1214  ;;  %1512 = vst.msk [vmem:[#allocation3 + $0x50] sm:$0xff] %vm1501_vm7, %v1426_v25 }
 0x1e8   : > { %1310 = vst.msk [vmem:[#allocation3 + $0x8] sm:$0xff] %vm1308_vm6, %v1215_v24  ;;  %1800 = vrot.lane.b32.xlu1 %v8225_v46, %s5578_s27  ;;  %v1921_v24 = vld [vmem:[#allocation2 + $0x31] sm:$0xff]  ;;  %v1923_v46 = vld [vmem:[#allocation2 + $0x49] sm:$0xff] }
 0x1e9   : > { %1451 = vrot.lane.b32.xlu0 %v8224_v33, %s5575_s29 }
 0x1ea   : > { %v1430_v2 = vpop.permute.xlu1 %1429 }
 0x1eb   : > { %v1219_v61 = vpop.permute.xlu0 %1218  ;;  %1514 = vst.msk [vmem:[#allocation3 + $0x60] sm:$0xff] %vm1501_vm7, %v1430_v2 }
 0x1ec   : > { %1312 = vst.msk [vmem:[#allocation3 + $0x18] sm:$0xff] %vm1308_vm6, %v1219_v61  ;;  %1804 = vrot.lane.b32.xlu1 %v5916_v51, %s5578_s27  ;;  %v8229_v51 = vld [vmem:[#allocation27_spill] sm:$0xff] }
 0x1ed   : > { %1455 = vrot.lane.b32.xlu0 %v8226_v39, %s5575_s29  ;;  %v1925_v39 = vld [vmem:[#allocation2 + $0x61] sm:$0xff] }
 0x1ee   : > { %v1434_v7 = vpop.permute.xlu1 %1433 }
 0x1ef   : > { %v1223_v5 = vpop.permute.xlu0 %1222  ;;  %1516 = vst.msk [vmem:[#allocation3 + $0x70] sm:$0xff] %vm1501_vm7, %v1434_v7 }
 0x1f0   : > { %1314 = vst.msk [vmem:[#allocation3 + $0x28] sm:$0xff] %vm1308_vm6, %v1223_v5  ;;  %1808 = vrot.lane.b32.xlu1 %v8228_v45, %s5578_s27  ;;  %v8243_v5 = vld [vmem:[#allocation37_spill] sm:$0xff] }
 0x1f1   : > { %1459 = vrot.lane.b32.xlu0 %v8227_v8, %s5575_s29 }
 0x1f2   : > { %v1438_v30 = vpop.permute.xlu1 %1437 }
 0x1f3   : > { %v1227_v11 = vpop.permute.xlu0 %1226  ;;  %1518 = vst.msk [vmem:[#allocation3 + $0x80] sm:$0xff] %vm1501_vm7, %v1438_v30  ;;  %v1929_v30 = vld [vmem:[#allocation2 + $0x91] sm:$0xff] }
 0x1f4   : > { %1316 = vst.msk [vmem:[#allocation3 + $0x38] sm:$0xff] %vm1308_vm6, %v1227_v11  ;;  %1812 = vrot.lane.b32.xlu1 %v8230_v15, %s5578_s27 }
 0x1f5   : > { %1463 = vrot.lane.b32.xlu0 %v8229_v51, %s5575_s29 }
 0x1f6   : > { %v1442_v36 = vpop.permute.xlu1 %1441 }
 0x1f7   : > { %v1231_v56 = vpop.permute.xlu0 %1230  ;;  %1520 = vst.msk [vmem:[#allocation3 + $0x90] sm:$0xff] %vm1501_vm7, %v1442_v36 }
 0x1f8   : > { %1318 = vst.msk [vmem:[#allocation3 + $0x48] sm:$0xff] %vm1308_vm6, %v1231_v56  ;;  %1816 = vrot.lane.b32.xlu1 %v5970_v6, %s5578_s27 }
 0x1f9   : > { %1467 = vrot.lane.b32.xlu0 %v6525_v19, %s5575_s29 }
 0x1fa   : > { %v1446_v23 = vpop.permute.xlu1 %1445 }
 0x1fb   : > { %v6531_v42 = vpop.permute.xlu0 %455  ;;  %1522 = vst.msk [vmem:[#allocation3 + $0xa0] sm:$0xff] %vm1501_vm7, %v1446_v23  ;;  %v1933_v23 = vld [vmem:[#allocation2 + $0xc1] sm:$0xff] }
 0x1fc   : > { %1820 = vrot.lane.b32.xlu1 %v5990_v13, %s5578_s27 }
 0x1fd   : > { %1600 = vrot.lane.b32.xlu0 %v8231_v48, %s5577_s26 }
 0x1fe   : > { %v1450_v29 = vpop.permute.xlu1 %1449 }
 0x1ff   : > { %v6538_v35 = vpop.permute.xlu0 %537  ;;  %1524 = vst.msk [vmem:[#allocation3 + $0xb0] sm:$0xff] %vm1501_vm7, %v1450_v29 }
 0x200   : > { %1824 = vrot.lane.b32.xlu1 %v6016_v21, %s5578_s27  ;;  %v8234_v21 = vld [vmem:[#allocation30_spill] sm:$0xff] }
 0x201   : > { %1604 = vrot.lane.b32.xlu0 %v8232_v41, %s5577_s26  ;;  %v1935_v41 = vld [vmem:[#allocation2 + $0xd9] sm:$0xff] }
 0x202   : > { %v1454_v40 = vpop.permute.xlu1 %1453 }
 0x203   : > { %v1235_v6 = vpop.permute.xlu0 %1234  ;;  %1526 = vst.msk [vmem:[#allocation3 + $0xc0] sm:$0xff] %vm1501_vm7, %v1454_v40 }
 0x204   : > { %1320 = vst.msk [vmem:[#allocation3 + $0x58] sm:$0xff] %vm1308_vm6, %v1235_v6  ;;  %1828 = vrot.lane.b32.xlu1 %v6042_v34, %s5578_s27  ;;  %v8235_v34 = vld [vmem:[#allocation31_spill] sm:$0xff] }
 0x205   : > { %1608 = vrot.lane.b32.xlu0 %v8233_v12, %s5577_s26  ;;  %v1731_v12 = vld [vmem:[#allocation2 + $0x50] sm:$0xff] }
 0x206   : > { %v1458_v53 = vpop.permute.xlu1 %1457 }
 0x207   : > { %v1239_v13 = vpop.permute.xlu0 %1238  ;;  %1528 = vst.msk [vmem:[#allocation3 + $0xd0] sm:$0xff] %vm1501_vm7, %v1458_v53 }
 0x208   : > { %1322 = vst.msk [vmem:[#allocation3 + $0x68] sm:$0xff] %vm1308_vm6, %v1239_v13  ;;  %1832 = vrot.lane.b32.xlu1 %v6068_v58, %s5578_s27  ;;  %v8237_v58 = vld [vmem:[#allocation32_spill] sm:$0xff] }
 0x209   : > { %1612 = vrot.lane.b32.xlu0 %v8234_v21, %s5577_s26  ;;  %v1937_v13 = vld [vmem:[#allocation2 + $0xf1] sm:$0xff] }
 0x20a   : > { %v1462_v52 = vpop.permute.xlu1 %1461 }
 0x20b   : > { %v1243_v47 = vpop.permute.xlu0 %1242  ;;  %1530 = vst.msk [vmem:[#allocation3 + $0xe0] sm:$0xff] %vm1501_vm7, %v1462_v52  ;;  %v2115_v52 = vld [vmem:[#allocation2 + $0x3a] sm:$0xff] }
 0x20c   : > { %1324 = vst.msk [vmem:[#allocation3 + $0x78] sm:$0xff] %vm1308_vm6, %v1243_v47  ;;  %1836 = vrot.lane.b32.xlu1 %v8236_v54, %s5578_s27  ;;  %v1733_v47 = vld [vmem:[#allocation2 + $0x68] sm:$0xff] }
 0x20d   : > { %1616 = vrot.lane.b32.xlu0 %v8235_v34, %s5577_s26 }
 0x20e   : > { %v1466_v10 = vpop.permute.xlu1 %1465 }
 0x20f   : > { %v1247_v20 = vpop.permute.xlu0 %1246  ;;  %1532 = vst.msk [vmem:[#allocation3 + $0xf0] sm:$0xff] %vm1501_vm7, %v1466_v10  ;;  %v2117_v10 = vld [vmem:[#allocation2 + $0x52] sm:$0xff] }
 0x210   : > { %1326 = vst.msk [vmem:[#allocation3 + $0x88] sm:$0xff] %vm1308_vm6, %v1247_v20  ;;  %1840 = vrot.lane.b32.xlu1 %v6118_v43, %s5578_s27  ;;  %v8240_v43 = vld [vmem:[#allocation34_spill] sm:$0xff]  ;;  %v1735_v20 = vld [vmem:[#allocation2 + $0x80] sm:$0xff] }
 0x211   : > { %1620 = vrot.lane.b32.xlu0 %v8237_v58, %s5577_s26 }
 0x212   : > { %v1599_v37 = vpop.permute.xlu1 %1598 }
 0x213   : > { %v1251_v31 = vpop.permute.xlu0 %1250  ;;  %1695 = vst.msk [vmem:[#allocation3] sm:$0xff] %vm1694_vm8, %v1599_v37  ;;  %v1737_v37 = vld [vmem:[#allocation2 + $0x98] sm:$0xff] }
 0x214   : > { %1328 = vst.msk [vmem:[#allocation3 + $0x98] sm:$0xff] %vm1308_vm6, %v1251_v31  ;;  %1844 = vrot.lane.b32.xlu1 %v8239_v63, %s5578_s27 }
 0x215   : > { %1624 = vrot.lane.b32.xlu0 %v8238_v55, %s5577_s26  ;;  %v2119_v55 = vld [vmem:[#allocation2 + $0x6a] sm:$0xff] }
 0x216   : > { %v1603_v3 = vpop.permute.xlu1 %1602 }
 0x217   : > { %v1255_v22 = vpop.permute.xlu0 %1254  ;;  %1697 = vst.msk [vmem:[#allocation3 + $0x10] sm:$0xff] %vm1694_vm8, %v1603_v3  ;;  %v1739_v3 = vld [vmem:[#allocation2 + $0xb0] sm:$0xff] }
 0x218   : > { %1330 = vst.msk [vmem:[#allocation3 + $0xa8] sm:$0xff] %vm1308_vm6, %v1255_v22  ;;  %1848 = vrot.lane.b32.xlu1 %v6260_v27, %s5578_s27  ;;  %v8242_v27 = vld [vmem:[#allocation36_spill] sm:$0xff] }
 0x219   : > { %1628 = vrot.lane.b32.xlu0 %v8240_v43, %s5577_s26  ;;  %v2121_v43 = vld [vmem:[#allocation2 + $0x82] sm:$0xff] }
 0x21a   : > { %v1607_v14 = vpop.permute.xlu1 %1606 }
 0x21b   : > { %v1259_v16 = vpop.permute.xlu0 %1258  ;;  %1699 = vst.msk [vmem:[#allocation3 + $0x20] sm:$0xff] %vm1694_vm8, %v1607_v14  ;;  %v2123_v14 = vld [vmem:[#allocation2 + $0x9a] sm:$0xff] }
 0x21c   : > { %1332 = vst.msk [vmem:[#allocation3 + $0xb8] sm:$0xff] %vm1308_vm6, %v1259_v16  ;;  %1852 = vrot.lane.b32.xlu1 %v1758_v49, %s5578_s27 }
 0x21d   : > { %1632 = vrot.lane.b32.xlu0 %v8241_v59, %s5577_s26 }
 0x21e   : > { %v1611_v44 = vpop.permute.xlu1 %1610 }
 0x21f   : > { %v1263_v17 = vpop.permute.xlu0 %1262  ;;  %1701 = vst.msk [vmem:[#allocation3 + $0x30] sm:$0xff] %vm1694_vm8, %v1611_v44  ;;  %v1743_v44 = vld [vmem:[#allocation2 + $0xe0] sm:$0xff] }
 0x220   : > { %1334 = vst.msk [vmem:[#allocation3 + $0xc8] sm:$0xff] %vm1308_vm6, %v1263_v17  ;;  %1985 = vrot.lane.b32.xlu1 %v1921_v24, %s5579_s28  ;;  %v2125_v24 = vld [vmem:[#allocation2 + $0xb2] sm:$0xff] }
 0x221   : > { %1636 = vrot.lane.b32.xlu0 %v8242_v27, %s5577_s26 }
 0x222   : > { %v1615_v33 = vpop.permute.xlu1 %1614 }
 0x223   : > { %v1267_v25 = vpop.permute.xlu0 %1266  ;;  %1703 = vst.msk [vmem:[#allocation3 + $0x40] sm:$0xff] %vm1694_vm8, %v1615_v33  ;;  %v2127_v33 = vld [vmem:[#allocation2 + $0xca] sm:$0xff] }
 0x224   : > { %1336 = vst.msk [vmem:[#allocation3 + $0xd8] sm:$0xff] %vm1308_vm6, %v1267_v25  ;;  %1989 = vrot.lane.b32.xlu1 %v1923_v46, %s5579_s28 }
 0x225   : > { %1640 = vrot.lane.b32.xlu0 %v6272_v57, %s5577_s26  ;;  %v1927_v57 = vld [vmem:[#allocation2 + $0x79] sm:$0xff] }
 0x226   : > { %v1619_v2 = vpop.permute.xlu1 %1618 }
 0x227   : > { %v1271_v61 = vpop.permute.xlu0 %1270  ;;  %1705 = vst.msk [vmem:[#allocation3 + $0x50] sm:$0xff] %vm1694_vm8, %v1619_v2  ;;  %v1747_v2 = vld [vmem:[#allocation2 + $0x110] sm:$0xff] }
 0x228   : > { %1338 = vst.msk [vmem:[#allocation3 + $0xe8] sm:$0xff] %vm1308_vm6, %v1271_v61  ;;  %1993 = vrot.lane.b32.xlu1 %v1925_v39, %s5579_s28  ;;  %v2129_v39 = vld [vmem:[#allocation2 + $0xe2] sm:$0xff] }
 0x229   : > { %1644 = vrot.lane.b32.xlu0 %v8243_v5, %s5577_s26 }
 0x22a   : > { %v1623_v8 = vpop.permute.xlu1 %1622 }
 0x22b   : > { %v1275_v7 = vpop.permute.xlu0 %1274  ;;  %1707 = vst.msk [vmem:[#allocation3 + $0x60] sm:$0xff] %vm1694_vm8, %v1623_v8  ;;  %v1749_v8 = vld [vmem:[#allocation2 + $0x128] sm:$0xff] }
 0x22c   : > { %1340 = vst.msk [vmem:[#allocation3 + $0xf8] sm:$0xff] %vm1308_vm6, %v1275_v7  ;;  %1997 = vrot.lane.b32.xlu1 %v1927_v57, %s5579_s28  ;;  %v2130_v57 = vld [vmem:[#allocation2 + $0xf2] sm:$0xff]  ;;  %vm4246_vm6 = vcmask 523712  }
 0x22d   : > { %1648 = vrot.lane.b32.xlu0 %v6289_v26, %s5577_s26  ;;  %v1931_v26 = vld [vmem:[#allocation2 + $0xa9] sm:$0xff] }
 0x22e   : > { %v1627_v11 = vpop.permute.xlu1 %1626 }
 0x22f   : > { %v1408_v45 = vpop.permute.xlu0 %1407  ;;  %1709 = vst.msk [vmem:[#allocation3 + $0x70] sm:$0xff] %vm1694_vm8, %v1627_v11 }
 0x230   : > { %1503 = vst.msk [vmem:[#allocation3 + $0x8] sm:$0xff] %vm1501_vm7, %v1408_v45  ;;  %2001 = vrot.lane.b32.xlu1 %v1929_v30, %s5579_s28  ;;  %v1939_v30 = vld [vmem:[#allocation2 + $0x109] sm:$0xff] }
 0x231   : > { %1652 = vrot.lane.b32.xlu0 %v6297_v32, %s5577_s26  ;;  %v6618_v32 = vld [vmem:[#allocation2 + $0x18a] sm:$0xff] }
 0x232   : > { %v1631_v15 = vpop.permute.xlu1 %1630 }
 0x233   : > { %v1412_v51 = vpop.permute.xlu0 %1411  ;;  %1711 = vst.msk [vmem:[#allocation3 + $0x80] sm:$0xff] %vm1694_vm8, %v1631_v15 }
 0x234   : > { %1505 = vst.msk [vmem:[#allocation3 + $0x18] sm:$0xff] %vm1501_vm7, %v1412_v51  ;;  %2005 = vrot.lane.b32.xlu1 %v1931_v26, %s5579_s28  ;;  %v2132_v26 = vld [vmem:[#allocation2 + $0x10a] sm:$0xff] }
 0x235   : > { %1656 = vrot.lane.b32.xlu0 %v6305_v38, %s5577_s26  ;;  %v1729_v38 = vld [vmem:[#allocation2 + $0x38] sm:$0xff] }
 0x236   : > { %v1635_v36 = vpop.permute.xlu1 %1634 }
 0x237   : > { %v1416_v56 = vpop.permute.xlu0 %1415  ;;  %1713 = vst.msk [vmem:[#allocation3 + $0x90] sm:$0xff] %vm1694_vm8, %v1635_v36 }
 0x238   : > { %1507 = vst.msk [vmem:[#allocation3 + $0x28] sm:$0xff] %vm1501_vm7, %v1416_v56  ;;  %2009 = vrot.lane.b32.xlu1 %v1933_v23, %s5579_s28 }
 0x239   : > { %1660 = vrot.lane.b32.xlu0 %v6618_v32, %s5577_s26  ;;  %s5168_s26 = sshll.u32 %s5662_s17, 8 }
 0x23a   : > { %v1639_v29 = vpop.permute.xlu1 %1638 }
 0x23b   : > { %v1420_v48 = vpop.permute.xlu0 %1419  ;;  %1715 = vst.msk [vmem:[#allocation3 + $0xa0] sm:$0xff] %vm1694_vm8, %v1639_v29  ;;  %v1759_v29 = vld [vmem:[#allocation2 + $0x1a0] sm:$0xff] }
 0x23c   : > { %1509 = vst.msk [vmem:[#allocation3 + $0x38] sm:$0xff] %vm1501_vm7, %v1420_v48  ;;  %2013 = vrot.lane.b32.xlu1 %v1935_v41, %s5579_s28 }
 0x23d   : > { %1794 = vrot.lane.b32.xlu0 %v1729_v38, %s5578_s27 }
 0x23e   : > { %v1643_v40 = vpop.permute.xlu1 %1642 }
 0x23f   : > { %v1424_v6 = vpop.permute.xlu0 %1423  ;;  %1717 = vst.msk [vmem:[#allocation3 + $0xb0] sm:$0xff] %vm1694_vm8, %v1643_v40 }
 0x240   : > { %1511 = vst.msk [vmem:[#allocation3 + $0x48] sm:$0xff] %vm1501_vm7, %v1424_v6  ;;  %2017 = vrot.lane.b32.xlu1 %v1937_v13, %s5579_s28 }
 0x241   : > { %1798 = vrot.lane.b32.xlu0 %v1731_v12, %s5578_s27  ;;  %v2136_v12 = vld [vmem:[#allocation2 + $0x13a] sm:$0xff] }
 0x242   : > { %v1647_v21 = vpop.permute.xlu1 %1646 }
 0x243   : > { %v1428_v53 = vpop.permute.xlu0 %1427  ;;  %1719 = vst.msk [vmem:[#allocation3 + $0xc0] sm:$0xff] %vm1694_vm8, %v1647_v21  ;;  %v1924_v21 = vld [vmem:[#allocation2 + $0x51] sm:$0xff] }
 0x244   : > { %1513 = vst.msk [vmem:[#allocation3 + $0x58] sm:$0xff] %vm1501_vm7, %v1428_v53  ;;  %2180 = vrot.lane.b32.xlu1 %v2115_v52, %s5580_s0 }
 0x245   : > { %1802 = vrot.lane.b32.xlu0 %v1733_v47, %s5578_s27  ;;  %v1945_v47 = vld [vmem:[#allocation2 + $0x151] sm:$0xff] }
 0x246   : > { %v1651_v54 = vpop.permute.xlu1 %1650 }
 0x247   : > { %v1432_v34 = vpop.permute.xlu0 %1431  ;;  %1721 = vst.msk [vmem:[#allocation3 + $0xd0] sm:$0xff] %vm1694_vm8, %v1651_v54  ;;  %v1926_v54 = vld [vmem:[#allocation2 + $0x69] sm:$0xff] }
 0x248   : > { %1515 = vst.msk [vmem:[#allocation3 + $0x68] sm:$0xff] %vm1501_vm7, %v1432_v34  ;;  %2184 = vrot.lane.b32.xlu1 %v2117_v10, %s5580_s0 }
 0x249   : > { %1806 = vrot.lane.b32.xlu0 %v1735_v20, %s5578_s27  ;;  %v2138_v20 = vld [vmem:[#allocation2 + $0x152] sm:$0xff] }
 0x24a   : > { %v1655_v31 = vpop.permute.xlu1 %1654 }
 0x24b   : > { %v1436_v58 = vpop.permute.xlu0 %1435  ;;  %1723 = vst.msk [vmem:[#allocation3 + $0xe0] sm:$0xff] %vm1694_vm8, %v1655_v31  ;;  %v1928_v31 = vld [vmem:[#allocation2 + $0x81] sm:$0xff] }
 0x24c   : > { %1517 = vst.msk [vmem:[#allocation3 + $0x78] sm:$0xff] %vm1501_vm7, %v1436_v58  ;;  %2188 = vrot.lane.b32.xlu1 %v2119_v55, %s5580_s0 }
 0x24d   : > { %1810 = vrot.lane.b32.xlu0 %v1737_v37, %s5578_s27  ;;  %v1947_v37 = vld [vmem:[#allocation2 + $0x169] sm:$0xff] }
 0x24e   : > { %v1659_v22 = vpop.permute.xlu1 %1658 }
 0x24f   : > { %v1440_v63 = vpop.permute.xlu0 %1439  ;;  %1725 = vst.msk [vmem:[#allocation3 + $0xf0] sm:$0xff] %vm1694_vm8, %v1659_v22  ;;  %v1930_v22 = vld [vmem:[#allocation2 + $0x99] sm:$0xff] }
 0x250   : > { %1519 = vst.msk [vmem:[#allocation3 + $0x88] sm:$0xff] %vm1501_vm7, %v1440_v63  ;;  %2192 = vrot.lane.b32.xlu1 %v2121_v43, %s5580_s0  ;;  %v2339_v43 = vld [vmem:[%s8139_s2] sm:$0xff] }
 0x251   : > { %1814 = vrot.lane.b32.xlu0 %v1739_v3, %s5578_s27  ;;  %v2140_v3 = vld [vmem:[#allocation2 + $0x16a] sm:$0xff] }
 0x252   : > { %v1793_v16 = vpop.permute.xlu1 %1792 }
 0x253   : > { %v1444_v49 = vpop.permute.xlu0 %1443  ;;  %1889 = vst.msk [vmem:[#allocation3] sm:$0xff] %vm1888_vm9, %v1793_v16 }
 0x254   : > { %1521 = vst.msk [vmem:[#allocation3 + $0x98] sm:$0xff] %vm1501_vm7, %v1444_v49  ;;  %2196 = vrot.lane.b32.xlu1 %v2123_v14, %s5580_s0  ;;  %v2340_v49 = vld [vmem:[%s8139_s2 + $0x8] sm:$0xff] }
 0x255   : > { %1818 = vrot.lane.b32.xlu0 %v5982_v9, %s5578_s27  ;;  %v1745_v9 = vld [vmem:[#allocation2 + $0xf8] sm:$0xff]  ;;  %v5415_v16 = vpack.c.bf16 %v2340_v49, %v2339_v43  ;;  %v2135_v49 = vld [vmem:[#allocation2 + $0x12a] sm:$0xff] }
 0x256   : > { %v1797_v17 = vpop.permute.xlu1 %1796 }
 0x257   : > { %v1448_v59 = vpop.permute.xlu0 %1447  ;;  %1891 = vst.msk [vmem:[#allocation3 + $0x10] sm:$0xff] %vm1888_vm9, %v1797_v17  ;;  %v1932_v17 = vld [vmem:[#allocation2 + $0xb1] sm:$0xff]  ;;  %5416 = vmatprep.subr.bf16.mxu0 %v5415_v16 }
 0x258   : > { %1523 = vst.msk [vmem:[#allocation3 + $0xa8] sm:$0xff] %vm1501_vm7, %v1448_v59  ;;  %2200 = vrot.lane.b32.xlu1 %v2125_v24, %s5580_s0  ;;  %v2342_v24 = vld [vmem:[%s8139_s2 + $0x18] sm:$0xff]  ;;  %5418 = vmatpush3.bf16.msra.mxu0 %v5415_v16 }
 0x259   : > { %1822 = vrot.lane.b32.xlu0 %v1743_v44, %s5578_s27  ;;  %v2341_v44 = vld [vmem:[%s8139_s2 + $0x10] sm:$0xff] }
 0x25a   : > { %v1801_v25 = vpop.permute.xlu1 %1800 }
 0x25b   : > { %v1452_v27 = vpop.permute.xlu0 %1451  ;;  %1893 = vst.msk [vmem:[#allocation3 + $0x20] sm:$0xff] %vm1888_vm9, %v1801_v25 }
 0x25c   : > { %1525 = vst.msk [vmem:[#allocation3 + $0xb8] sm:$0xff] %vm1501_vm7, %v1452_v27  ;;  %2204 = vrot.lane.b32.xlu1 %v2127_v33, %s5580_s0  ;;  %v5419_v27 = vpack.c.bf16 %v2342_v24, %v2341_v44  ;;  %v1934_v33 = vld [vmem:[#allocation2 + $0xc9] sm:$0xff] }
 0x25d   : > { %1826 = vrot.lane.b32.xlu0 %v1745_v9, %s5578_s27  ;;  %v2137_v24 = vld [vmem:[#allocation2 + $0x142] sm:$0xff] }
 0x25e   : > { %v1805_v61 = vpop.permute.xlu1 %1804  ;;  %5420 = vmatprep.subr.bf16.mxu0 %v5419_v27 }
 0x25f   : > { %v1456_v46 = vpop.permute.xlu0 %1455  ;;  %1895 = vst.msk [vmem:[#allocation3 + $0x30] sm:$0xff] %vm1888_vm9, %v1805_v61  ;;  %5422 = vmatpush3.bf16.msra.mxu0 %v5419_v27 }
 0x260   : > { %1527 = vst.msk [vmem:[#allocation3 + $0xc8] sm:$0xff] %vm1501_vm7, %v1456_v46  ;;  %2208 = vrot.lane.b32.xlu1 %v2129_v39, %s5580_s0  ;;  %v2343_v46 = vld [vmem:[%s8139_s2 + $0x20] sm:$0xf] }
 0x261   : > { %1830 = vrot.lane.b32.xlu0 %v1747_v2, %s5578_s27  ;;  %5287 = vmatprep.subr.msk.mxu0 %vm2441_vm11, %v2343_v46  ;;  %v1936_v39 = vld [vmem:[#allocation2 + $0xe1] sm:$0xff] }
 0x262   : > { %v1809_v7 = vpop.permute.xlu1 %1808 }
 0x263   : > { %v1460_v5 = vpop.permute.xlu0 %1459  ;;  %1897 = vst.msk [vmem:[#allocation3 + $0x40] sm:$0xff] %vm1888_vm9, %v1809_v7  ;;  %5288 = vmatpush3.msk.msra.mxu0 %vm2441_vm11, %v2343_v46 }
 0x264   : > { %1529 = vst.msk [vmem:[#allocation3 + $0xd8] sm:$0xff] %vm1501_vm7, %v1460_v5  ;;  %2210 = vrot.lane.b32.xlu1 %v2130_v57, %s5580_s0  ;;  %v2144_v5 = vld [vmem:[#allocation2 + $0x19a] sm:$0xff] }
 0x265   : > { %1834 = vrot.lane.b32.xlu0 %v1749_v8, %s5578_s27 }
 0x266   : > { %v1813_v11 = vpop.permute.xlu1 %1812 }
 0x267   : > { %v1464_v45 = vpop.permute.xlu0 %1463  ;;  %1899 = vst.msk [vmem:[#allocation3 + $0x50] sm:$0xff] %vm1888_vm9, %v1813_v11  ;;  %v2116_v11 = vld [vmem:[#allocation2 + $0x4a] sm:$0xff] }
 0x268   : > { %1531 = vst.msk [vmem:[#allocation3 + $0xe8] sm:$0xff] %vm1501_vm7, %v1464_v45  ;;  %2021 = vrot.lane.b32.xlu1 %v1939_v30, %s5579_s28 }
 0x269   : > { %1838 = vrot.lane.b32.xlu0 %v6112_v18, %s5578_s27  ;;  %v1941_v18 = vld [vmem:[#allocation2 + $0x121] sm:$0xff] }
 0x26a   : > { %v1817_v15 = vpop.permute.xlu1 %1816 }
 0x26b   : > { %v1468_v51 = vpop.permute.xlu0 %1467  ;;  %1901 = vst.msk [vmem:[#allocation3 + $0x60] sm:$0xff] %vm1888_vm9, %v1817_v15  ;;  %v2118_v15 = vld [vmem:[#allocation2 + $0x62] sm:$0xff] }
 0x26c   : > { %1533 = vst.msk [vmem:[#allocation3 + $0xf8] sm:$0xff] %vm1501_vm7, %v1468_v51  ;;  %2214 = vrot.lane.b32.xlu1 %v2132_v26, %s5580_s0  ;;  %vm4439_vm7 = vcmask 589312  }
 0x26d   : > { %1842 = vrot.lane.b32.xlu0 %v6134_v4, %s5578_s27  ;;  %v2134_v4 = vld [vmem:[#allocation2 + $0x122] sm:$0xff] }
 0x26e   : > { %v1821_v36 = vpop.permute.xlu1 %1820 }
 0x26f   : > { %v1601_v56 = vpop.permute.xlu0 %1600  ;;  %1903 = vst.msk [vmem:[#allocation3 + $0x70] sm:$0xff] %vm1888_vm9, %v1821_v36  ;;  %v2120_v36 = vld [vmem:[#allocation2 + $0x7a] sm:$0xff] }
 0x270   : > { %1696 = vst.msk [vmem:[#allocation3 + $0x8] sm:$0xff] %vm1694_vm8, %v1601_v56  ;;  %2025 = vrot.lane.b32.xlu1 %v1941_v18, %s5579_s28 }
 0x271   : > { %1846 = vrot.lane.b32.xlu0 %v6154_v1, %s5578_s27  ;;  %v1943_v1 = vld [vmem:[#allocation2 + $0x139] sm:$0xff] }
 0x272   : > { %v1825_v48 = vpop.permute.xlu1 %1824 }
 0x273   : > { %v1605_v23 = vpop.permute.xlu0 %1604  ;;  %1905 = vst.msk [vmem:[#allocation3 + $0x80] sm:$0xff] %vm1888_vm9, %v1825_v48  ;;  %v2122_v48 = vld [vmem:[#allocation2 + $0x92] sm:$0xff] }
 0x274   : > { %1698 = vst.msk [vmem:[#allocation3 + $0x18] sm:$0xff] %vm1694_vm8, %v1605_v23  ;;  %2218 = vrot.lane.b32.xlu1 %v2134_v4, %s5580_s0 }
 0x275   : > { %1850 = vrot.lane.b32.xlu0 %v6426_v50, %s5578_s27  ;;  %v1922_v50 = vld [vmem:[#allocation2 + $0x39] sm:$0xff] }
 0x276   : > { %v1829_v41 = vpop.permute.xlu1 %1828 }
 0x277   : > { %v1609_v38 = vpop.permute.xlu0 %1608  ;;  %1907 = vst.msk [vmem:[#allocation3 + $0x90] sm:$0xff] %vm1888_vm9, %v1829_v41 }
 0x278   : > { %1700 = vst.msk [vmem:[#allocation3 + $0x28] sm:$0xff] %vm1694_vm8, %v1609_v38  ;;  %2029 = vrot.lane.b32.xlu1 %v1943_v1, %s5579_s28  ;;  %v2124_v38 = vld [vmem:[#allocation2 + $0xaa] sm:$0xff] }
 0x279   : > { %1854 = vrot.lane.b32.xlu0 %v1759_v29, %s5578_s27 }
 0x27a   : > { %v1833_v40 = vpop.permute.xlu1 %1832 }
 0x27b   : > { %v1613_v6 = vpop.permute.xlu0 %1612  ;;  %1909 = vst.msk [vmem:[#allocation3 + $0xa0] sm:$0xff] %vm1888_vm9, %v1833_v40 }
 0x27c   : > { %1702 = vst.msk [vmem:[#allocation3 + $0x38] sm:$0xff] %vm1694_vm8, %v1613_v6  ;;  %2222 = vrot.lane.b32.xlu1 %v2136_v12, %s5580_s0  ;;  %v2126_v6 = vld [vmem:[#allocation2 + $0xc2] sm:$0xff]  ;;  %v2128_v12 = vld [vmem:[#allocation2 + $0xda] sm:$0xff] }
 0x27d   : > { %1987 = vrot.lane.b32.xlu0 %v1922_v50, %s5579_s28 }
 0x27e   : > { %v1837_v53 = vpop.permute.xlu1 %1836 }
 0x27f   : > { %v1617_v13 = vpop.permute.xlu0 %1616  ;;  %1911 = vst.msk [vmem:[#allocation3 + $0xb0] sm:$0xff] %vm1888_vm9, %v1837_v53 }
 0x280   : > { %1704 = vst.msk [vmem:[#allocation3 + $0x48] sm:$0xff] %vm1694_vm8, %v1617_v13  ;;  %2033 = vrot.lane.b32.xlu1 %v1945_v47, %s5579_s28 }
 0x281   : > { %1991 = vrot.lane.b32.xlu0 %v1924_v21, %s5579_s28  ;;  %v1938_v21 = vld [vmem:[#allocation2 + $0xf9] sm:$0xff] }
 0x282   : > { %v1841_v34 = vpop.permute.xlu1 %1840 }
 0x283   : > { %v1621_v52 = vpop.permute.xlu0 %1620  ;;  %1913 = vst.msk [vmem:[#allocation3 + $0xc0] sm:$0xff] %vm1888_vm9, %v1841_v34  ;;  %v2131_v34 = vld [vmem:[#allocation2 + $0xfa] sm:$0xff] }
 0x284   : > { %1706 = vst.msk [vmem:[#allocation3 + $0x58] sm:$0xff] %vm1694_vm8, %v1621_v52  ;;  %2226 = vrot.lane.b32.xlu1 %v2138_v20, %s5580_s0 }
 0x285   : > { %1995 = vrot.lane.b32.xlu0 %v1926_v54, %s5579_s28 }
 0x286   : > { %v1845_v58 = vpop.permute.xlu1 %1844 }
 0x287   : > { %v1625_v10 = vpop.permute.xlu0 %1624  ;;  %1915 = vst.msk [vmem:[#allocation3 + $0xd0] sm:$0xff] %vm1888_vm9, %v1845_v58 }
 0x288   : > { %1708 = vst.msk [vmem:[#allocation3 + $0x68] sm:$0xff] %vm1694_vm8, %v1625_v10  ;;  %2037 = vrot.lane.b32.xlu1 %v1947_v37, %s5579_s28  ;;  %v1940_v10 = vld [vmem:[#allocation2 + $0x111] sm:$0xff] }
 0x289   : > { %1999 = vrot.lane.b32.xlu0 %v1928_v31, %s5579_s28  ;;  %v2133_v37 = vld [vmem:[#allocation2 + $0x112] sm:$0xff] }
 0x28a   : > { %v1849_v63 = vpop.permute.xlu1 %1848 }
 0x28b   : > { %v1629_v55 = vpop.permute.xlu0 %1628  ;;  %1917 = vst.msk [vmem:[#allocation3 + $0xe0] sm:$0xff] %vm1888_vm9, %v1849_v63 }
 0x28c   : > { %1710 = vst.msk [vmem:[#allocation3 + $0x78] sm:$0xff] %vm1694_vm8, %v1629_v55  ;;  %2230 = vrot.lane.b32.xlu1 %v2140_v3, %s5580_s0 }
 0x28d   : > { %2003 = vrot.lane.b32.xlu0 %v1930_v22, %s5579_s28  ;;  %v1942_v22 = vld [vmem:[#allocation2 + $0x129] sm:$0xff] }
 0x28e   : > { %v1853_v59 = vpop.permute.xlu1 %1852 }
 0x28f   : > { %v1633_v14 = vpop.permute.xlu0 %1632  ;;  %1919 = vst.msk [vmem:[#allocation3 + $0xf0] sm:$0xff] %vm1888_vm9, %v1853_v59  ;;  %v1944_v59 = vld [vmem:[#allocation2 + $0x141] sm:$0xff] }
 0x290   : > { %1712 = vst.msk [vmem:[#allocation3 + $0x88] sm:$0xff] %vm1694_vm8, %v1633_v14  ;;  %2041 = vrot.lane.b32.xlu1 %v6378_v60, %s5579_s28  ;;  %v1951_v60 = vld [vmem:[#allocation2 + $0x199] sm:$0xff] }
 0x291   : > { %2007 = vrot.lane.b32.xlu0 %v1932_v17, %s5579_s28 }
 0x292   : > { %v1986_v9 = vpop.permute.xlu1 %1985 }
 0x293   : > { %v1637_v25 = vpop.permute.xlu0 %1636  ;;  %2082 = vst.msk [vmem:[#allocation3] sm:$0xff] %vm2081_vm10, %v1986_v9  ;;  %v1946_v9 = vld [vmem:[#allocation2 + $0x159] sm:$0xff] }
 0x294   : > { %1714 = vst.msk [vmem:[#allocation3 + $0x98] sm:$0xff] %vm1694_vm8, %v1637_v25  ;;  %2234 = vrot.lane.b32.xlu1 %v6481_v28, %s5580_s0  ;;  %v2114_v28 = vld [vmem:[#allocation2 + $0x32] sm:$0xff] }
 0x295   : > { %2011 = vrot.lane.b32.xlu0 %v1934_v33, %s5579_s28 }
 0x296   : > { %v1990_v2 = vpop.permute.xlu1 %1989 }
 0x297   : > { %v1641_v61 = vpop.permute.xlu0 %1640  ;;  %2084 = vst.msk [vmem:[#allocation3 + $0x10] sm:$0xff] %vm2081_vm10, %v1990_v2 }
 0x298   : > { %1716 = vst.msk [vmem:[#allocation3 + $0xa8] sm:$0xff] %vm1694_vm8, %v1641_v61  ;;  %2045 = vrot.lane.b32.xlu1 %v1951_v60, %s5579_s28  ;;  %v2139_v60 = vld [vmem:[#allocation2 + $0x15a] sm:$0xff] }
 0x299   : > { %2015 = vrot.lane.b32.xlu0 %v1936_v39, %s5579_s28  ;;  %v1948_v39 = vld [vmem:[#allocation2 + $0x171] sm:$0xff] }
 0x29a   : > { %v1994_v8 = vpop.permute.xlu1 %1993 }
 0x29b   : > { %v1645_v7 = vpop.permute.xlu0 %1644  ;;  %2086 = vst.msk [vmem:[#allocation3 + $0x20] sm:$0xff] %vm2081_vm10, %v1994_v8  ;;  %v2141_v8 = vld [vmem:[#allocation2 + $0x172] sm:$0xff] }
 0x29c   : > { %1718 = vst.msk [vmem:[#allocation3 + $0xb8] sm:$0xff] %vm1694_vm8, %v1645_v7  ;;  %2238 = vrot.lane.b32.xlu1 %v2144_v5, %s5580_s0 }
 0x29d   : > { %2178 = vrot.lane.b32.xlu0 %v2114_v28, %s5580_s0 }
 0x29e   : > { %v1998_v45 = vpop.permute.xlu1 %1997 }
 0x29f   : > { %v1649_v57 = vpop.permute.xlu0 %1648  ;;  %2088 = vst.msk [vmem:[#allocation3 + $0x30] sm:$0xff] %vm2081_vm10, %v1998_v45 }
 0x2a0   : > { %1720 = vst.msk [vmem:[#allocation3 + $0xc8] sm:$0xff] %vm1694_vm8, %v1649_v57 }
 0x2a1   : > { %2182 = vrot.lane.b32.xlu0 %v2116_v11, %s5580_s0 }
 0x2a2   : > { %v2002_v51 = vpop.permute.xlu1 %2001 }
 0x2a3   : > { %v1653_v30 = vpop.permute.xlu0 %1652  ;;  %2090 = vst.msk [vmem:[#allocation3 + $0x40] sm:$0xff] %vm2081_vm10, %v2002_v51 }
 0x2a4   : > { %1722 = vst.msk [vmem:[#allocation3 + $0xd8] sm:$0xff] %vm1694_vm8, %v1653_v30  ;;  %v1952_v30 = vld [vmem:[#allocation2 + $0x1a1] sm:$0xff] }
 0x2a5   : > { %2186 = vrot.lane.b32.xlu0 %v2118_v15, %s5580_s0 }
 0x2a6   : > { %v2006_v56 = vpop.permute.xlu1 %2005 }
 0x2a7   : > { %v1657_v26 = vpop.permute.xlu0 %1656  ;;  %2092 = vst.msk [vmem:[#allocation3 + $0x50] sm:$0xff] %vm2081_vm10, %v2006_v56 }
 0x2a8   : > { %1724 = vst.msk [vmem:[#allocation3 + $0xe8] sm:$0xff] %vm1694_vm8, %v1657_v26 }
 0x2a9   : > { %2190 = vrot.lane.b32.xlu0 %v2120_v36, %s5580_s0 }
 0x2aa   : > { %v2010_v23 = vpop.permute.xlu1 %2009 }
 0x2ab   : > { %v1661_v18 = vpop.permute.xlu0 %1660  ;;  %2094 = vst.msk [vmem:[#allocation3 + $0x60] sm:$0xff] %vm2081_vm10, %v2010_v23 }
 0x2ac   : > { %1726 = vst.msk [vmem:[#allocation3 + $0xf8] sm:$0xff] %vm1694_vm8, %v1661_v18  ;;  %vm4513_vm8 = vcmask 588800  }
 0x2ad   : > { %2194 = vrot.lane.b32.xlu0 %v2122_v48, %s5580_s0 }
 0x2ae   : > { %v2014_v29 = vpop.permute.xlu1 %2013 }
 0x2af   : > { %v1795_v4 = vpop.permute.xlu0 %1794  ;;  %2096 = vst.msk [vmem:[#allocation3 + $0x70] sm:$0xff] %vm2081_vm10, %v2014_v29 }
 0x2b0   : > { %1890 = vst.msk [vmem:[#allocation3 + $0x8] sm:$0xff] %vm1888_vm9, %v1795_v4 }
 0x2b1   : > { %2198 = vrot.lane.b32.xlu0 %v2124_v38, %s5580_s0 }
 0x2b2   : > { %v2018_v1 = vpop.permute.xlu1 %2017 }
 0x2b3   : > { %v1799_v41 = vpop.permute.xlu0 %1798  ;;  %2098 = vst.msk [vmem:[#allocation3 + $0x80] sm:$0xff] %vm2081_vm10, %v2018_v1 }
 0x2b4   : > { %1892 = vst.msk [vmem:[#allocation3 + $0x18] sm:$0xff] %vm1888_vm9, %v1799_v41 }
 0x2b5   : > { %2202 = vrot.lane.b32.xlu0 %v2126_v6, %s5580_s0 }
 0x2b6   : > { %v6763_v50 = vpop.permute.xlu1 %2180 }
 0x2b7   : > { %v1803_v40 = vpop.permute.xlu0 %1802 }
 0x2b8   : > { %1894 = vst.msk [vmem:[#allocation3 + $0x28] sm:$0xff] %vm1888_vm9, %v1803_v40 }
 0x2b9   : > { %2206 = vrot.lane.b32.xlu0 %v2128_v12, %s5580_s0 }
 0x2ba   : > { %v6767_v53 = vpop.permute.xlu1 %2184 }
 0x2bb   : > { %v1807_v13 = vpop.permute.xlu0 %1806 }
 0x2bc   : > { %1896 = vst.msk [vmem:[#allocation3 + $0x38] sm:$0xff] %vm1888_vm9, %v1807_v13 }
 0x2bd   : > { %2019 = vrot.lane.b32.xlu0 %v1938_v21, %s5579_s28 }
 0x2be   : > { %v6771_v52 = vpop.permute.xlu1 %2188 }
 0x2bf   : > { %v1811_v47 = vpop.permute.xlu0 %1810 }
 0x2c0   : > { %1898 = vst.msk [vmem:[#allocation3 + $0x48] sm:$0xff] %vm1888_vm9, %v1811_v47 }
 0x2c1   : > { %2212 = vrot.lane.b32.xlu0 %v2131_v34, %s5580_s0 }
 0x2c2   : > { %v6775_v20 = vpop.permute.xlu1 %2192 }
 0x2c3   : > { %v1815_v54 = vpop.permute.xlu0 %1814 }
 0x2c4   : > { %1900 = vst.msk [vmem:[#allocation3 + $0x58] sm:$0xff] %vm1888_vm9, %v1815_v54 }
 0x2c5   : > { %2023 = vrot.lane.b32.xlu0 %v1940_v10, %s5579_s28 }
 0x2c6   : > { %v6779_v31 = vpop.permute.xlu1 %2196 }
 0x2c7   : > { %v1819_v58 = vpop.permute.xlu0 %1818 }
 0x2c8   : > { %1902 = vst.msk [vmem:[#allocation3 + $0x68] sm:$0xff] %vm1888_vm9, %v1819_v58 }
 0x2c9   : > { %2216 = vrot.lane.b32.xlu0 %v2133_v37, %s5580_s0 }
 0x2ca   : > { %v6783_v63 = vpop.permute.xlu1 %2200 }
 0x2cb   : > { %v1823_v55 = vpop.permute.xlu0 %1822 }
 0x2cc   : > { %1904 = vst.msk [vmem:[#allocation3 + $0x78] sm:$0xff] %vm1888_vm9, %v1823_v55 }
 0x2cd   : > { %2027 = vrot.lane.b32.xlu0 %v1942_v22, %s5579_s28 }
 0x2ce   : > { %v6787_v43 = vpop.permute.xlu1 %2204 }
 0x2cf   : > { %v1827_v3 = vpop.permute.xlu0 %1826 }
 0x2d0   : > { %1906 = vst.msk [vmem:[#allocation3 + $0x88] sm:$0xff] %vm1888_vm9, %v1827_v3 }
 0x2d1   : > { %2220 = vrot.lane.b32.xlu0 %v2135_v49, %s5580_s0 }
 0x2d2   : > { %v6791_v14 = vpop.permute.xlu1 %2208 }
 0x2d3   : > { %v1831_v16 = vpop.permute.xlu0 %1830 }
 0x2d4   : > { %1908 = vst.msk [vmem:[#allocation3 + $0x98] sm:$0xff] %vm1888_vm9, %v1831_v16 }
 0x2d5   : > { %2031 = vrot.lane.b32.xlu0 %v1944_v59, %s5579_s28 }
 0x2d6   : > { %v2211_v44 = vpop.permute.xlu1 %2210 }
 0x2d7   : > { %v1835_v17 = vpop.permute.xlu0 %1834  ;;  %2291 = vst.msk [vmem:[#allocation3 + $0x80] sm:$0xff] %vm2274_vm12, %v2211_v44 }
 0x2d8   : > { %1910 = vst.msk [vmem:[#allocation3 + $0xa8] sm:$0xff] %vm1888_vm9, %v1835_v17 }
 0x2d9   : > { %2224 = vrot.lane.b32.xlu0 %v2137_v24, %s5580_s0 }
 0x2da   : > { %v2022_v25 = vpop.permute.xlu1 %2021 }
 0x2db   : > { %v1839_v27 = vpop.permute.xlu0 %1838  ;;  %2100 = vst.msk [vmem:[#allocation3 + $0x90] sm:$0xff] %vm2081_vm10, %v2022_v25 }
 0x2dc   : > { %1912 = vst.msk [vmem:[#allocation3 + $0xb8] sm:$0xff] %vm1888_vm9, %v1839_v27 }
 0x2dd   : > { %2035 = vrot.lane.b32.xlu0 %v1946_v9, %s5579_s28 }
 0x2de   : > { %v2215_v46 = vpop.permute.xlu1 %2214  ;;  %v2323_v24 = vld [vmem:[#allocation3 + $0x80] sm:$0xff] }
 0x2df   : > { %v1843_v33 = vpop.permute.xlu0 %1842  ;;  %2293 = vst.msk [vmem:[#allocation3 + $0x90] sm:$0xff] %vm2274_vm12, %v2215_v46 }
 0x2e0   : > { %1914 = vst.msk [vmem:[#allocation3 + $0xc8] sm:$0xff] %vm1888_vm9, %v1843_v33 }
 0x2e1   : > { %2228 = vrot.lane.b32.xlu0 %v2139_v60, %s5580_s0 }
 0x2e2   : > { %v2026_v2 = vpop.permute.xlu1 %2025 }
 0x2e3   : > { %v1847_v61 = vpop.permute.xlu0 %1846  ;;  %2102 = vst.msk [vmem:[#allocation3 + $0xa0] sm:$0xff] %vm2081_vm10, %v2026_v2 }
 0x2e4   : > { %1916 = vst.msk [vmem:[#allocation3 + $0xd8] sm:$0xff] %vm1888_vm9, %v1847_v61 }
 0x2e5   : > { %2039 = vrot.lane.b32.xlu0 %v1948_v39, %s5579_s28 }
 0x2e6   : > { %v2219_v7 = vpop.permute.xlu1 %2218  ;;  %v2325_v33 = vld [vmem:[#allocation3 + $0x90] sm:$0xff] }
 0x2e7   : > { %v1851_v5 = vpop.permute.xlu0 %1850  ;;  %2295 = vst.msk [vmem:[#allocation3 + $0xa0] sm:$0xff] %vm2274_vm12, %v2219_v7 }
 0x2e8   : > { %1918 = vst.msk [vmem:[#allocation3 + $0xe8] sm:$0xff] %vm1888_vm9, %v1851_v5 }
 0x2e9   : > { %2232 = vrot.lane.b32.xlu0 %v2141_v8, %s5580_s0 }
 0x2ea   : > { %v2030_v57 = vpop.permute.xlu1 %2029 }
 0x2eb   : > { %v1855_v28 = vpop.permute.xlu0 %1854  ;;  %2104 = vst.msk [vmem:[#allocation3 + $0xb0] sm:$0xff] %vm2081_vm10, %v2030_v57 }
 0x2ec   : > { %1920 = vst.msk [vmem:[#allocation3 + $0xf8] sm:$0xff] %vm1888_vm9, %v1855_v28 }
 0x2ed   : > { %2043 = vrot.lane.b32.xlu0 %v6525_v19, %s5579_s28  ;;  %v2145_v19 = vld [vmem:[#allocation2 + $0x1a2] sm:$0xff] }
 0x2ee   : > { %v2223_v11 = vpop.permute.xlu1 %2222  ;;  %v2327_v2 = vld [vmem:[#allocation3 + $0xa0] sm:$0xff] }
 0x2ef   : > { %v1988_v45 = vpop.permute.xlu0 %1987  ;;  %2297 = vst.msk [vmem:[#allocation3 + $0xb0] sm:$0xff] %vm2274_vm12, %v2223_v11 }
 0x2f0   : > { %2083 = vst.msk [vmem:[#allocation3 + $0x8] sm:$0xff] %vm2081_vm10, %v1988_v45 }
 0x2f1   : > { %2276 = vst.msk [vmem:[#allocation3 + $0x8] sm:$0xff] %vm2274_vm12, %v6763_v50  ;;  %2236 = vrot.lane.b32.xlu0 %v6618_v32, %s5580_s0 }
 0x2f2   : > { %v2034_v15 = vpop.permute.xlu1 %2033 }
 0x2f3   : > { %v1992_v51 = vpop.permute.xlu0 %1991  ;;  %2106 = vst.msk [vmem:[#allocation3 + $0xc0] sm:$0xff] %vm2081_vm10, %v2034_v15 }
 0x2f4   : > { %2085 = vst.msk [vmem:[#allocation3 + $0x18] sm:$0xff] %vm2081_vm10, %v1992_v51 }
 0x2f5   : > { %2278 = vst.msk [vmem:[#allocation3 + $0x18] sm:$0xff] %vm2274_vm12, %v6767_v53  ;;  %2047 = vrot.lane.b32.xlu0 %v1952_v30, %s5579_s28  ;;  %s8097_s28 = scalar_lea.hbm %s8147_s10, %s5168_s26 }
 0x2f6   : > { %v2227_v56 = vpop.permute.xlu1 %2226  ;;  %v2329_v8 = vld [vmem:[#allocation3 + $0xb0] sm:$0xff] }
 0x2f7   : > { %v1996_v26 = vpop.permute.xlu0 %1995  ;;  %2299 = vst.msk [vmem:[#allocation3 + $0xc0] sm:$0xff] %vm2274_vm12, %v2227_v56 }
 0x2f8   : > { %2087 = vst.msk [vmem:[#allocation3 + $0x28] sm:$0xff] %vm2081_vm10, %v1996_v26  ;;  %v2308_v53 = vld [vmem:[#allocation3 + $0x8] sm:$0xff] }
 0x2f9   : > { %2280 = vst.msk [vmem:[#allocation3 + $0x28] sm:$0xff] %vm2274_vm12, %v6771_v52  ;;  %2240 = vrot.lane.b32.xlu0 %v2145_v19, %s5580_s0 }
 0x2fa   : > { %v2038_v36 = vpop.permute.xlu1 %2037 }
 0x2fb   : > { %v2000_v32 = vpop.permute.xlu0 %1999  ;;  %2108 = vst.msk [vmem:[#allocation3 + $0xd0] sm:$0xff] %vm2081_vm10, %v2038_v36 }
 0x2fc   : > { %2089 = vst.msk [vmem:[#allocation3 + $0x38] sm:$0xff] %vm2081_vm10, %v2000_v32  ;;  %v2310_v52 = vld [vmem:[#allocation3 + $0x18] sm:$0xff] }
 0x2fd   : > { %2282 = vst.msk [vmem:[#allocation3 + $0x38] sm:$0xff] %vm2274_vm12, %v6775_v20 }
 0x2fe   : > { %v2231_v23 = vpop.permute.xlu1 %2230  ;;  %v2331_v11 = vld [vmem:[#allocation3 + $0xc0] sm:$0xff] }
 0x2ff   : > { %v2004_v18 = vpop.permute.xlu0 %2003  ;;  %2301 = vst.msk [vmem:[#allocation3 + $0xd0] sm:$0xff] %vm2274_vm12, %v2231_v23 }
 0x300   : > { %2091 = vst.msk [vmem:[#allocation3 + $0x48] sm:$0xff] %vm2081_vm10, %v2004_v18  ;;  %v2312_v20 = vld [vmem:[#allocation3 + $0x28] sm:$0xff] }
 0x301   : > { %2284 = vst.msk [vmem:[#allocation3 + $0x48] sm:$0xff] %vm2274_vm12, %v6779_v31 }
 0x302   : > { %v2042_v4 = vpop.permute.xlu1 %2041 }
 0x303   : > { %v2008_v48 = vpop.permute.xlu0 %2007  ;;  %2110 = vst.msk [vmem:[#allocation3 + $0xe0] sm:$0xff] %vm2081_vm10, %v2042_v4 }
 0x304   : > { %2093 = vst.msk [vmem:[#allocation3 + $0x58] sm:$0xff] %vm2081_vm10, %v2008_v48  ;;  %v2314_v31 = vld [vmem:[#allocation3 + $0x38] sm:$0xff] }
 0x305   : > { %2286 = vst.msk [vmem:[#allocation3 + $0x58] sm:$0xff] %vm2274_vm12, %v6783_v63 }
 0x306   : > { %v2235_v38 = vpop.permute.xlu1 %2234  ;;  %v2333_v19 = vld [vmem:[#allocation3 + $0xd0] sm:$0xff] }
 0x307   : > { %v2012_v29 = vpop.permute.xlu0 %2011  ;;  %2303 = vst.msk [vmem:[#allocation3 + $0xe0] sm:$0xff] %vm2274_vm12, %v2235_v38 }
 0x308   : > { %2095 = vst.msk [vmem:[#allocation3 + $0x68] sm:$0xff] %vm2081_vm10, %v2012_v29  ;;  %v2316_v63 = vld [vmem:[#allocation3 + $0x48] sm:$0xff]  ;;  %v8244_v29 = vmov 0.0  }
 0x309   : > { %2288 = vst.msk [vmem:[#allocation3 + $0x68] sm:$0xff] %vm2274_vm12, %v6787_v43 }
 0x30a   : > { %v2046_v1 = vpop.permute.xlu1 %2045  ;;  %2780 = vst.msk [vmem:[#allocation4 + $0x20] sm:$0xff] %vm2774_vm14, %v8244_v29  ;;  %2775 = vst.msk [vmem:[#allocation4] sm:$0xff] %vm2774_vm14, %v8244_v29 }
 0x30b   : > { %v2016_v41 = vpop.permute.xlu0 %2015  ;;  %2112 = vst.msk [vmem:[#allocation3 + $0xf0] sm:$0xff] %vm2081_vm10, %v2046_v1 }
 0x30c   : > { %2097 = vst.msk [vmem:[#allocation3 + $0x78] sm:$0xff] %vm2081_vm10, %v2016_v41  ;;  %v2318_v43 = vld [vmem:[#allocation3 + $0x58] sm:$0xff] }
 0x30d   : > { %2290 = vst.msk [vmem:[#allocation3 + $0x78] sm:$0xff] %vm2274_vm12, %v6791_v14 }
 0x30e   : > { %v2239_v40 = vpop.permute.xlu1 %2238  ;;  %v2335_v36 = vld [vmem:[#allocation3 + $0xe0] sm:$0xff]  ;;  %2781 = vst.msk [vmem:[#allocation4 + $0x28] sm:$0x3] %vm2777_vm15, %v8244_v29  ;;  %2778 = vst.msk [vmem:[#allocation4 + $0x10] sm:$0x3] %vm2777_vm15, %v8244_v29 }
 0x30f   : > { %v2179_v6 = vpop.permute.xlu0 %2178  ;;  %2305 = vst.msk [vmem:[#allocation3 + $0xf0] sm:$0xff] %vm2274_vm12, %v2239_v40 }
 0x310   : > { %2275 = vst.msk [vmem:[#allocation3] sm:$0xff] %vm2274_vm12, %v2179_v6  ;;  %v2320_v14 = vld [vmem:[#allocation3 + $0x68] sm:$0xff]  ;;  %v2670_v6 = vlaneseq }
 0x311   : > { %2776 = vst.msk [vmem:[#allocation4 + $0x8] sm:$0xff] %vm2774_vm14, %v8244_v29  ;;  %2779 = vst.msk [vmem:[#allocation4 + $0x18] sm:$0xff] %vm2774_vm14, %v8244_v29 }
 0x312   : > { %2782 = vst.msk [vmem:[#allocation4 + $0x30] sm:$0xff] %vm2774_vm14, %v8244_v29  ;;  %2783 = vst.msk [vmem:[#allocation4 + $0x38] sm:$0xff] %vm2774_vm14, %v8244_v29  ;;  %v2671_v40 = vshrl.u32 %v2670_v6, 7 }
 0x313   : > { %v2183_v50 = vpop.permute.xlu0 %2182  ;;  %2784 = vst.msk [vmem:[#allocation4 + $0x40] sm:$0x3] %vm2777_vm15, %v8244_v29  ;;  %2787 = vst.msk [vmem:[#allocation4 + $0x58] sm:$0x3] %vm2777_vm15, %v8244_v29 }
 0x314   : > { %2277 = vst.msk [vmem:[#allocation3 + $0x10] sm:$0xff] %vm2274_vm12, %v2183_v50  ;;  %v2322_v44 = vld [vmem:[#allocation3 + $0x78] sm:$0xff]  ;;  %v452_v50 = vld [vmem:[%s8140_s3] sm:$0x1] }
 0x315   : > { %2785 = vst.msk [vmem:[#allocation4 + $0x48] sm:$0xff] %vm2774_vm14, %v8244_v29  ;;  %2786 = vst.msk [vmem:[#allocation4 + $0x50] sm:$0xff] %vm2774_vm14, %v8244_v29 }
 0x316   : > { %v2337_v23 = vld [vmem:[#allocation3 + $0xf0] sm:$0xff]  ;;  %2788 = vst.msk [vmem:[#allocation4 + $0x60] sm:$0xff] %vm2774_vm14, %v8244_v29  ;;  %2789 = vst.msk [vmem:[#allocation4 + $0x68] sm:$0xff] %vm2774_vm14, %v8244_v29 }
 0x317   : > { %v2187_v12 = vpop.permute.xlu0 %2186  ;;  %v2307_v13 = vld [vmem:[#allocation3] sm:$0xff]  ;;  %2790 = vst.msk [vmem:[#allocation4 + $0x70] sm:$0x3] %vm2777_vm15, %v8244_v29  ;;  %2793 = vst.msk [vmem:[#allocation4 + $0x88] sm:$0x3] %vm2777_vm15, %v8244_v29 }
 0x318   : > { %2279 = vst.msk [vmem:[#allocation3 + $0x20] sm:$0xff] %vm2274_vm12, %v2187_v12  ;;  %5289 = vmatprep.mubr.msk.f32.mxu0 %vm2344_vm13, %v2307_v13  ;;  %v2928_v41 = vld [vmem:[#allocation4 + $0x9] sm:$0xff]  ;;  %v2927_v1 = vld [vmem:[#allocation4 + $0x1] sm:$0xff]  ;;  %v7020_v12 = vsub.s32 0, %v2671_v40  ;;  %v453_v13 = vmul.f32 %v452_v50, %v6339_v62 }
 0x319   : > { %5290 = vmatmul.mubr.msk.f32.vlgmr.msra.gmra.mrb[2].mxu0 %vm2344_vm13, %v2308_v53  ;;  %2791 = vst.msk [vmem:[#allocation4 + $0x78] sm:$0xff] %vm2774_vm14, %v8244_v29  ;;  %2792 = vst.msk [vmem:[#allocation4 + $0x80] sm:$0xff] %vm2774_vm14, %v8244_v29  ;;  %2993 = vrot.lane.b32.xlu0 %v2928_v41, %s5573_s25  ;;  %v2864_v53 = vld [vmem:[#allocation4 + $0x8] sm:$0xff] }
 0x31a   : > { %2794 = vst.msk [vmem:[#allocation4 + $0x90] sm:$0xff] %vm2774_vm14, %v8244_v29  ;;  %2795 = vst.msk [vmem:[#allocation4 + $0x98] sm:$0xff] %vm2774_vm14, %v8244_v29  ;;  %2991 = vrot.lane.b32.xlu1 %v2927_v1, %s5573_s25 }
 0x31b   : > { %v2191_v21 = vpop.permute.xlu0 %2190  ;;  %v2309_v47 = vld [vmem:[#allocation3 + $0x10] sm:$0xff]  ;;  %2796 = vst.msk [vmem:[#allocation4 + $0xa0] sm:$0x3] %vm2777_vm15, %v8244_v29  ;;  %2799 = vst.msk [vmem:[#allocation4 + $0xb8] sm:$0x3] %vm2777_vm15, %v8244_v29 }
 0x31c   : > { %2281 = vst.msk [vmem:[#allocation3 + $0x30] sm:$0xff] %vm2274_vm12, %v2191_v21  ;;  %5292 = vmatprep.mubr.msk.f32.mxu0 %vm2344_vm13, %v2309_v47  ;;  %v458_v21 = vadd.f32 %v6531_v42, %v453_v13  ;;  %v2863_v47 = vld [vmem:[#allocation4] sm:$0xff] }
 0x31d   : > { %5293 = vmatmul.mubr.msk.f32.gmra.mrb[4].mxu0 %vm2344_vm13, %v2310_v52  ;;  %2797 = vst.msk [vmem:[#allocation4 + $0xa8] sm:$0xff] %vm2774_vm14, %v8244_v29  ;;  %2798 = vst.msk [vmem:[#allocation4 + $0xb0] sm:$0xff] %vm2774_vm14, %v8244_v29  ;;  %v7027_v52 = vrot.slane %v6339_v62, %v7020_v12 }
 0x31e   : > { %2800 = vst.msk [vmem:[#allocation4 + $0xc0] sm:$0xff] %vm2774_vm14, %v8244_v29  ;;  %2801 = vst.msk [vmem:[#allocation4 + $0xc8] sm:$0xff] %vm2774_vm14, %v8244_v29 }
 0x31f   : > { %v2195_v34 = vpop.permute.xlu0 %2194  ;;  %v2311_v54 = vld [vmem:[#allocation3 + $0x20] sm:$0xff]  ;;  %2802 = vst.msk [vmem:[#allocation4 + $0xd0] sm:$0x3] %vm2777_vm15, %v8244_v29  ;;  %2805 = vst.msk [vmem:[#allocation4 + $0xe8] sm:$0x3] %vm2777_vm15, %v8244_v29 }
 0x320   : > { %2283 = vst.msk [vmem:[#allocation3 + $0x40] sm:$0xff] %vm2274_vm12, %v2195_v34  ;;  %5295 = vmatprep.mubr.msk.f32.mxu0 %vm2344_vm13, %v2311_v54 }
 0x321   : > { %5296 = vmatmul.mubr.msk.f32.gmra.mrb[6].mxu0 %vm2344_vm13, %v2312_v20  ;;  %2803 = vst.msk [vmem:[#allocation4 + $0xd8] sm:$0xff] %vm2774_vm14, %v8244_v29  ;;  %2804 = vst.msk [vmem:[#allocation4 + $0xe0] sm:$0xff] %vm2774_vm14, %v8244_v29 }
 0x322   : > { %2806 = vst.msk [vmem:[#allocation4 + $0xf0] sm:$0xff] %vm2774_vm14, %v8244_v29  ;;  %2807 = vst.msk [vmem:[#allocation4 + $0xf8] sm:$0xff] %vm2774_vm14, %v8244_v29 }
 0x323   : > { %v2199_v10 = vpop.permute.xlu0 %2198  ;;  %v2313_v58 = vld [vmem:[#allocation3 + $0x30] sm:$0xff]  ;;  %2808 = vst.msk [vmem:[#allocation4 + $0x100] sm:$0x3] %vm2777_vm15, %v8244_v29  ;;  %2811 = vst.msk [vmem:[#allocation4 + $0x118] sm:$0x3] %vm2777_vm15, %v8244_v29 }
 0x324   : > { %2285 = vst.msk [vmem:[#allocation3 + $0x50] sm:$0xff] %vm2274_vm12, %v2199_v10  ;;  %5298 = vmatprep.mubr.msk.f32.mxu0 %vm2344_vm13, %v2313_v58  ;;  %v7032_v10 = vrot.slane %v458_v21, %v7020_v12 }
 0x325   : > { %5299 = vmatmul.mubr.msk.f32.gmra.mrb[8].mxu0 %vm2344_vm13, %v2314_v31  ;;  %2809 = vst.msk [vmem:[#allocation4 + $0x108] sm:$0xff] %vm2774_vm14, %v8244_v29  ;;  %2810 = vst.msk [vmem:[#allocation4 + $0x110] sm:$0xff] %vm2774_vm14, %v8244_v29 }
 0x326   : > { %2812 = vst.msk [vmem:[#allocation4 + $0x120] sm:$0xff] %vm2774_vm14, %v8244_v29  ;;  %2813 = vst.msk [vmem:[#allocation4 + $0x128] sm:$0xff] %vm2774_vm14, %v8244_v29 }
 0x327   : > { %v2203_v37 = vpop.permute.xlu0 %2202  ;;  %v2315_v55 = vld [vmem:[#allocation3 + $0x40] sm:$0xff]  ;;  %2814 = vst.msk [vmem:[#allocation4 + $0x130] sm:$0x3] %vm2777_vm15, %v8244_v29  ;;  %2817 = vst.msk [vmem:[#allocation4 + $0x148] sm:$0x3] %vm2777_vm15, %v8244_v29 }
 0x328   : > { %2287 = vst.msk [vmem:[#allocation3 + $0x60] sm:$0xff] %vm2274_vm12, %v2203_v37  ;;  %5301 = vmatprep.mubr.msk.f32.mxu0 %vm2344_vm13, %v2315_v55 }
 0x329   : > { %5302 = vmatmul.mubr.msk.f32.gmra.mrb[10].mxu0 %vm2344_vm13, %v2316_v63  ;;  %2815 = vst.msk [vmem:[#allocation4 + $0x138] sm:$0xff] %vm2774_vm14, %v8244_v29  ;;  %2816 = vst.msk [vmem:[#allocation4 + $0x140] sm:$0xff] %vm2774_vm14, %v8244_v29 }
 0x32a   : > { %2818 = vst.msk [vmem:[#allocation4 + $0x150] sm:$0xff] %vm2774_vm14, %v8244_v29  ;;  %2819 = vst.msk [vmem:[#allocation4 + $0x158] sm:$0xff] %vm2774_vm14, %v8244_v29 }
 0x32b   : > { %v2207_v22 = vpop.permute.xlu0 %2206  ;;  %v2317_v3 = vld [vmem:[#allocation3 + $0x50] sm:$0xff]  ;;  %2820 = vst.msk [vmem:[#allocation4 + $0x160] sm:$0x3] %vm2777_vm15, %v8244_v29  ;;  %2823 = vst.msk [vmem:[#allocation4 + $0x178] sm:$0x3] %vm2777_vm15, %v8244_v29 }
 0x32c   : > { %2289 = vst.msk [vmem:[#allocation3 + $0x70] sm:$0xff] %vm2274_vm12, %v2207_v22  ;;  %5304 = vmatprep.mubr.msk.f32.mxu0 %vm2344_vm13, %v2317_v3 }
 0x32d   : > { %5305 = vmatmul.mubr.msk.f32.gmra.mrb[12].mxu0 %vm2344_vm13, %v2318_v43  ;;  %2821 = vst.msk [vmem:[#allocation4 + $0x168] sm:$0xff] %vm2774_vm14, %v8244_v29  ;;  %2822 = vst.msk [vmem:[#allocation4 + $0x170] sm:$0xff] %vm2774_vm14, %v8244_v29 }
 0x32e   : > { %2824 = vst.msk [vmem:[#allocation4 + $0x180] sm:$0xff] %vm2774_vm14, %v8244_v29  ;;  %2825 = vst.msk [vmem:[#allocation4 + $0x188] sm:$0xff] %vm2774_vm14, %v8244_v29 }
 0x32f   : > { %v2020_v49 = vpop.permute.xlu0 %2019  ;;  %v2319_v16 = vld [vmem:[#allocation3 + $0x60] sm:$0xff]  ;;  %2826 = vst.msk [vmem:[#allocation4 + $0x190] sm:$0x3] %vm2777_vm15, %v8244_v29  ;;  %2829 = vst.msk [vmem:[#allocation4 + $0x1a8] sm:$0x3] %vm2777_vm15, %v8244_v29 }
 0x330   : > { %2099 = vst.msk [vmem:[#allocation3 + $0x88] sm:$0xff] %vm2081_vm10, %v2020_v49  ;;  %5307 = vmatprep.mubr.msk.f32.mxu0 %vm2344_vm13, %v2319_v16 }
 0x331   : > { %5308 = vmatmul.mubr.msk.f32.gmra.mrb[14].mxu0 %vm2344_vm13, %v2320_v14  ;;  %2827 = vst.msk [vmem:[#allocation4 + $0x198] sm:$0xff] %vm2774_vm14, %v8244_v29  ;;  %2828 = vst.msk [vmem:[#allocation4 + $0x1a0] sm:$0xff] %vm2774_vm14, %v8244_v29 }
 0x332   : > { %2896 = vst.msk [vmem:[#allocation5 + $0x8] sm:$0xff] %vm2774_vm14, %v2864_v53  ;;  %2895 = vst.msk [vmem:[#allocation5] sm:$0xff] %vm2774_vm14, %v2863_v47 }
 0x333   : > { %v2213_v59 = vpop.permute.xlu0 %2212  ;;  %v2321_v17 = vld [vmem:[#allocation3 + $0x70] sm:$0xff] }
 0x334   : > { %2292 = vst.msk [vmem:[#allocation3 + $0x88] sm:$0xff] %vm2274_vm12, %v2213_v59  ;;  %5310 = vmatprep.mubr.msk.f32.mxu0 %vm2344_vm13, %v2321_v17 }
 0x335   : > { %5311 = vmatmul.mubr.msk.f32.gmra.mrb[16].mxu0 %vm2344_vm13, %v2322_v44 }
 0x336   : > { %5313 = vmatprep.mubr.msk.f32.mxu0 %vm2344_vm13, %v2323_v24 }
 0x337   : > { %v2024_v27 = vpop.permute.xlu0 %2023 }
 0x338   : > { %2101 = vst.msk [vmem:[#allocation3 + $0x98] sm:$0xff] %vm2081_vm10, %v2024_v27 }
 0x33b   : > { %v2217_v25 = vpop.permute.xlu0 %2216  ;;  %v2324_v9 = vld [vmem:[#allocation3 + $0x88] sm:$0xff] }
 0x33c   : > { %2294 = vst.msk [vmem:[#allocation3 + $0x98] sm:$0xff] %vm2274_vm12, %v2217_v25  ;;  %5314 = vmatmul.mubr.msk.f32.gmra.mrb[18].mxu0 %vm2344_vm13, %v2324_v9 }
 0x33d   : > { %5316 = vmatprep.mubr.msk.f32.mxu0 %vm2344_vm13, %v2325_v33 }
 0x33f   : > { %v2028_v46 = vpop.permute.xlu0 %2027 }
 0x340   : > { %2103 = vst.msk [vmem:[#allocation3 + $0xa8] sm:$0xff] %vm2081_vm10, %v2028_v46 }
 0x343   : > { %v2221_v60 = vpop.permute.xlu0 %2220  ;;  %v2326_v61 = vld [vmem:[#allocation3 + $0x98] sm:$0xff] }
 0x344   : > { %2296 = vst.msk [vmem:[#allocation3 + $0xa8] sm:$0xff] %vm2274_vm12, %v2221_v60  ;;  %5317 = vmatmul.mubr.msk.f32.gmra.mrb[20].mxu0 %vm2344_vm13, %v2326_v61 }
 0x345   : > { %5319 = vmatprep.mubr.msk.f32.mxu0 %vm2344_vm13, %v2327_v2 }
 0x347   : > { %v2032_v39 = vpop.permute.xlu0 %2031 }
 0x348   : > { %2105 = vst.msk [vmem:[#allocation3 + $0xb8] sm:$0xff] %vm2081_vm10, %v2032_v39 }
 0x34b   : > { %v2225_v5 = vpop.permute.xlu0 %2224  ;;  %v2328_v7 = vld [vmem:[#allocation3 + $0xa8] sm:$0xff] }
 0x34c   : > { %2298 = vst.msk [vmem:[#allocation3 + $0xb8] sm:$0xff] %vm2274_vm12, %v2225_v5  ;;  %5320 = vmatmul.mubr.msk.f32.gmra.mrb[22].mxu0 %vm2344_vm13, %v2328_v7 }
 0x34d   : > { %5322 = vmatprep.mubr.msk.f32.mxu0 %vm2344_vm13, %v2329_v8 }
 0x34f   : > { %v2036_v28 = vpop.permute.xlu0 %2035 }
 0x350   : > { %2107 = vst.msk [vmem:[#allocation3 + $0xc8] sm:$0xff] %vm2081_vm10, %v2036_v28 }
 0x353   : > { %v2229_v57 = vpop.permute.xlu0 %2228  ;;  %v2330_v45 = vld [vmem:[#allocation3 + $0xb8] sm:$0xff] }
 0x354   : > { %2300 = vst.msk [vmem:[#allocation3 + $0xc8] sm:$0xff] %vm2274_vm12, %v2229_v57  ;;  %5323 = vmatmul.mubr.msk.f32.gmra.mrb[24].mxu0 %vm2344_vm13, %v2330_v45 }
 0x355   : > { %5325 = vmatprep.mubr.msk.f32.mxu0 %vm2344_vm13, %v2331_v11 }
 0x357   : > { %v2040_v30 = vpop.permute.xlu0 %2039 }
 0x358   : > { %2109 = vst.msk [vmem:[#allocation3 + $0xd8] sm:$0xff] %vm2081_vm10, %v2040_v30 }
 0x35b   : > { %v2233_v51 = vpop.permute.xlu0 %2232  ;;  %v2332_v15 = vld [vmem:[#allocation3 + $0xc8] sm:$0xff] }
 0x35c   : > { %2302 = vst.msk [vmem:[#allocation3 + $0xd8] sm:$0xff] %vm2274_vm12, %v2233_v51  ;;  %5326 = vmatmul.mubr.msk.f32.gmra.mrb[26].mxu0 %vm2344_vm13, %v2332_v15 }
 0x35d   : > { %5328 = vmatprep.mubr.msk.f32.mxu0 %vm2344_vm13, %v2333_v19 }
 0x35f   : > { %v2044_v26 = vpop.permute.xlu0 %2043 }
 0x360   : > { %2111 = vst.msk [vmem:[#allocation3 + $0xe8] sm:$0xff] %vm2081_vm10, %v2044_v26 }
 0x363   : > { %v2237_v56 = vpop.permute.xlu0 %2236  ;;  %v2334_v32 = vld [vmem:[#allocation3 + $0xd8] sm:$0xff] }
 0x364   : > { %2304 = vst.msk [vmem:[#allocation3 + $0xe8] sm:$0xff] %vm2274_vm12, %v2237_v56  ;;  %5329 = vmatmul.mubr.msk.f32.gmra.mrb[28].mxu0 %vm2344_vm13, %v2334_v32 }
 0x365   : > { %5331 = vmatprep.mubr.msk.f32.mxu0 %vm2344_vm13, %v2335_v36 }
 0x367   : > { %v2048_v18 = vpop.permute.xlu0 %2047 }
 0x368   : > { %2113 = vst.msk [vmem:[#allocation3 + $0xf8] sm:$0xff] %vm2081_vm10, %v2048_v18 }
 0x36b   : > { %v2241_v48 = vpop.permute.xlu0 %2240  ;;  %v2336_v4 = vld [vmem:[#allocation3 + $0xe8] sm:$0xff] }
 0x36c   : > { %2306 = vst.msk [vmem:[#allocation3 + $0xf8] sm:$0xff] %vm2274_vm12, %v2241_v48  ;;  %5332 = vmatmul.mubr.msk.f32.gmra.mrb[30].mxu0 %vm2344_vm13, %v2336_v4 }
 0x36d   : > { %5334 = vmatprep.mubr.msk.f32.mxu0 %vm2344_vm13, %v2337_v23 }
 0x373   : > { %v2338_v38 = vld [vmem:[#allocation3 + $0xf8] sm:$0xff] }
 0x374   : > { %5335 = vmatmul.mubr.msk.f32.gmra.mrb[32].mxu0 %vm2344_vm13, %v2338_v38 }
 0x38b   : > { %v2994_v34 = vpop.permute.xlu0 %2993 }
 0x38c   : > { %3089 = vst.msk [vmem:[#allocation5 + $0x8] sm:$0xff] %vm3087_vm0, %v2994_v34  ;;  %v2992_v20 = vpop.permute.xlu1 %2991 }
 0x38d   : > { %3088 = vst.msk [vmem:[#allocation5] sm:$0xff] %vm3087_vm0, %v2992_v20 }
 0x3ec   : > { %v5291_v54 = vpop.f32.mrb[2].mxu0 }
 0x3ed   : > { %v2675_v58 = vmul.f32 %v5291_v54, %v7027_v52  ;;  %v2511_v31 = vpop.f32.mrb[3].mxu0 }
 0x3ee   : > { %v2674_v42 = vmul.f32 %v7027_v52, %v2511_v31 }
 0x3ef   : > { %v2711_v62 = vadd.f32 %v7032_v10, %v2675_v58 }
 0x3f0   : > { %v2710_v37 = vadd.f32 %v7032_v10, %v2674_v42  ;;  %v5294_v55 = vpop.f32.mrb[4].mxu0 }
 0x3f1   : > { %v2743_v63 = vmax.f32 %v2711_v62, 0.0  ;;  %v2677_v22 = vmul.f32 %v5294_v55, %v7027_v52  ;;  %v2521_v3 = vpop.f32.mrb[5].mxu0 }
 0x3f2   : > { %v2742_v43 = vmax.f32 %v2710_v37, 0.0  ;;  %v2676_v49 = vmul.f32 %v7027_v52, %v2521_v3 }
 0x3f3   : > { %2832 = vst.msk [vmem:[#allocation4 + $0x21] sm:$0xff] %vm2774_vm14, %v2743_v63  ;;  %v2713_v16 = vadd.f32 %v7032_v10, %v2677_v22 }
 0x3f4   : > { %2831 = vst.msk [vmem:[#allocation4 + $0x19] sm:$0xff] %vm2774_vm14, %v2742_v43  ;;  %v2712_v14 = vadd.f32 %v7032_v10, %v2676_v49  ;;  %v5297_v59 = vpop.f32.mrb[6].mxu0 }
 0x3f5   : > { %v2745_v17 = vmax.f32 %v2713_v16, 0.0  ;;  %v2679_v44 = vmul.f32 %v5297_v59, %v7027_v52  ;;  %v2531_v24 = vpop.f32.mrb[7].mxu0 }
 0x3f6   : > { %v2744_v27 = vmax.f32 %v2712_v14, 0.0  ;;  %v2678_v25 = vmul.f32 %v7027_v52, %v2531_v24 }
 0x3f7   : > { %2834 = vst.msk [vmem:[#allocation4 + $0x39] sm:$0xff] %vm2774_vm14, %v2745_v17  ;;  %v2715_v9 = vadd.f32 %v7032_v10, %v2679_v44 }
 0x3f8   : > { %2833 = vst.msk [vmem:[#allocation4 + $0x31] sm:$0xff] %vm2774_vm14, %v2744_v27  ;;  %v2714_v33 = vadd.f32 %v7032_v10, %v2678_v25  ;;  %v5300_v46 = vpop.f32.mrb[8].mxu0 }
 0x3f9   : > { %v2747_v60 = vmax.f32 %v2715_v9, 0.0  ;;  %v2681_v61 = vmul.f32 %v5300_v46, %v7027_v52  ;;  %v2541_v2 = vpop.f32.mrb[9].mxu0 }
 0x3fa   : > { %v2746_v39 = vmax.f32 %v2714_v33, 0.0  ;;  %v2680_v5 = vmul.f32 %v7027_v52, %v2541_v2  ;;  %v7053_v7 = vld [vmem:[#allocation4 + $0x21] sm:$0xff] }
 0x3fb   : > { %2836 = vst.msk [vmem:[#allocation4 + $0x51] sm:$0xff] %vm2774_vm14, %v2747_v60  ;;  %v2717_v8 = vadd.f32 %v7032_v10, %v2681_v61  ;;  %2997 = vrot.lane.b32.xlu0 %v7053_v7, %s5573_s25  ;;  %v7059_v28 = vld [vmem:[#allocation4 + $0x19] sm:$0xff] }
 0x3fc   : > { %v7061_v57 = vld [vmem:[#allocation4 + $0x20] sm:$0xff]  ;;  %2835 = vst.msk [vmem:[#allocation4 + $0x49] sm:$0xff] %vm2774_vm14, %v2746_v39  ;;  %v2716_v45 = vadd.f32 %v7032_v10, %v2680_v5  ;;  %2995 = vrot.lane.b32.xlu1 %v7059_v28, %s5573_s25  ;;  %v5303_v11 = vpop.f32.mrb[10].mxu0  ;;  %v7069_v30 = vld [vmem:[#allocation4 + $0x18] sm:$0xff] }
 0x3fd   : > { %2898 = vst.msk [vmem:[#allocation5 + $0x18] sm:$0xff] %vm2774_vm14, %v7061_v57  ;;  %v2749_v51 = vmax.f32 %v2717_v8, 0.0  ;;  %v2683_v15 = vmul.f32 %v5303_v11, %v7027_v52  ;;  %v2551_v19 = vpop.f32.mrb[11].mxu0  ;;  %2897 = vst.msk [vmem:[#allocation5 + $0x10] sm:$0xff] %vm2774_vm14, %v7069_v30 }
 0x3fe   : > { %v2748_v26 = vmax.f32 %v2716_v45, 0.0  ;;  %v2682_v56 = vmul.f32 %v7027_v52, %v2551_v19  ;;  %v7075_v32 = vld [vmem:[#allocation4 + $0x39] sm:$0xff] }
 0x3ff   : > { %2838 = vst.msk [vmem:[#allocation4 + $0x69] sm:$0xff] %vm2774_vm14, %v2749_v51  ;;  %v2719_v36 = vadd.f32 %v7032_v10, %v2683_v15  ;;  %3001 = vrot.lane.b32.xlu0 %v7075_v32, %s5573_s25  ;;  %v7081_v18 = vld [vmem:[#allocation4 + $0x31] sm:$0xff] }
 0x400   : > { %v7083_v23 = vld [vmem:[#allocation4 + $0x38] sm:$0xff]  ;;  %2837 = vst.msk [vmem:[#allocation4 + $0x61] sm:$0xff] %vm2774_vm14, %v2748_v26  ;;  %v2718_v48 = vadd.f32 %v7032_v10, %v2682_v56  ;;  %2999 = vrot.lane.b32.xlu1 %v7081_v18, %s5573_s25  ;;  %v5306_v4 = vpop.f32.mrb[12].mxu0  ;;  %v7091_v29 = vld [vmem:[#allocation4 + $0x30] sm:$0xff] }
 0x401   : > { %2900 = vst.msk [vmem:[#allocation5 + $0x28] sm:$0xff] %vm2774_vm14, %v7083_v23  ;;  %v2751_v38 = vmax.f32 %v2719_v36, 0.0  ;;  %v2685_v41 = vmul.f32 %v5306_v4, %v7027_v52  ;;  %v2561_v1 = vpop.f32.mrb[13].mxu0  ;;  %2899 = vst.msk [vmem:[#allocation5 + $0x20] sm:$0xff] %vm2774_vm14, %v7091_v29 }
 0x402   : > { %v2750_v6 = vmax.f32 %v2718_v48, 0.0  ;;  %v2684_v40 = vmul.f32 %v7027_v52, %v2561_v1  ;;  %v7097_v50 = vld [vmem:[#allocation4 + $0x51] sm:$0xff] }
 0x403   : > { %2840 = vst.msk [vmem:[#allocation4 + $0x81] sm:$0xff] %vm2774_vm14, %v2751_v38  ;;  %v2721_v13 = vadd.f32 %v7032_v10, %v2685_v41  ;;  %3005 = vrot.lane.b32.xlu0 %v7097_v50, %s5573_s25  ;;  %v7103_v53 = vld [vmem:[#allocation4 + $0x49] sm:$0xff] }
 0x404   : > { %v7105_v21 = vld [vmem:[#allocation4 + $0x50] sm:$0xff]  ;;  %2839 = vst.msk [vmem:[#allocation4 + $0x79] sm:$0xff] %vm2774_vm14, %v2750_v6  ;;  %v2720_v47 = vadd.f32 %v7032_v10, %v2684_v40  ;;  %3003 = vrot.lane.b32.xlu1 %v7103_v53, %s5573_s25  ;;  %v5309_v34 = vpop.f32.mrb[14].mxu0  ;;  %v7113_v54 = vld [vmem:[#allocation4 + $0x48] sm:$0xff] }
 0x405   : > { %2902 = vst.msk [vmem:[#allocation5 + $0x38] sm:$0xff] %vm2774_vm14, %v7105_v21  ;;  %v2753_v20 = vmax.f32 %v2721_v13, 0.0  ;;  %v2687_v58 = vmul.f32 %v5309_v34, %v7027_v52  ;;  %v2571_v31 = vpop.f32.mrb[15].mxu0  ;;  %2901 = vst.msk [vmem:[#allocation5 + $0x30] sm:$0xff] %vm2774_vm14, %v7113_v54 }
 0x406   : > { %v2752_v42 = vmax.f32 %v2720_v47, 0.0  ;;  %v2686_v62 = vmul.f32 %v7027_v52, %v2571_v31  ;;  %v7119_v37 = vld [vmem:[#allocation4 + $0x69] sm:$0xff] }
 0x407   : > { %2842 = vst.msk [vmem:[#allocation4 + $0x99] sm:$0xff] %vm2774_vm14, %v2753_v20  ;;  %v2723_v55 = vadd.f32 %v7032_v10, %v2687_v58  ;;  %3009 = vrot.lane.b32.xlu0 %v7119_v37, %s5573_s25  ;;  %v7125_v63 = vld [vmem:[#allocation4 + $0x61] sm:$0xff] }
 0x408   : > { %v7127_v22 = vld [vmem:[#allocation4 + $0x68] sm:$0xff]  ;;  %2841 = vst.msk [vmem:[#allocation4 + $0x91] sm:$0xff] %vm2774_vm14, %v2752_v42  ;;  %v2722_v3 = vadd.f32 %v7032_v10, %v2686_v62  ;;  %3007 = vrot.lane.b32.xlu1 %v7125_v63, %s5573_s25  ;;  %v5312_v43 = vpop.f32.mrb[16].mxu0  ;;  %v7135_v49 = vld [vmem:[#allocation4 + $0x60] sm:$0xff] }
 0x409   : > { %2904 = vst.msk [vmem:[#allocation5 + $0x48] sm:$0xff] %vm2774_vm14, %v7127_v22  ;;  %v2755_v16 = vmax.f32 %v2723_v55, 0.0  ;;  %v2689_v14 = vmul.f32 %v5312_v43, %v7027_v52  ;;  %v2581_v59 = vpop.f32.mrb[17].mxu0  ;;  %2903 = vst.msk [vmem:[#allocation5 + $0x40] sm:$0xff] %vm2774_vm14, %v7135_v49 }
 0x40a   : > { %v2754_v17 = vmax.f32 %v2722_v3, 0.0  ;;  %v2688_v44 = vmul.f32 %v7027_v52, %v2581_v59  ;;  %v2938_v24 = vld [vmem:[#allocation4 + $0x81] sm:$0xff] }
 0x40b   : > { %2844 = vst.msk [vmem:[#allocation4 + $0xb1] sm:$0xff] %vm2774_vm14, %v2755_v16  ;;  %v2725_v27 = vadd.f32 %v7032_v10, %v2689_v14  ;;  %3013 = vrot.lane.b32.xlu0 %v2938_v24, %s5573_s25  ;;  %v2937_v25 = vld [vmem:[#allocation4 + $0x79] sm:$0xff] }
 0x40c   : > { %v7144_v9 = vld [vmem:[#allocation4 + $0x80] sm:$0xff]  ;;  %2843 = vst.msk [vmem:[#allocation4 + $0xa9] sm:$0xff] %vm2774_vm14, %v2754_v17  ;;  %v2724_v33 = vadd.f32 %v7032_v10, %v2688_v44  ;;  %3011 = vrot.lane.b32.xlu1 %v2937_v25, %s5573_s25  ;;  %v7151_v46 = vld [vmem:[#allocation4 + $0x78] sm:$0xff] }
 0x40d   : > { %2906 = vst.msk [vmem:[#allocation5 + $0x58] sm:$0xff] %vm2774_vm14, %v7144_v9  ;;  %v2757_v60 = vmax.f32 %v2725_v27, 0.0  ;;  %2905 = vst.msk [vmem:[#allocation5 + $0x50] sm:$0xff] %vm2774_vm14, %v7151_v46 }
 0x40e   : > { %v2756_v61 = vmax.f32 %v2724_v33, 0.0  ;;  %v2940_v2 = vld [vmem:[#allocation4 + $0x99] sm:$0xff] }
 0x40f   : > { %2846 = vst.msk [vmem:[#allocation4 + $0xc9] sm:$0xff] %vm2774_vm14, %v2757_v60  ;;  %3017 = vrot.lane.b32.xlu0 %v2940_v2, %s5573_s25  ;;  %v5315_v39 = vpop.f32.mrb[18].mxu0  ;;  %v2939_v5 = vld [vmem:[#allocation4 + $0x91] sm:$0xff] }
 0x410   : > { %v7157_v8 = vld [vmem:[#allocation4 + $0x98] sm:$0xff]  ;;  %2845 = vst.msk [vmem:[#allocation4 + $0xc1] sm:$0xff] %vm2774_vm14, %v2756_v61  ;;  %v2691_v45 = vmul.f32 %v5315_v39, %v7027_v52  ;;  %3015 = vrot.lane.b32.xlu1 %v2939_v5, %s5573_s25  ;;  %v2591_v11 = vpop.f32.mrb[19].mxu0  ;;  %v7164_v51 = vld [vmem:[#allocation4 + $0x90] sm:$0xff] }
 0x411   : > { %2908 = vst.msk [vmem:[#allocation5 + $0x68] sm:$0xff] %vm2774_vm14, %v7157_v8  ;;  %v2690_v15 = vmul.f32 %v7027_v52, %v2591_v11  ;;  %2907 = vst.msk [vmem:[#allocation5 + $0x60] sm:$0xff] %vm2774_vm14, %v7164_v51 }
 0x412   : > { %v2727_v19 = vadd.f32 %v7032_v10, %v2691_v45  ;;  %v2942_v26 = vld [vmem:[#allocation4 + $0xb1] sm:$0xff] }
 0x413   : > { %v2726_v56 = vadd.f32 %v7032_v10, %v2690_v15  ;;  %3021 = vrot.lane.b32.xlu0 %v2942_v26, %s5573_s25  ;;  %v2941_v36 = vld [vmem:[#allocation4 + $0xa9] sm:$0xff] }
 0x414   : > { %v7172_v48 = vld [vmem:[#allocation4 + $0xb0] sm:$0xff]  ;;  %v2759_v4 = vmax.f32 %v2727_v19, 0.0  ;;  %3019 = vrot.lane.b32.xlu1 %v2941_v36, %s5573_s25  ;;  %v7177_v38 = vld [vmem:[#allocation4 + $0xa8] sm:$0xff] }
 0x415   : > { %2910 = vst.msk [vmem:[#allocation5 + $0x78] sm:$0xff] %vm2774_vm14, %v7172_v48  ;;  %v2758_v41 = vmax.f32 %v2726_v56, 0.0  ;;  %2909 = vst.msk [vmem:[#allocation5 + $0x70] sm:$0xff] %vm2774_vm14, %v7177_v38 }
 0x416   : > { %2848 = vst.msk [vmem:[#allocation4 + $0xe1] sm:$0xff] %vm2774_vm14, %v2759_v4  ;;  %v2944_v1 = vld [vmem:[#allocation4 + $0xc9] sm:$0xff] }
 0x417   : > { %2847 = vst.msk [vmem:[#allocation4 + $0xd9] sm:$0xff] %vm2774_vm14, %v2758_v41  ;;  %3025 = vrot.lane.b32.xlu0 %v2944_v1, %s5573_s25  ;;  %v5318_v6 = vpop.f32.mrb[20].mxu0  ;;  %v2943_v40 = vld [vmem:[#allocation4 + $0xc1] sm:$0xff] }
 0x418   : > { %v7184_v13 = vld [vmem:[#allocation4 + $0xc8] sm:$0xff]  ;;  %v2693_v47 = vmul.f32 %v5318_v6, %v7027_v52  ;;  %3023 = vrot.lane.b32.xlu1 %v2943_v40, %s5573_s25  ;;  %v2601_v34 = vpop.f32.mrb[21].mxu0  ;;  %v7190_v20 = vld [vmem:[#allocation4 + $0xc0] sm:$0xff] }
 0x419   : > { %2912 = vst.msk [vmem:[#allocation5 + $0x88] sm:$0xff] %vm2774_vm14, %v7184_v13  ;;  %v2692_v58 = vmul.f32 %v7027_v52, %v2601_v34  ;;  %2911 = vst.msk [vmem:[#allocation5 + $0x80] sm:$0xff] %vm2774_vm14, %v7190_v20 }
 0x41a   : > { %v2729_v31 = vadd.f32 %v7032_v10, %v2693_v47 }
 0x41b   : > { %v2728_v42 = vadd.f32 %v7032_v10, %v2692_v58 }
 0x41c   : > { %v2761_v62 = vmax.f32 %v2729_v31, 0.0 }
 0x41d   : > { %v2760_v55 = vmax.f32 %v2728_v42, 0.0  ;;  %v2946_v3 = vld [vmem:[#allocation4 + $0xe1] sm:$0xff] }
 0x41e   : > { %2850 = vst.msk [vmem:[#allocation4 + $0xf9] sm:$0xff] %vm2774_vm14, %v2761_v62  ;;  %3029 = vrot.lane.b32.xlu0 %v2946_v3, %s5573_s25  ;;  %v2945_v43 = vld [vmem:[#allocation4 + $0xd9] sm:$0xff] }
 0x41f   : > { %v7199_v16 = vld [vmem:[#allocation4 + $0xe0] sm:$0xff]  ;;  %2849 = vst.msk [vmem:[#allocation4 + $0xf1] sm:$0xff] %vm2774_vm14, %v2760_v55  ;;  %3027 = vrot.lane.b32.xlu1 %v2945_v43, %s5573_s25  ;;  %v5321_v14 = vpop.f32.mrb[22].mxu0  ;;  %v7205_v59 = vld [vmem:[#allocation4 + $0xd8] sm:$0xff] }
 0x420   : > { %2914 = vst.msk [vmem:[#allocation5 + $0x98] sm:$0xff] %vm2774_vm14, %v7199_v16  ;;  %v2695_v17 = vmul.f32 %v5321_v14, %v7027_v52  ;;  %v2611_v44 = vpop.f32.mrb[23].mxu0  ;;  %2913 = vst.msk [vmem:[#allocation5 + $0x90] sm:$0xff] %vm2774_vm14, %v7205_v59 }
 0x421   : > { %v2694_v24 = vmul.f32 %v7027_v52, %v2611_v44 }
 0x422   : > { %v2731_v27 = vadd.f32 %v7032_v10, %v2695_v17 }
 0x423   : > { %v2730_v25 = vadd.f32 %v7032_v10, %v2694_v24 }
 0x424   : > { %v2763_v33 = vmax.f32 %v2731_v27, 0.0 }
 0x425   : > { %v2762_v60 = vmax.f32 %v2730_v25, 0.0  ;;  %v2948_v61 = vld [vmem:[#allocation4 + $0xf9] sm:$0xff] }
 0x426   : > { %2852 = vst.msk [vmem:[#allocation4 + $0x111] sm:$0xff] %vm2774_vm14, %v2763_v33  ;;  %3033 = vrot.lane.b32.xlu0 %v2948_v61, %s5573_s25  ;;  %v2947_v2 = vld [vmem:[#allocation4 + $0xf1] sm:$0xff] }
 0x427   : > { %v7215_v39 = vld [vmem:[#allocation4 + $0xf8] sm:$0xff]  ;;  %2851 = vst.msk [vmem:[#allocation4 + $0x109] sm:$0xff] %vm2774_vm14, %v2762_v60  ;;  %3031 = vrot.lane.b32.xlu1 %v2947_v2, %s5573_s25  ;;  %v5324_v5 = vpop.f32.mrb[24].mxu0  ;;  %v7221_v45 = vld [vmem:[#allocation4 + $0xf0] sm:$0xff] }
 0x428   : > { %2916 = vst.msk [vmem:[#allocation5 + $0xa8] sm:$0xff] %vm2774_vm14, %v7215_v39  ;;  %v2697_v11 = vmul.f32 %v5324_v5, %v7027_v52  ;;  %v2621_v15 = vpop.f32.mrb[25].mxu0  ;;  %2915 = vst.msk [vmem:[#allocation5 + $0xa0] sm:$0xff] %vm2774_vm14, %v7221_v45 }
 0x429   : > { %v2696_v19 = vmul.f32 %v7027_v52, %v2621_v15 }
 0x42a   : > { %v2733_v26 = vadd.f32 %v7032_v10, %v2697_v11 }
 0x42b   : > { %v2732_v56 = vadd.f32 %v7032_v10, %v2696_v19 }
 0x42c   : > { %v2765_v36 = vmax.f32 %v2733_v26, 0.0 }
 0x42d   : > { %v2764_v4 = vmax.f32 %v2732_v56, 0.0  ;;  %v2950_v41 = vld [vmem:[#allocation4 + $0x111] sm:$0xff] }
 0x42e   : > { %2854 = vst.msk [vmem:[#allocation4 + $0x129] sm:$0xff] %vm2774_vm14, %v2765_v36  ;;  %3037 = vrot.lane.b32.xlu0 %v2950_v41, %s5573_s25  ;;  %v2949_v1 = vld [vmem:[#allocation4 + $0x109] sm:$0xff] }
 0x42f   : > { %v7231_v6 = vld [vmem:[#allocation4 + $0x110] sm:$0xff]  ;;  %2853 = vst.msk [vmem:[#allocation4 + $0x121] sm:$0xff] %vm2774_vm14, %v2764_v4  ;;  %3035 = vrot.lane.b32.xlu1 %v2949_v1, %s5573_s25  ;;  %v5327_v40 = vpop.f32.mrb[26].mxu0  ;;  %v7237_v47 = vld [vmem:[#allocation4 + $0x108] sm:$0xff] }
 0x430   : > { %2918 = vst.msk [vmem:[#allocation5 + $0xb8] sm:$0xff] %vm2774_vm14, %v7231_v6  ;;  %v2699_v34 = vmul.f32 %v5327_v40, %v7027_v52  ;;  %v2631_v58 = vpop.f32.mrb[27].mxu0  ;;  %2917 = vst.msk [vmem:[#allocation5 + $0xb0] sm:$0xff] %vm2774_vm14, %v7237_v47 }
 0x431   : > { %v2698_v31 = vmul.f32 %v7027_v52, %v2631_v58 }
 0x432   : > { %v2735_v42 = vadd.f32 %v7032_v10, %v2699_v34 }
 0x433   : > { %v2734_v62 = vadd.f32 %v7032_v10, %v2698_v31 }
 0x434   : > { %v2767_v55 = vmax.f32 %v2735_v42, 0.0 }
 0x435   : > { %v2766_v3 = vmax.f32 %v2734_v62, 0.0  ;;  %v2952_v43 = vld [vmem:[#allocation4 + $0x129] sm:$0xff] }
 0x436   : > { %2856 = vst.msk [vmem:[#allocation4 + $0x141] sm:$0xff] %vm2774_vm14, %v2767_v55  ;;  %3041 = vrot.lane.b32.xlu0 %v2952_v43, %s5573_s25  ;;  %v2951_v14 = vld [vmem:[#allocation4 + $0x121] sm:$0xff] }
 0x437   : > { %v7247_v17 = vld [vmem:[#allocation4 + $0x128] sm:$0xff]  ;;  %2855 = vst.msk [vmem:[#allocation4 + $0x139] sm:$0xff] %vm2774_vm14, %v2766_v3  ;;  %3039 = vrot.lane.b32.xlu1 %v2951_v14, %s5573_s25  ;;  %v5330_v44 = vpop.f32.mrb[28].mxu0  ;;  %v7253_v24 = vld [vmem:[#allocation4 + $0x120] sm:$0xff] }
 0x438   : > { %2920 = vst.msk [vmem:[#allocation5 + $0xc8] sm:$0xff] %vm2774_vm14, %v7247_v17  ;;  %v2701_v27 = vmul.f32 %v5330_v44, %v7027_v52  ;;  %v2641_v25 = vpop.f32.mrb[29].mxu0  ;;  %2919 = vst.msk [vmem:[#allocation5 + $0xc0] sm:$0xff] %vm2774_vm14, %v7253_v24 }
 0x439   : > { %v2700_v33 = vmul.f32 %v7027_v52, %v2641_v25 }
 0x43a   : > { %v2737_v60 = vadd.f32 %v7032_v10, %v2701_v27 }
 0x43b   : > { %v2736_v61 = vadd.f32 %v7032_v10, %v2700_v33 }
 0x43c   : > { %v2769_v2 = vmax.f32 %v2737_v60, 0.0 }
 0x43d   : > { %v2768_v5 = vmax.f32 %v2736_v61, 0.0  ;;  %v2954_v11 = vld [vmem:[#allocation4 + $0x141] sm:$0xff] }
 0x43e   : > { %2858 = vst.msk [vmem:[#allocation4 + $0x159] sm:$0xff] %vm2774_vm14, %v2769_v2  ;;  %3045 = vrot.lane.b32.xlu0 %v2954_v11, %s5573_s25  ;;  %v2953_v15 = vld [vmem:[#allocation4 + $0x139] sm:$0xff]  ;;  %v3121_v11 = vld [vmem:[#allocation4 + $0xa] sm:$0xff] }
 0x43f   : > { %v7263_v19 = vld [vmem:[#allocation4 + $0x140] sm:$0xff]  ;;  %2857 = vst.msk [vmem:[#allocation4 + $0x151] sm:$0xff] %vm2774_vm14, %v2768_v5  ;;  %3043 = vrot.lane.b32.xlu1 %v2953_v15, %s5573_s25  ;;  %v5333_v26 = vpop.f32.mrb[30].mxu0  ;;  %v7269_v56 = vld [vmem:[#allocation4 + $0x138] sm:$0xff] }
 0x440   : > { %2922 = vst.msk [vmem:[#allocation5 + $0xd8] sm:$0xff] %vm2774_vm14, %v7263_v19  ;;  %v2703_v36 = vmul.f32 %v5333_v26, %v7027_v52  ;;  %v2651_v4 = vpop.f32.mrb[31].mxu0  ;;  %2921 = vst.msk [vmem:[#allocation5 + $0xd0] sm:$0xff] %vm2774_vm14, %v7269_v56  ;;  %v3123_v15 = vld [vmem:[#allocation4 + $0x22] sm:$0xff]  ;;  %v3122_v26 = vld [vmem:[#allocation4 + $0x1a] sm:$0xff] }
 0x441   : > { %v2702_v41 = vmul.f32 %v7027_v52, %v2651_v4  ;;  %v7313_v4 = vld [vmem:[#allocation4 + $0x32] sm:$0xff] }
 0x442   : > { %v2739_v1 = vadd.f32 %v7032_v10, %v2703_v36  ;;  %v7309_v36 = vld [vmem:[#allocation4 + $0x3a] sm:$0xff] }
 0x443   : > { %v2738_v40 = vadd.f32 %v7032_v10, %v2702_v41  ;;  %v7317_v41 = vld [vmem:[#allocation4 + $0x52] sm:$0xff] }
 0x444   : > { %v2771_v34 = vmax.f32 %v2739_v1, 0.0  ;;  %v7321_v1 = vld [vmem:[#allocation4 + $0x4a] sm:$0xff] }
 0x445   : > { %v2770_v58 = vmax.f32 %v2738_v40, 0.0  ;;  %v2956_v31 = vld [vmem:[#allocation4 + $0x159] sm:$0xff]  ;;  %v7325_v40 = vld [vmem:[#allocation4 + $0x6a] sm:$0xff] }
 0x446   : > { %2860 = vst.msk [vmem:[#allocation4 + $0x171] sm:$0xff] %vm2774_vm14, %v2771_v34  ;;  %3049 = vrot.lane.b32.xlu0 %v2956_v31, %s5573_s25  ;;  %v2955_v42 = vld [vmem:[#allocation4 + $0x151] sm:$0xff]  ;;  %v7329_v34 = vld [vmem:[#allocation4 + $0x62] sm:$0xff]  ;;  %v7337_v31 = vld [vmem:[#allocation4 + $0x7a] sm:$0xff] }
 0x447   : > { %v7279_v62 = vld [vmem:[#allocation4 + $0x158] sm:$0xff]  ;;  %2859 = vst.msk [vmem:[#allocation4 + $0x169] sm:$0xff] %vm2774_vm14, %v2770_v58  ;;  %3047 = vrot.lane.b32.xlu1 %v2955_v42, %s5573_s25  ;;  %v5336_v55 = vpop.f32.mrb[32].mxu0  ;;  %v7285_v3 = vld [vmem:[#allocation4 + $0x150] sm:$0xff]  ;;  %v7333_v58 = vld [vmem:[#allocation4 + $0x82] sm:$0xff] }
 0x448   : > { %2924 = vst.msk [vmem:[#allocation5 + $0xe8] sm:$0xff] %vm2774_vm14, %v7279_v62  ;;  %v2705_v43 = vmul.f32 %v5336_v55, %v7027_v52  ;;  %v2661_v14 = vpop.f32.mrb[33].mxu0  ;;  %2923 = vst.msk [vmem:[#allocation5 + $0xe0] sm:$0xff] %vm2774_vm14, %v7285_v3  ;;  %v7341_v42 = vld [vmem:[#allocation4 + $0x9a] sm:$0xff]  ;;  %v7345_v55 = vld [vmem:[#allocation4 + $0x92] sm:$0xff] }
 0x449   : > { %v2704_v44 = vmul.f32 %v7027_v52, %v2661_v14  ;;  %v7349_v14 = vld [vmem:[#allocation4 + $0xb2] sm:$0xff] }
 0x44a   : > { %v2741_v27 = vadd.f32 %v7032_v10, %v2705_v43 }
 0x44b   : > { %v2740_v25 = vadd.f32 %v7032_v10, %v2704_v44  ;;  %v3120_v10 = vld [vmem:[#allocation4 + $0x2] sm:$0xff] }
 0x44c   : > { %v2773_v33 = vmax.f32 %v2741_v27, 0.0  ;;  %v7354_v27 = vld [vmem:[#allocation4 + $0xaa] sm:$0xff] }
 0x44d   : > { %v2772_v60 = vmax.f32 %v2740_v25, 0.0  ;;  %v2958_v61 = vld [vmem:[#allocation4 + $0x171] sm:$0xff] }
 0x44e   : > { %2862 = vst.msk [vmem:[#allocation4 + $0x189] sm:$0xff] %vm2774_vm14, %v2773_v33  ;;  %3053 = vrot.lane.b32.xlu0 %v2958_v61, %s5573_s25  ;;  %v2957_v2 = vld [vmem:[#allocation4 + $0x169] sm:$0xff] }
 0x44f   : > { %v7295_v5 = vld [vmem:[#allocation4 + $0x170] sm:$0xff]  ;;  %2861 = vst.msk [vmem:[#allocation4 + $0x181] sm:$0xff] %vm2774_vm14, %v2772_v60  ;;  %3051 = vrot.lane.b32.xlu1 %v2957_v2, %s5573_s25  ;;  %v7301_v52 = vld [vmem:[#allocation4 + $0x168] sm:$0xff]  ;;  %s5584_s25 = smov 64  }
 0x450   : > { %2926 = vst.msk [vmem:[#allocation5 + $0xf8] sm:$0xff] %vm2774_vm14, %v7295_v5  ;;  %2925 = vst.msk [vmem:[#allocation5 + $0xf0] sm:$0xff] %vm2774_vm14, %v7301_v52  ;;  %v7359_v33 = vld [vmem:[#allocation4 + $0xca] sm:$0xff]  ;;  %v7364_v61 = vld [vmem:[#allocation4 + $0xc2] sm:$0xff] }
 0x452   : > { %3186 = vrot.lane.b32.xlu0 %v3121_v11, %s5575_s29  ;;  %v3139_v11 = vld [vmem:[#allocation4 + $0xe2] sm:$0xff] }
 0x453   : > { %3184 = vrot.lane.b32.xlu1 %v3120_v10, %s5575_s29 }
 0x456   : > { %3190 = vrot.lane.b32.xlu0 %v3123_v15, %s5575_s29  ;;  %v7371_v15 = vld [vmem:[#allocation4 + $0xda] sm:$0xff] }
 0x457   : > { %3188 = vrot.lane.b32.xlu1 %v3122_v26, %s5575_s29 }
 0x45a   : > { %3194 = vrot.lane.b32.xlu0 %v7309_v36, %s5575_s29 }
 0x45b   : > { %3192 = vrot.lane.b32.xlu1 %v7313_v4, %s5575_s29 }
 0x45e   : > { %3198 = vrot.lane.b32.xlu0 %v7317_v41, %s5575_s29 }
 0x45f   : > { %3196 = vrot.lane.b32.xlu1 %v7321_v1, %s5575_s29 }
 0x462   : > { %3202 = vrot.lane.b32.xlu0 %v7325_v40, %s5575_s29 }
 0x463   : > { %3200 = vrot.lane.b32.xlu1 %v7329_v34, %s5575_s29 }
 0x466   : > { %3206 = vrot.lane.b32.xlu0 %v7333_v58, %s5575_s29 }
 0x467   : > { %3204 = vrot.lane.b32.xlu1 %v7337_v31, %s5575_s29 }
 0x46a   : > { %3210 = vrot.lane.b32.xlu0 %v7341_v42, %s5575_s29 }
 0x46b   : > { %3208 = vrot.lane.b32.xlu1 %v7345_v55, %s5575_s29 }
 0x46d   : > { %v2998_v43 = vpop.permute.xlu0 %2997 }
 0x46e   : > { %3091 = vst.msk [vmem:[#allocation5 + $0x18] sm:$0xff] %vm3087_vm0, %v2998_v43  ;;  %3214 = vrot.lane.b32.xlu0 %v7349_v14, %s5575_s29  ;;  %v2996_v44 = vpop.permute.xlu1 %2995  ;;  %v3141_v43 = vld [vmem:[#allocation4 + $0xfa] sm:$0xff] }
 0x46f   : > { %3090 = vst.msk [vmem:[#allocation5 + $0x10] sm:$0xff] %vm3087_vm0, %v2996_v44  ;;  %3212 = vrot.lane.b32.xlu1 %v7354_v27, %s5575_s29 }
 0x471   : > { %v3002_v25 = vpop.permute.xlu0 %3001 }
 0x472   : > { %3093 = vst.msk [vmem:[#allocation5 + $0x28] sm:$0xff] %vm3087_vm0, %v3002_v25  ;;  %3218 = vrot.lane.b32.xlu0 %v7359_v33, %s5575_s29  ;;  %v3000_v60 = vpop.permute.xlu1 %2999  ;;  %v3140_v25 = vld [vmem:[#allocation4 + $0xf2] sm:$0xff] }
 0x473   : > { %3092 = vst.msk [vmem:[#allocation5 + $0x20] sm:$0xff] %vm3087_vm0, %v3000_v60  ;;  %3216 = vrot.lane.b32.xlu1 %v7364_v61, %s5575_s29 }
 0x475   : > { %v3006_v2 = vpop.permute.xlu0 %3005 }
 0x476   : > { %3095 = vst.msk [vmem:[#allocation5 + $0x38] sm:$0xff] %vm3087_vm0, %v3006_v2  ;;  %3222 = vrot.lane.b32.xlu0 %v3139_v11, %s5575_s29  ;;  %v3004_v10 = vpop.permute.xlu1 %3003  ;;  %v3143_v2 = vld [vmem:[#allocation4 + $0x112] sm:$0xff] }
 0x477   : > { %3094 = vst.msk [vmem:[#allocation5 + $0x30] sm:$0xff] %vm3087_vm0, %v3004_v10  ;;  %3220 = vrot.lane.b32.xlu1 %v7371_v15, %s5575_s29  ;;  %v3142_v10 = vld [vmem:[#allocation4 + $0x10a] sm:$0xff] }
 0x479   : > { %v3010_v26 = vpop.permute.xlu0 %3009 }
 0x47a   : > { %3097 = vst.msk [vmem:[#allocation5 + $0x48] sm:$0xff] %vm3087_vm0, %v3010_v26  ;;  %3226 = vrot.lane.b32.xlu0 %v3141_v43, %s5575_s29  ;;  %v3008_v44 = vpop.permute.xlu1 %3007  ;;  %v3145_v43 = vld [vmem:[#allocation4 + $0x12a] sm:$0xff] }
 0x47b   : > { %3096 = vst.msk [vmem:[#allocation5 + $0x40] sm:$0xff] %vm3087_vm0, %v3008_v44  ;;  %3224 = vrot.lane.b32.xlu1 %v3140_v25, %s5575_s29  ;;  %v3144_v25 = vld [vmem:[#allocation4 + $0x122] sm:$0xff] }
 0x47d   : > { %v3014_v60 = vpop.permute.xlu0 %3013 }
 0x47e   : > { %3099 = vst.msk [vmem:[#allocation5 + $0x58] sm:$0xff] %vm3087_vm0, %v3014_v60  ;;  %3230 = vrot.lane.b32.xlu0 %v3143_v2, %s5575_s29  ;;  %v3012_v11 = vpop.permute.xlu1 %3011  ;;  %v3147_v2 = vld [vmem:[#allocation4 + $0x142] sm:$0xff] }
 0x47f   : > { %3098 = vst.msk [vmem:[#allocation5 + $0x50] sm:$0xff] %vm3087_vm0, %v3012_v11  ;;  %3228 = vrot.lane.b32.xlu1 %v3142_v10, %s5575_s29  ;;  %v3146_v10 = vld [vmem:[#allocation4 + $0x13a] sm:$0xff] }
 0x481   : > { %v3018_v26 = vpop.permute.xlu0 %3017 }
 0x482   : > { %3101 = vst.msk [vmem:[#allocation5 + $0x68] sm:$0xff] %vm3087_vm0, %v3018_v26  ;;  %3234 = vrot.lane.b32.xlu0 %v3145_v43, %s5575_s29  ;;  %v3016_v44 = vpop.permute.xlu1 %3015  ;;  %v3149_v43 = vld [vmem:[#allocation4 + $0x15a] sm:$0xff] }
 0x483   : > { %3100 = vst.msk [vmem:[#allocation5 + $0x60] sm:$0xff] %vm3087_vm0, %v3016_v44  ;;  %3232 = vrot.lane.b32.xlu1 %v3144_v25, %s5575_s29  ;;  %v3148_v25 = vld [vmem:[#allocation4 + $0x152] sm:$0xff] }
 0x485   : > { %v3022_v60 = vpop.permute.xlu0 %3021 }
 0x486   : > { %3103 = vst.msk [vmem:[#allocation5 + $0x78] sm:$0xff] %vm3087_vm0, %v3022_v60  ;;  %3238 = vrot.lane.b32.xlu0 %v3147_v2, %s5575_s29  ;;  %v3020_v11 = vpop.permute.xlu1 %3019  ;;  %v3151_v60 = vld [vmem:[#allocation4 + $0x172] sm:$0xff]  ;;  %v3150_v2 = vld [vmem:[#allocation4 + $0x16a] sm:$0xff] }
 0x487   : > { %3102 = vst.msk [vmem:[#allocation5 + $0x70] sm:$0xff] %vm3087_vm0, %v3020_v11  ;;  %3236 = vrot.lane.b32.xlu1 %v3146_v10, %s5575_s29 }
 0x489   : > { %v3026_v26 = vpop.permute.xlu0 %3025 }
 0x48a   : > { %3105 = vst.msk [vmem:[#allocation5 + $0x88] sm:$0xff] %vm3087_vm0, %v3026_v26  ;;  %3242 = vrot.lane.b32.xlu0 %v3149_v43, %s5575_s29  ;;  %v3024_v44 = vpop.permute.xlu1 %3023 }
 0x48b   : > { %3104 = vst.msk [vmem:[#allocation5 + $0x80] sm:$0xff] %vm3087_vm0, %v3024_v44  ;;  %3240 = vrot.lane.b32.xlu1 %v3148_v25, %s5575_s29 }
 0x48e   : > { %3246 = vrot.lane.b32.xlu0 %v3151_v60, %s5575_s29 }
 0x48f   : > { %3244 = vrot.lane.b32.xlu1 %v3150_v2, %s5575_s29  ;;  %s361_s29 = sand.u32 1, %s5559_s14  }
 0x490   : > { %v3030_v11 = vpop.permute.xlu0 %3029  ;;  %s5006_s18 = scalar_lea.sflag [#allocation7], %s361_s29 }
 0x491   : > { %3107 = vst.msk [vmem:[#allocation5 + $0x98] sm:$0xff] %vm3087_vm0, %v3030_v11  ;;  %v3028_v10 = vpop.permute.xlu1 %3027 }
 0x492   : > { %3106 = vst.msk [vmem:[#allocation5 + $0x90] sm:$0xff] %vm3087_vm0, %v3028_v10  ;;  %3379 = vrot.lane.b32.xlu0 %v7061_v57, %s5578_s27 }
 0x493   : > { %3377 = vrot.lane.b32.xlu1 %v7069_v30, %s5578_s27 }
 0x496   : > { %3383 = vrot.lane.b32.xlu0 %v7083_v23, %s5578_s27 }
 0x497   : > { %3381 = vrot.lane.b32.xlu1 %v7091_v29, %s5578_s27 }
 0x498   : > { %v3034_v26 = vpop.permute.xlu0 %3033 }
 0x499   : > { %3109 = vst.msk [vmem:[#allocation5 + $0xa8] sm:$0xff] %vm3087_vm0, %v3034_v26  ;;  %v3032_v43 = vpop.permute.xlu1 %3031 }
 0x49a   : > { %3108 = vst.msk [vmem:[#allocation5 + $0xa0] sm:$0xff] %vm3087_vm0, %v3032_v43  ;;  %3387 = vrot.lane.b32.xlu0 %v7105_v21, %s5578_s27 }
 0x49b   : > { %3385 = vrot.lane.b32.xlu1 %v7113_v54, %s5578_s27 }
 0x49e   : > { %3391 = vrot.lane.b32.xlu0 %v7127_v22, %s5578_s27 }
 0x49f   : > { %3389 = vrot.lane.b32.xlu1 %v7135_v49, %s5578_s27 }
 0x4a0   : > { %v3038_v57 = vpop.permute.xlu0 %3037 }
 0x4a1   : > { %3111 = vst.msk [vmem:[#allocation5 + $0xb8] sm:$0xff] %vm3087_vm0, %v3038_v57  ;;  %v3036_v30 = vpop.permute.xlu1 %3035  ;;  %v4504_v57 = vld [vmem:[%s8143_s6] sm:$0xff] }
 0x4a2   : > { %3110 = vst.msk [vmem:[#allocation5 + $0xb0] sm:$0xff] %vm3087_vm0, %v3036_v30  ;;  %3395 = vrot.lane.b32.xlu0 %v7144_v9, %s5578_s27 }
 0x4a3   : > { %3393 = vrot.lane.b32.xlu1 %v7151_v46, %s5578_s27 }
 0x4a6   : > { %3399 = vrot.lane.b32.xlu0 %v7157_v8, %s5578_s27 }
 0x4a7   : > { %3397 = vrot.lane.b32.xlu1 %v7164_v51, %s5578_s27 }
 0x4a8   : > { %v3042_v23 = vpop.permute.xlu0 %3041 }
 0x4a9   : > { %3113 = vst.msk [vmem:[#allocation5 + $0xc8] sm:$0xff] %vm3087_vm0, %v3042_v23  ;;  %v3040_v29 = vpop.permute.xlu1 %3039 }
 0x4aa   : > { %3112 = vst.msk [vmem:[#allocation5 + $0xc0] sm:$0xff] %vm3087_vm0, %v3040_v29  ;;  %3403 = vrot.lane.b32.xlu0 %v7172_v48, %s5578_s27 }
 0x4ab   : > { %3401 = vrot.lane.b32.xlu1 %v7177_v38, %s5578_s27 }
 0x4ae   : > { %3407 = vrot.lane.b32.xlu0 %v7184_v13, %s5578_s27 }
 0x4af   : > { %3405 = vrot.lane.b32.xlu1 %v7190_v20, %s5578_s27 }
 0x4b0   : > { %v3046_v44 = vpop.permute.xlu0 %3045 }
 0x4b1   : > { %3115 = vst.msk [vmem:[#allocation5 + $0xd8] sm:$0xff] %vm3087_vm0, %v3046_v44  ;;  %v3044_v25 = vpop.permute.xlu1 %3043 }
 0x4b2   : > { %3114 = vst.msk [vmem:[#allocation5 + $0xd0] sm:$0xff] %vm3087_vm0, %v3044_v25  ;;  %3411 = vrot.lane.b32.xlu0 %v7199_v16, %s5578_s27 }
 0x4b3   : > { %3409 = vrot.lane.b32.xlu1 %v7205_v59, %s5578_s27 }
 0x4b6   : > { %3415 = vrot.lane.b32.xlu0 %v7215_v39, %s5578_s27 }
 0x4b7   : > { %3413 = vrot.lane.b32.xlu1 %v7221_v45, %s5578_s27 }
 0x4b8   : > { %v3050_v60 = vpop.permute.xlu0 %3049 }
 0x4b9   : > { %3117 = vst.msk [vmem:[#allocation5 + $0xe8] sm:$0xff] %vm3087_vm0, %v3050_v60  ;;  %v3048_v2 = vpop.permute.xlu1 %3047  ;;  %v4508_v60 = vld [vmem:[%s8143_s6 + $0x20] sm:$0xff] }
 0x4ba   : > { %3116 = vst.msk [vmem:[#allocation5 + $0xe0] sm:$0xff] %vm3087_vm0, %v3048_v2  ;;  %3419 = vrot.lane.b32.xlu0 %v7231_v6, %s5578_s27  ;;  %v4509_v2 = vld [vmem:[%s8143_s6 + $0x28] sm:$0xff] }
 0x4bb   : > { %3417 = vrot.lane.b32.xlu1 %v7237_v47, %s5578_s27 }
 0x4be   : > { %3423 = vrot.lane.b32.xlu0 %v7247_v17, %s5578_s27 }
 0x4bf   : > { %3421 = vrot.lane.b32.xlu1 %v7253_v24, %s5578_s27 }
 0x4c0   : > { %v3054_v11 = vpop.permute.xlu0 %3053 }
 0x4c1   : > { %3119 = vst.msk [vmem:[#allocation5 + $0xf8] sm:$0xff] %vm3087_vm0, %v3054_v11  ;;  %v3052_v10 = vpop.permute.xlu1 %3051  ;;  %v5431_v11 = vpack.c.bf16 %v4509_v2, %v4508_v60 }
 0x4c2   : > { %3118 = vst.msk [vmem:[#allocation5 + $0xf0] sm:$0xff] %vm3087_vm0, %v3052_v10  ;;  %3427 = vrot.lane.b32.xlu0 %v7263_v19, %s5578_s27 }
 0x4c3   : > { %3425 = vrot.lane.b32.xlu1 %v7269_v56, %s5578_s27 }
 0x4c4   : > { %v3187_v6 = vpop.permute.xlu0 %3186 }
 0x4c5   : > { %3282 = vst.msk [vmem:[#allocation5 + $0x8] sm:$0xff] %vm3280_vm1, %v3187_v6  ;;  %v3185_v47 = vpop.permute.xlu1 %3184 }
 0x4c6   : > { %3281 = vst.msk [vmem:[#allocation5] sm:$0xff] %vm3280_vm1, %v3185_v47  ;;  %3431 = vrot.lane.b32.xlu0 %v7279_v62, %s5578_s27  ;;  %v3344_v62 = vld [vmem:[#allocation4 + $0x188] sm:$0xff] }
 0x4c7   : > { %3429 = vrot.lane.b32.xlu1 %v7285_v3, %s5578_s27  ;;  %v3343_v3 = vld [vmem:[#allocation4 + $0x180] sm:$0xff]  ;;  %v4511_v47 = vld [vmem:[%s8143_s6 + $0x38] sm:$0xff] }
 0x4c8   : > { %v3191_v17 = vpop.permute.xlu0 %3190 }
 0x4c9   : > { %3284 = vst.msk [vmem:[#allocation5 + $0x18] sm:$0xff] %vm3280_vm1, %v3191_v17  ;;  %v3189_v24 = vpop.permute.xlu1 %3188 }
 0x4ca   : > { %3283 = vst.msk [vmem:[#allocation5 + $0x10] sm:$0xff] %vm3280_vm1, %v3189_v24  ;;  %3435 = vrot.lane.b32.xlu0 %v7295_v5, %s5578_s27 }
 0x4cb   : > { %3433 = vrot.lane.b32.xlu1 %v7301_v52, %s5578_s27 }
 0x4cc   : > { %v3195_v19 = vpop.permute.xlu0 %3194 }
 0x4cd   : > { %3286 = vst.msk [vmem:[#allocation5 + $0x28] sm:$0xff] %vm3280_vm1, %v3195_v19  ;;  %v3193_v56 = vpop.permute.xlu1 %3192 }
 0x4ce   : > { %3285 = vst.msk [vmem:[#allocation5 + $0x20] sm:$0xff] %vm3280_vm1, %v3193_v56  ;;  %3439 = vrot.lane.b32.xlu0 %v3344_v62, %s5578_s27 }
 0x4cf   : > { %3437 = vrot.lane.b32.xlu1 %v3343_v3, %s5578_s27  ;;  %s5582_s27 = smov 48  }
 0x4d0   : > { %v3199_v26 = vpop.permute.xlu0 %3198 }
 0x4d1   : > { %3288 = vst.msk [vmem:[#allocation5 + $0x38] sm:$0xff] %vm3280_vm1, %v3199_v26  ;;  %v3197_v43 = vpop.permute.xlu1 %3196 }
 0x4d2   : > { %3287 = vst.msk [vmem:[#allocation5 + $0x30] sm:$0xff] %vm3280_vm1, %v3197_v43  ;;  %3572 = vrot.lane.b32.xlu0 %v7053_v7, %s5580_s0  ;;  %v4505_v7 = vld [vmem:[%s8143_s6 + $0x8] sm:$0xff] }
 0x4d3   : > { %3570 = vrot.lane.b32.xlu1 %v7059_v28, %s5580_s0  ;;  %v5423_v28 = vpack.c.bf16 %v4505_v7, %v4504_v57  ;;  %v3514_v57 = vld [vmem:[#allocation4 + $0x79] sm:$0xff] }
 0x4d4   : > { %v3203_v5 = vpop.permute.xlu0 %3202 }
 0x4d5   : > { %3290 = vst.msk [vmem:[#allocation5 + $0x48] sm:$0xff] %vm3280_vm1, %v3203_v5  ;;  %v3201_v52 = vpop.permute.xlu1 %3200  ;;  %5439 = vmatprep.subr.bf16.mxu1 %v5423_v28  ;;  %5424 = vmatprep.subr.bf16.mxu0 %v5423_v28 }
 0x4d6   : > { %3289 = vst.msk [vmem:[#allocation5 + $0x40] sm:$0xff] %vm3280_vm1, %v3201_v52  ;;  %3576 = vrot.lane.b32.xlu0 %v7075_v32, %s5580_s0  ;;  %5444 = vmatpush3.bf16.msra.mxu1 %v5423_v28  ;;  %v4506_v32 = vld [vmem:[%s8143_s6 + $0x10] sm:$0xff] }
 0x4d7   : > { %3574 = vrot.lane.b32.xlu1 %v7081_v18, %s5580_s0  ;;  %v4507_v18 = vld [vmem:[%s8143_s6 + $0x18] sm:$0xff]  ;;  %5426 = vmatpush3.bf16.msra.mxu0 %v5423_v28 }
 0x4d8   : > { %v3207_v30 = vpop.permute.xlu0 %3206  ;;  %v5427_v29 = vpack.c.bf16 %v4507_v18, %v4506_v32 }
 0x4d9   : > { %3292 = vst.msk [vmem:[#allocation5 + $0x58] sm:$0xff] %vm3280_vm1, %v3207_v30  ;;  %v3205_v23 = vpop.permute.xlu1 %3204 }
 0x4da   : > { %3291 = vst.msk [vmem:[#allocation5 + $0x50] sm:$0xff] %vm3280_vm1, %v3205_v23  ;;  %3580 = vrot.lane.b32.xlu0 %v7097_v50, %s5580_s0  ;;  %5440 = vmatprep.subr.bf16.mxu1 %v5427_v29 }
 0x4db   : > { %3578 = vrot.lane.b32.xlu1 %v7103_v53, %s5580_s0  ;;  %5428 = vmatprep.subr.bf16.mxu0 %v5427_v29 }
 0x4dc   : > { %v3211_v44 = vpop.permute.xlu0 %3210  ;;  %5445 = vmatpush3.bf16.msra.mxu1 %v5427_v29  ;;  %5430 = vmatpush3.bf16.msra.mxu0 %v5427_v29 }
 0x4dd   : > { %3294 = vst.msk [vmem:[#allocation5 + $0x68] sm:$0xff] %vm3280_vm1, %v3211_v44  ;;  %v3209_v25 = vpop.permute.xlu1 %3208  ;;  %5441 = vmatprep.subr.bf16.mxu1 %v5431_v11  ;;  %5432 = vmatprep.subr.bf16.mxu0 %v5431_v11  ;;  %v3516_v44 = vld [vmem:[#allocation4 + $0x91] sm:$0xff] }
 0x4de   : > { %3293 = vst.msk [vmem:[#allocation5 + $0x60] sm:$0xff] %vm3280_vm1, %v3209_v25  ;;  %3767 = vrot.lane.b32.xlu0 %v7313_v4, %s5581_s12  ;;  %v4510_v4 = vld [vmem:[%s8143_s6 + $0x30] sm:$0xff] }
 0x4df   : > { %3582 = vrot.lane.b32.xlu1 %v7125_v63, %s5580_s0  ;;  %v5435_v17 = vpack.c.bf16 %v4511_v47, %v4510_v4  ;;  %v3518_v47 = vld [vmem:[#allocation4 + $0xa9] sm:$0xff] }
 0x4e0   : > { %v3215_v10 = vpop.permute.xlu0 %3214  ;;  %5446 = vmatpush3.bf16.msra.mxu1 %v5431_v11  ;;  %5434 = vmatpush3.bf16.msra.mxu0 %v5431_v11 }
 0x4e1   : > { %3296 = vst.msk [vmem:[#allocation5 + $0x78] sm:$0xff] %vm3280_vm1, %v3215_v10  ;;  %v3213_v6 = vpop.permute.xlu1 %3212  ;;  %5442 = vmatprep.subr.bf16.mxu1 %v5435_v17  ;;  %5436 = vmatprep.subr.bf16.mxu0 %v5435_v17 }
 0x4e2   : > { %3295 = vst.msk [vmem:[#allocation5 + $0x70] sm:$0xff] %vm3280_vm1, %v3213_v6  ;;  %3961 = vrot.lane.b32.xlu0 %v7113_v54, %s5582_s27  ;;  %v4512_v54 = vld [vmem:[%s8143_s6 + $0x40] sm:$0xff] }
 0x4e3   : > { %3769 = vrot.lane.b32.xlu1 %v7309_v36, %s5581_s12 }
 0x4e4   : > { %v3219_v24 = vpop.permute.xlu0 %3218  ;;  %5447 = vmatpush3.bf16.msra.mxu1 %v5435_v17  ;;  %5438 = vmatpush3.bf16.msra.mxu0 %v5435_v17 }
 0x4e5   : > { %3298 = vst.msk [vmem:[#allocation5 + $0x88] sm:$0xff] %vm3280_vm1, %v3219_v24  ;;  %v3217_v19 = vpop.permute.xlu1 %3216  ;;  %5443 = vmatprep.subr.mxu1 %v4512_v54  ;;  %5353 = vmatprep.subr.mxu0 %v4512_v54 }
 0x4e6   : > { %3297 = vst.msk [vmem:[#allocation5 + $0x80] sm:$0xff] %vm3280_vm1, %v3217_v19  ;;  %4154 = vrot.lane.b32.xlu0 %v7103_v53, %s5583_s11 }
 0x4e7   : > { %3963 = vrot.lane.b32.xlu1 %v7105_v21, %s5582_s27 }
 0x4e8   : > { %v3223_v36 = vpop.permute.xlu0 %3222  ;;  %5448 = vmatpush3.msra.mxu1 %v4512_v54  ;;  %5354 = vmatpush3.msra.mxu0 %v4512_v54 }
 0x4e9   : > { %3300 = vst.msk [vmem:[#allocation5 + $0x98] sm:$0xff] %vm3280_vm1, %v3223_v36  ;;  %v3221_v56 = vpop.permute.xlu1 %3220 }
 0x4ea   : > { %3299 = vst.msk [vmem:[#allocation5 + $0x90] sm:$0xff] %vm3280_vm1, %v3221_v56  ;;  %4347 = vrot.lane.b32.xlu0 %v7321_v1, %s5584_s25 }
 0x4eb   : > { %4156 = vrot.lane.b32.xlu1 %v7097_v50, %s5583_s11 }
 0x4ec   : > { %v3227_v53 = vpop.permute.xlu0 %3226 }
 0x4ed   : > { %3302 = vst.msk [vmem:[#allocation5 + $0xa8] sm:$0xff] %vm3280_vm1, %v3227_v53  ;;  %v3225_v21 = vpop.permute.xlu1 %3224 }
 0x4ee   : > { %3301 = vst.msk [vmem:[#allocation5 + $0xa0] sm:$0xff] %vm3280_vm1, %v3225_v21  ;;  %4349 = vrot.lane.b32.xlu0 %v7317_v41, %s5584_s25  ;;  %v3520_v21 = vld [vmem:[#allocation4 + $0xc1] sm:$0xff] }
 0x4ef   : > { %3771 = vrot.lane.b32.xlu1 %v7321_v1, %s5581_s12 }
 0x4f0   : > { %v3231_v62 = vpop.permute.xlu0 %3230 }
 0x4f1   : > { %3304 = vst.msk [vmem:[#allocation5 + $0xb8] sm:$0xff] %vm3280_vm1, %v3231_v62  ;;  %v3229_v3 = vpop.permute.xlu1 %3228 }
 0x4f2   : > { %3303 = vst.msk [vmem:[#allocation5 + $0xb0] sm:$0xff] %vm3280_vm1, %v3229_v3  ;;  %3965 = vrot.lane.b32.xlu0 %v7135_v49, %s5582_s27 }
 0x4f3   : > { %3773 = vrot.lane.b32.xlu1 %v7317_v41, %s5581_s12 }
 0x4f4   : > { %v3235_v50 = vpop.permute.xlu0 %3234 }
 0x4f5   : > { %3306 = vst.msk [vmem:[#allocation5 + $0xc8] sm:$0xff] %vm3280_vm1, %v3235_v50  ;;  %v3233_v26 = vpop.permute.xlu1 %3232 }
 0x4f6   : > { %3305 = vst.msk [vmem:[#allocation5 + $0xc0] sm:$0xff] %vm3280_vm1, %v3233_v26  ;;  %4158 = vrot.lane.b32.xlu0 %v7125_v63, %s5583_s11 }
 0x4f7   : > { %3967 = vrot.lane.b32.xlu1 %v7127_v22, %s5582_s27 }
 0x4f8   : > { %v3239_v1 = vpop.permute.xlu0 %3238 }
 0x4f9   : > { %3308 = vst.msk [vmem:[#allocation5 + $0xd8] sm:$0xff] %vm3280_vm1, %v3239_v1  ;;  %v3237_v43 = vpop.permute.xlu1 %3236 }
 0x4fa   : > { %3307 = vst.msk [vmem:[#allocation5 + $0xd0] sm:$0xff] %vm3280_vm1, %v3237_v43  ;;  %4351 = vrot.lane.b32.xlu0 %v7329_v34, %s5584_s25 }
 0x4fb   : > { %4160 = vrot.lane.b32.xlu1 %v7119_v37, %s5583_s11 }
 0x4fc   : > { %v3243_v49 = vpop.permute.xlu0 %3242 }
 0x4fd   : > { %3310 = vst.msk [vmem:[#allocation5 + $0xe8] sm:$0xff] %vm3280_vm1, %v3243_v49  ;;  %v3241_v41 = vpop.permute.xlu1 %3240 }
 0x4fe   : > { %3309 = vst.msk [vmem:[#allocation5 + $0xe0] sm:$0xff] %vm3280_vm1, %v3241_v41  ;;  %3775 = vrot.lane.b32.xlu0 %v7329_v34, %s5581_s12  ;;  %v3522_v41 = vld [vmem:[#allocation4 + $0xd9] sm:$0xff] }
 0x4ff   : > { %3584 = vrot.lane.b32.xlu1 %v7119_v37, %s5580_s0 }
 0x500   : > { %v3247_v63 = vpop.permute.xlu0 %3246 }
 0x501   : > { %3312 = vst.msk [vmem:[#allocation5 + $0xf8] sm:$0xff] %vm3280_vm1, %v3247_v63  ;;  %v3245_v22 = vpop.permute.xlu1 %3244 }
 0x502   : > { %3311 = vst.msk [vmem:[#allocation5 + $0xf0] sm:$0xff] %vm3280_vm1, %v3245_v22  ;;  %3777 = vrot.lane.b32.xlu0 %v7325_v40, %s5581_s12 }
 0x503   : > { %4353 = vrot.lane.b32.xlu1 %v7325_v40, %s5584_s25 }
 0x504   : > { %v3380_v5 = vpop.permute.xlu0 %3379 }
 0x505   : > { %3475 = vst.msk [vmem:[#allocation5 + $0x8] sm:$0xff] %vm3473_vm2, %v3380_v5  ;;  %v3378_v34 = vpop.permute.xlu1 %3377  ;;  %v3699_v5 = vld [vmem:[#allocation4 + $0x1a] sm:$0xff] }
 0x506   : > { %3474 = vst.msk [vmem:[#allocation5] sm:$0xff] %vm3473_vm2, %v3378_v34  ;;  %3971 = vrot.lane.b32.xlu0 %v7144_v9, %s5582_s27  ;;  %v4093_v9 = vld [vmem:[#allocation4 + $0x81] sm:$0xff] }
 0x507   : > { %3969 = vrot.lane.b32.xlu1 %v7151_v46, %s5582_s27 }
 0x508   : > { %v3384_v37 = vpop.permute.xlu0 %3383 }
 0x509   : > { %3477 = vst.msk [vmem:[#allocation5 + $0x18] sm:$0xff] %vm3473_vm2, %v3384_v37  ;;  %v3382_v52 = vpop.permute.xlu1 %3381 }
 0x50a   : > { %3476 = vst.msk [vmem:[#allocation5 + $0x10] sm:$0xff] %vm3473_vm2, %v3382_v52  ;;  %3586 = vrot.lane.b32.xlu0 %v3514_v57, %s5580_s0  ;;  %v4294_v52 = vld [vmem:[#allocation4 + $0xe2] sm:$0xff] }
 0x50b   : > { %4162 = vrot.lane.b32.xlu1 %v3514_v57, %s5583_s11  ;;  %v3715_v57 = vld [vmem:[#allocation4 + $0xda] sm:$0xff] }
 0x50c   : > { %v3388_v40 = vpop.permute.xlu0 %3387 }
 0x50d   : > { %3479 = vst.msk [vmem:[#allocation5 + $0x28] sm:$0xff] %vm3473_vm2, %v3388_v40  ;;  %v3386_v7 = vpop.permute.xlu1 %3385 }
 0x50e   : > { %3478 = vst.msk [vmem:[#allocation5 + $0x20] sm:$0xff] %vm3473_vm2, %v3386_v7  ;;  %4355 = vrot.lane.b32.xlu0 %v7337_v31, %s5584_s25 }
 0x50f   : > { %4164 = vrot.lane.b32.xlu1 %v4093_v9, %s5583_s11 }
 0x510   : > { %v3392_v46 = vpop.permute.xlu0 %3391 }
 0x511   : > { %3481 = vst.msk [vmem:[#allocation5 + $0x38] sm:$0xff] %vm3473_vm2, %v3392_v46  ;;  %v3390_v28 = vpop.permute.xlu1 %3389  ;;  %v3700_v46 = vld [vmem:[#allocation4 + $0x22] sm:$0xff] }
 0x512   : > { %3480 = vst.msk [vmem:[#allocation5 + $0x30] sm:$0xff] %vm3473_vm2, %v3390_v28  ;;  %3779 = vrot.lane.b32.xlu0 %v7337_v31, %s5581_s12 }
 0x513   : > { %3588 = vrot.lane.b32.xlu1 %v4093_v9, %s5580_s0 }
 0x514   : > { %v3396_v30 = vpop.permute.xlu0 %3395 }
 0x515   : > { %3483 = vst.msk [vmem:[#allocation5 + $0x48] sm:$0xff] %vm3473_vm2, %v3396_v30  ;;  %v3394_v23 = vpop.permute.xlu1 %3393 }
 0x516   : > { %3482 = vst.msk [vmem:[#allocation5 + $0x40] sm:$0xff] %vm3473_vm2, %v3394_v23  ;;  %3781 = vrot.lane.b32.xlu0 %v7333_v58, %s5581_s12  ;;  %v3893_v23 = vld [vmem:[#allocation4 + $0x30] sm:$0xff] }
 0x517   : > { %4357 = vrot.lane.b32.xlu1 %v7333_v58, %s5584_s25 }
 0x518   : > { %v3400_v32 = vpop.permute.xlu0 %3399 }
 0x519   : > { %3485 = vst.msk [vmem:[#allocation5 + $0x58] sm:$0xff] %vm3473_vm2, %v3400_v32  ;;  %v3398_v18 = vpop.permute.xlu1 %3397 }
 0x51a   : > { %3484 = vst.msk [vmem:[#allocation5 + $0x50] sm:$0xff] %vm3473_vm2, %v3398_v18  ;;  %3975 = vrot.lane.b32.xlu0 %v7157_v8, %s5582_s27  ;;  %v4095_v8 = vld [vmem:[#allocation4 + $0x99] sm:$0xff] }
 0x51b   : > { %3973 = vrot.lane.b32.xlu1 %v7164_v51, %s5582_s27 }
 0x51c   : > { %v3404_v31 = vpop.permute.xlu0 %3403 }
 0x51d   : > { %3487 = vst.msk [vmem:[#allocation5 + $0x68] sm:$0xff] %vm3473_vm2, %v3404_v31  ;;  %v3402_v29 = vpop.permute.xlu1 %3401  ;;  %v3894_v31 = vld [vmem:[#allocation4 + $0x38] sm:$0xff] }
 0x51e   : > { %3486 = vst.msk [vmem:[#allocation5 + $0x60] sm:$0xff] %vm3473_vm2, %v3402_v29  ;;  %3590 = vrot.lane.b32.xlu0 %v3516_v44, %s5580_s0 }
 0x51f   : > { %4166 = vrot.lane.b32.xlu1 %v3516_v44, %s5583_s11 }
 0x520   : > { %v3408_v58 = vpop.permute.xlu0 %3407 }
 0x521   : > { %3489 = vst.msk [vmem:[#allocation5 + $0x78] sm:$0xff] %vm3473_vm2, %v3408_v58  ;;  %v3406_v25 = vpop.permute.xlu1 %3405  ;;  %v4102_v58 = vld [vmem:[#allocation4 + $0xf1] sm:$0xff] }
 0x522   : > { %3488 = vst.msk [vmem:[#allocation5 + $0x70] sm:$0xff] %vm3473_vm2, %v3406_v25  ;;  %4359 = vrot.lane.b32.xlu0 %v7345_v55, %s5584_s25  ;;  %v4086_v25 = vld [vmem:[#allocation4 + $0x31] sm:$0xff] }
 0x523   : > { %4168 = vrot.lane.b32.xlu1 %v4095_v8, %s5583_s11 }
 0x524   : > { %v3412_v51 = vpop.permute.xlu0 %3411 }
 0x525   : > { %3491 = vst.msk [vmem:[#allocation5 + $0x88] sm:$0xff] %vm3473_vm2, %v3412_v51  ;;  %v3410_v60 = vpop.permute.xlu1 %3409  ;;  %v4087_v51 = vld [vmem:[#allocation4 + $0x39] sm:$0xff] }
 0x526   : > { %3490 = vst.msk [vmem:[#allocation5 + $0x80] sm:$0xff] %vm3473_vm2, %v3410_v60  ;;  %3783 = vrot.lane.b32.xlu0 %v7345_v55, %s5581_s12 }
 0x527   : > { %3592 = vrot.lane.b32.xlu1 %v4095_v8, %s5580_s0 }
 0x528   : > { %v3416_v2 = vpop.permute.xlu0 %3415 }
 0x529   : > { %3493 = vst.msk [vmem:[#allocation5 + $0x98] sm:$0xff] %vm3473_vm2, %v3416_v2  ;;  %v3414_v11 = vpop.permute.xlu1 %3413 }
 0x52a   : > { %3492 = vst.msk [vmem:[#allocation5 + $0x90] sm:$0xff] %vm3473_vm2, %v3414_v11  ;;  %3785 = vrot.lane.b32.xlu0 %v7341_v42, %s5581_s12  ;;  %v4279_v11 = vld [vmem:[#allocation4 + $0x32] sm:$0xff] }
 0x52b   : > { %4361 = vrot.lane.b32.xlu1 %v7341_v42, %s5584_s25 }
 0x52c   : > { %v3420_v10 = vpop.permute.xlu0 %3419 }
 0x52d   : > { %3495 = vst.msk [vmem:[#allocation5 + $0xa8] sm:$0xff] %vm3473_vm2, %v3420_v10  ;;  %v3418_v6 = vpop.permute.xlu1 %3417 }
 0x52e   : > { %3494 = vst.msk [vmem:[#allocation5 + $0xa0] sm:$0xff] %vm3473_vm2, %v3418_v6  ;;  %3979 = vrot.lane.b32.xlu0 %v7172_v48, %s5582_s27  ;;  %v4097_v48 = vld [vmem:[#allocation4 + $0xb1] sm:$0xff]  ;;  %v4103_v6 = vld [vmem:[#allocation4 + $0xf9] sm:$0xff] }
 0x52f   : > { %3977 = vrot.lane.b32.xlu1 %v7177_v38, %s5582_s27 }
 0x530   : > { %v3424_v55 = vpop.permute.xlu0 %3423 }
 0x531   : > { %3497 = vst.msk [vmem:[#allocation5 + $0xb8] sm:$0xff] %vm3473_vm2, %v3424_v55  ;;  %v3422_v4 = vpop.permute.xlu1 %3421 }
 0x532   : > { %3496 = vst.msk [vmem:[#allocation5 + $0xb0] sm:$0xff] %vm3473_vm2, %v3422_v4  ;;  %3594 = vrot.lane.b32.xlu0 %v3518_v47, %s5580_s0 }
 0x533   : > { %4170 = vrot.lane.b32.xlu1 %v3518_v47, %s5583_s11  ;;  %v4295_v47 = vld [vmem:[#allocation4 + $0xf2] sm:$0xff] }
 0x534   : > { %v3428_v42 = vpop.permute.xlu0 %3427 }
 0x535   : > { %3499 = vst.msk [vmem:[#allocation5 + $0xc8] sm:$0xff] %vm3473_vm2, %v3428_v42  ;;  %v3426_v17 = vpop.permute.xlu1 %3425 }
 0x536   : > { %3498 = vst.msk [vmem:[#allocation5 + $0xc0] sm:$0xff] %vm3473_vm2, %v3426_v17  ;;  %4363 = vrot.lane.b32.xlu0 %v7354_v27, %s5584_s25 }
 0x537   : > { %4172 = vrot.lane.b32.xlu1 %v4097_v48, %s5583_s11 }
 0x538   : > { %v3432_v38 = vpop.permute.xlu0 %3431 }
 0x539   : > { %3501 = vst.msk [vmem:[#allocation5 + $0xd8] sm:$0xff] %vm3473_vm2, %v3432_v38  ;;  %v3430_v24 = vpop.permute.xlu1 %3429 }
 0x53a   : > { %3500 = vst.msk [vmem:[#allocation5 + $0xd0] sm:$0xff] %vm3473_vm2, %v3430_v24  ;;  %3787 = vrot.lane.b32.xlu0 %v7354_v27, %s5581_s12 }
 0x53b   : > { %3596 = vrot.lane.b32.xlu1 %v4097_v48, %s5580_s0  ;;  %v4280_v48 = vld [vmem:[#allocation4 + $0x3a] sm:$0xff] }
 0x53c   : > { %v3436_v19 = vpop.permute.xlu0 %3435 }
 0x53d   : > { %3503 = vst.msk [vmem:[#allocation5 + $0xe8] sm:$0xff] %vm3473_vm2, %v3436_v19  ;;  %v3434_v54 = vpop.permute.xlu1 %3433 }
 0x53e   : > { %3502 = vst.msk [vmem:[#allocation5 + $0xe0] sm:$0xff] %vm3473_vm2, %v3434_v54  ;;  %3789 = vrot.lane.b32.xlu0 %v7349_v14, %s5581_s12  ;;  %v3718_v54 = vld [vmem:[#allocation4 + $0xfa] sm:$0xff] }
 0x53f   : > { %4365 = vrot.lane.b32.xlu1 %v7349_v14, %s5584_s25 }
 0x540   : > { %v3440_v36 = vpop.permute.xlu0 %3439 }
 0x541   : > { %3505 = vst.msk [vmem:[#allocation5 + $0xf8] sm:$0xff] %vm3473_vm2, %v3440_v36  ;;  %v3438_v56 = vpop.permute.xlu1 %3437 }
 0x542   : > { %3504 = vst.msk [vmem:[#allocation5 + $0xf0] sm:$0xff] %vm3473_vm2, %v3438_v56  ;;  %3983 = vrot.lane.b32.xlu0 %v7184_v13, %s5582_s27  ;;  %v4099_v13 = vld [vmem:[#allocation4 + $0xc9] sm:$0xff] }
 0x543   : > { %3981 = vrot.lane.b32.xlu1 %v7190_v20, %s5582_s27 }
 0x544   : > { %v3573_v27 = vpop.permute.xlu0 %3572 }
 0x545   : > { %3668 = vst.msk [vmem:[#allocation5 + $0x8] sm:$0xff] %vm3666_vm3, %v3573_v27  ;;  %v3571_v53 = vpop.permute.xlu1 %3570  ;;  %v3912_v27 = vld [vmem:[#allocation4 + $0x110] sm:$0xff] }
 0x546   : > { %3667 = vst.msk [vmem:[#allocation5] sm:$0xff] %vm3666_vm3, %v3571_v53  ;;  %3598 = vrot.lane.b32.xlu0 %v3520_v21, %s5580_s0  ;;  %v3911_v53 = vld [vmem:[#allocation4 + $0x108] sm:$0xff] }
 0x547   : > { %4174 = vrot.lane.b32.xlu1 %v3520_v21, %s5583_s11 }
 0x548   : > { %v3577_v14 = vpop.permute.xlu0 %3576 }
 0x549   : > { %3670 = vst.msk [vmem:[#allocation5 + $0x18] sm:$0xff] %vm3666_vm3, %v3577_v14  ;;  %v3575_v62 = vpop.permute.xlu1 %3574 }
 0x54a   : > { %3669 = vst.msk [vmem:[#allocation5 + $0x10] sm:$0xff] %vm3666_vm3, %v3575_v62  ;;  %4367 = vrot.lane.b32.xlu0 %v7364_v61, %s5584_s25  ;;  %v3526_v62 = vld [vmem:[#allocation4 + $0x109] sm:$0xff] }
 0x54b   : > { %4176 = vrot.lane.b32.xlu1 %v4099_v13, %s5583_s11 }
 0x54c   : > { %v3581_v20 = vpop.permute.xlu0 %3580 }
 0x54d   : > { %3672 = vst.msk [vmem:[#allocation5 + $0x28] sm:$0xff] %vm3666_vm3, %v3581_v20  ;;  %v3579_v3 = vpop.permute.xlu1 %3578 }
 0x54e   : > { %3671 = vst.msk [vmem:[#allocation5 + $0x20] sm:$0xff] %vm3666_vm3, %v3579_v3  ;;  %3791 = vrot.lane.b32.xlu0 %v7364_v61, %s5581_s12 }
 0x54f   : > { %3600 = vrot.lane.b32.xlu1 %v4099_v13, %s5580_s0 }
 0x550   : > { %v3768_v50 = vpop.permute.xlu0 %3767 }
 0x551   : > { %3862 = vst.msk [vmem:[#allocation5 + $0x10] sm:$0xff] %vm3859_vm4, %v3768_v50  ;;  %v3583_v26 = vpop.permute.xlu1 %3582  ;;  %v4297_v50 = vld [vmem:[#allocation4 + $0x10a] sm:$0xff] }
 0x552   : > { %3673 = vst.msk [vmem:[#allocation5 + $0x30] sm:$0xff] %vm3666_vm3, %v3583_v26  ;;  %3793 = vrot.lane.b32.xlu0 %v7359_v33, %s5581_s12  ;;  %v4105_v26 = vld [vmem:[#allocation4 + $0x111] sm:$0xff] }
 0x553   : > { %4369 = vrot.lane.b32.xlu1 %v7359_v33, %s5584_s25 }
 0x554   : > { %v3962_v1 = vpop.permute.xlu0 %3961 }
 0x555   : > { %4056 = vst.msk [vmem:[#allocation5 + $0x10] sm:$0xff] %vm4053_vm5, %v3962_v1  ;;  %v3770_v61 = vpop.permute.xlu1 %3769 }
 0x556   : > { %3863 = vst.msk [vmem:[#allocation5 + $0x18] sm:$0xff] %vm3859_vm4, %v3770_v61  ;;  %3987 = vrot.lane.b32.xlu0 %v7199_v16, %s5582_s27 }
 0x557   : > { %3985 = vrot.lane.b32.xlu1 %v7205_v59, %s5582_s27  ;;  %v4101_v59 = vld [vmem:[#allocation4 + $0xe1] sm:$0xff] }
 0x558   : > { %v4155_v43 = vpop.permute.xlu0 %4154 }
 0x559   : > { %4249 = vst.msk [vmem:[#allocation5 + $0x10] sm:$0xff] %vm4246_vm6, %v4155_v43  ;;  %v3964_v49 = vpop.permute.xlu1 %3963 }
 0x55a   : > { %4057 = vst.msk [vmem:[#allocation5 + $0x18] sm:$0xff] %vm4053_vm5, %v3964_v49  ;;  %3602 = vrot.lane.b32.xlu0 %v3522_v41, %s5580_s0 }
 0x55b   : > { %4178 = vrot.lane.b32.xlu1 %v3522_v41, %s5583_s11 }
 0x55c   : > { %v4348_v33 = vpop.permute.xlu0 %4347 }
 0x55d   : > { %4442 = vst.msk [vmem:[#allocation5 + $0x10] sm:$0xff] %vm4439_vm7, %v4348_v33  ;;  %v4157_v16 = vpop.permute.xlu1 %4156  ;;  %v3720_v33 = vld [vmem:[#allocation4 + $0x112] sm:$0xff] }
 0x55e   : > { %4250 = vst.msk [vmem:[#allocation5 + $0x18] sm:$0xff] %vm4246_vm6, %v4157_v16  ;;  %4371 = vrot.lane.b32.xlu0 %v7371_v15, %s5584_s25 }
 0x55f   : > { %4180 = vrot.lane.b32.xlu1 %v4101_v59, %s5583_s11 }
 0x560   : > { %v4350_v63 = vpop.permute.xlu0 %4349 }
 0x561   : > { %4443 = vst.msk [vmem:[#allocation5 + $0x18] sm:$0xff] %vm4439_vm7, %v4350_v63  ;;  %v3772_v22 = vpop.permute.xlu1 %3771  ;;  %v3914_v63 = vld [vmem:[#allocation4 + $0x128] sm:$0xff] }
 0x562   : > { %3864 = vst.msk [vmem:[#allocation5 + $0x20] sm:$0xff] %vm3859_vm4, %v3772_v22  ;;  %3763 = vrot.lane.b32.xlu0 %v3699_v5, %s5581_s12  ;;  %v3913_v22 = vld [vmem:[#allocation4 + $0x120] sm:$0xff] }
 0x563   : > { %3604 = vrot.lane.b32.xlu1 %v4101_v59, %s5580_s0 }
 0x564   : > { %v3966_v34 = vpop.permute.xlu0 %3965  ;;  %v4474_v37 = vld [vmem:[#allocation5 + $0x10] sm:$0xff] }
 0x565   : > { %4058 = vst.msk [vmem:[#allocation5 + $0x20] sm:$0xff] %vm4053_vm5, %v3966_v34  ;;  %5358 = vmatprep.mubr.msk.f32.mxu1 %vm4513_vm8, %v4474_v37  ;;  %v3774_v15 = vpop.permute.xlu1 %3773  ;;  %v3528_v37 = vld [vmem:[#allocation4 + $0x121] sm:$0xff] }
 0x566   : > { %3865 = vst.msk [vmem:[#allocation5 + $0x28] sm:$0xff] %vm3859_vm4, %v3774_v15  ;;  %4373 = vrot.lane.b32.xlu0 %v4294_v52, %s5584_s25 }
 0x567   : > { %3795 = vrot.lane.b32.xlu1 %v3715_v57, %s5581_s12 }
 0x568   : > { %v4159_v40 = vpop.permute.xlu0 %4158  ;;  %v4475_v7 = vld [vmem:[#allocation5 + $0x18] sm:$0xff] }
 0x569   : > { %4251 = vst.msk [vmem:[#allocation5 + $0x20] sm:$0xff] %vm4246_vm6, %v4159_v40  ;;  %5359 = vmatmul.mubr.msk.f32.vlgmr.msra.gmra.mrb[2].mxu1 %vm4513_vm8, %v4475_v7  ;;  %v3968_v9 = vpop.permute.xlu1 %3967  ;;  %v4299_v40 = vld [vmem:[#allocation4 + $0x122] sm:$0xff] }
 0x56a   : > { %4059 = vst.msk [vmem:[#allocation5 + $0x28] sm:$0xff] %vm4053_vm5, %v3968_v9  ;;  %3797 = vrot.lane.b32.xlu0 %v4294_v52, %s5581_s12  ;;  %v4107_v7 = vld [vmem:[#allocation4 + $0x129] sm:$0xff] }
 0x56b   : > { %3765 = vrot.lane.b32.xlu1 %v3700_v46, %s5581_s12 }
 0x56c   : > { %v4352_v28 = vpop.permute.xlu0 %4351 }
 0x56d   : > { %4444 = vst.msk [vmem:[#allocation5 + $0x20] sm:$0xff] %vm4439_vm7, %v4352_v28  ;;  %v4161_v30 = vpop.permute.xlu1 %4160 }
 0x56e   : > { %4252 = vst.msk [vmem:[#allocation5 + $0x28] sm:$0xff] %vm4246_vm6, %v4161_v30  ;;  %3989 = vrot.lane.b32.xlu0 %v7221_v45, %s5582_s27 }
 0x56f   : > { %3957 = vrot.lane.b32.xlu1 %v3893_v23, %s5582_s27 }
 0x570   : > { %v3776_v32 = vpop.permute.xlu0 %3775 }
 0x571   : > { %3866 = vst.msk [vmem:[#allocation5 + $0x30] sm:$0xff] %vm3859_vm4, %v3776_v32  ;;  %v3585_v18 = vpop.permute.xlu1 %3584  ;;  %v3722_v32 = vld [vmem:[#allocation4 + $0x12a] sm:$0xff] }
 0x572   : > { %3674 = vst.msk [vmem:[#allocation5 + $0x38] sm:$0xff] %vm3666_vm3, %v3585_v18  ;;  %3991 = vrot.lane.b32.xlu0 %v7215_v39, %s5582_s27 }
 0x573   : > { %3959 = vrot.lane.b32.xlu1 %v3894_v31, %s5582_s27 }
 0x574   : > { %v3778_v29 = vpop.permute.xlu0 %3777  ;;  %v4476_v44 = vld [vmem:[#allocation5 + $0x20] sm:$0xff] }
 0x575   : > { %3867 = vst.msk [vmem:[#allocation5 + $0x38] sm:$0xff] %vm3859_vm4, %v3778_v29  ;;  %5361 = vmatprep.mubr.msk.f32.mxu1 %vm4513_vm8, %v4476_v44  ;;  %v4354_v45 = vpop.permute.xlu1 %4353  ;;  %v3916_v29 = vld [vmem:[#allocation4 + $0x140] sm:$0xff]  ;;  %v3915_v44 = vld [vmem:[#allocation4 + $0x138] sm:$0xff] }
 0x576   : > { %4445 = vst.msk [vmem:[#allocation5 + $0x28] sm:$0xff] %vm4439_vm7, %v4354_v45  ;;  %4182 = vrot.lane.b32.xlu0 %v4102_v58, %s5583_s11 }
 0x577   : > { %4150 = vrot.lane.b32.xlu1 %v4086_v25, %s5583_s11  ;;  %v3530_v25 = vld [vmem:[#allocation4 + $0x139] sm:$0xff] }
 0x578   : > { %v3972_v8 = vpop.permute.xlu0 %3971 }
 0x579   : > { %4061 = vst.msk [vmem:[#allocation5 + $0x38] sm:$0xff] %vm4053_vm5, %v3972_v8  ;;  %v3970_v39 = vpop.permute.xlu1 %3969 }
 0x57a   : > { %4060 = vst.msk [vmem:[#allocation5 + $0x30] sm:$0xff] %vm4053_vm5, %v3970_v39  ;;  %4152 = vrot.lane.b32.xlu0 %v4087_v51, %s5583_s11 }
 0x57b   : > { %3606 = vrot.lane.b32.xlu1 %v4102_v58, %s5580_s0 }
 0x57c   : > { %v3587_v60 = vpop.permute.xlu0 %3586 }
 0x57d   : > { %3675 = vst.msk [vmem:[#allocation5 + $0x40] sm:$0xff] %vm3666_vm3, %v3587_v60  ;;  %v4163_v2 = vpop.permute.xlu1 %4162  ;;  %v4477_v10 = vld [vmem:[#allocation5 + $0x28] sm:$0xff] }
 0x57e   : > { %4253 = vst.msk [vmem:[#allocation5 + $0x30] sm:$0xff] %vm4246_vm6, %v4163_v2  ;;  %4343 = vrot.lane.b32.xlu0 %v4279_v11, %s5584_s25  ;;  %5362 = vmatmul.mubr.msk.f32.gmra.mrb[4].mxu1 %vm4513_vm8, %v4477_v10  ;;  %v4301_v60 = vld [vmem:[#allocation4 + $0x13a] sm:$0xff] }
 0x57f   : > { %4184 = vrot.lane.b32.xlu1 %v4103_v6, %s5583_s11  ;;  %v4109_v2 = vld [vmem:[#allocation4 + $0x141] sm:$0xff] }
 0x580   : > { %v4356_v55 = vpop.permute.xlu0 %4355 }
 0x581   : > { %4446 = vst.msk [vmem:[#allocation5 + $0x30] sm:$0xff] %vm4439_vm7, %v4356_v55  ;;  %v4165_v4 = vpop.permute.xlu1 %4164 }
 0x582   : > { %4254 = vst.msk [vmem:[#allocation5 + $0x38] sm:$0xff] %vm4246_vm6, %v4165_v4  ;;  %3608 = vrot.lane.b32.xlu0 %v4103_v6, %s5580_s0 }
 0x583   : > { %4375 = vrot.lane.b32.xlu1 %v4295_v47, %s5584_s25 }
 0x584   : > { %v3780_v42 = vpop.permute.xlu0 %3779 }
 0x585   : > { %3868 = vst.msk [vmem:[#allocation5 + $0x40] sm:$0xff] %vm3859_vm4, %v3780_v42  ;;  %v3589_v17 = vpop.permute.xlu1 %3588 }
 0x586   : > { %3676 = vst.msk [vmem:[#allocation5 + $0x48] sm:$0xff] %vm3666_vm3, %v3589_v17  ;;  %4345 = vrot.lane.b32.xlu0 %v4280_v48, %s5584_s25  ;;  %v3918_v48 = vld [vmem:[#allocation4 + $0x158] sm:$0xff] }
 0x587   : > { %3799 = vrot.lane.b32.xlu1 %v4295_v47, %s5581_s12  ;;  %v3724_v47 = vld [vmem:[#allocation4 + $0x142] sm:$0xff] }
 0x588   : > { %v3782_v38 = vpop.permute.xlu0 %3781  ;;  %v4478_v24 = vld [vmem:[#allocation5 + $0x30] sm:$0xff] }
 0x589   : > { %3869 = vst.msk [vmem:[#allocation5 + $0x48] sm:$0xff] %vm3859_vm4, %v3782_v38  ;;  %5364 = vmatprep.mubr.msk.f32.mxu1 %vm4513_vm8, %v4478_v24  ;;  %v4358_v19 = vpop.permute.xlu1 %4357  ;;  %v3917_v38 = vld [vmem:[#allocation4 + $0x150] sm:$0xff] }
 0x58a   : > { %4447 = vst.msk [vmem:[#allocation5 + $0x38] sm:$0xff] %vm4439_vm7, %v4358_v19  ;;  %3801 = vrot.lane.b32.xlu0 %v3718_v54, %s5581_s12 }
 0x58b   : > { %4377 = vrot.lane.b32.xlu1 %v3718_v54, %s5584_s25  ;;  %v3532_v54 = vld [vmem:[#allocation4 + $0x151] sm:$0xff] }
 0x58c   : > { %v3976_v36 = vpop.permute.xlu0 %3975 }
 0x58d   : > { %4063 = vst.msk [vmem:[#allocation5 + $0x48] sm:$0xff] %vm4053_vm5, %v3976_v36  ;;  %v3974_v56 = vpop.permute.xlu1 %3973 }
 0x58e   : > { %4062 = vst.msk [vmem:[#allocation5 + $0x40] sm:$0xff] %vm4053_vm5, %v3974_v56  ;;  %3995 = vrot.lane.b32.xlu0 %v3912_v27, %s5582_s27 }
 0x58f   : > { %3993 = vrot.lane.b32.xlu1 %v3911_v53, %s5582_s27  ;;  %v4303_v53 = vld [vmem:[#allocation4 + $0x152] sm:$0xff] }
 0x590   : > { %v3591_v21 = vpop.permute.xlu0 %3590 }
 0x591   : > { %3677 = vst.msk [vmem:[#allocation5 + $0x50] sm:$0xff] %vm3666_vm3, %v3591_v21  ;;  %v4167_v14 = vpop.permute.xlu1 %4166  ;;  %v4479_v13 = vld [vmem:[#allocation5 + $0x38] sm:$0xff]  ;;  %v4111_v21 = vld [vmem:[#allocation4 + $0x159] sm:$0xff] }
 0x592   : > { %4255 = vst.msk [vmem:[#allocation5 + $0x40] sm:$0xff] %vm4246_vm6, %v4167_v14  ;;  %3610 = vrot.lane.b32.xlu0 %v3526_v62, %s5580_s0  ;;  %5365 = vmatmul.mubr.msk.f32.gmra.mrb[6].mxu1 %vm4513_vm8, %v4479_v13 }
 0x593   : > { %4186 = vrot.lane.b32.xlu1 %v3526_v62, %s5583_s11 }
 0x594   : > { %v4360_v20 = vpop.permute.xlu0 %4359 }
 0x595   : > { %4448 = vst.msk [vmem:[#allocation5 + $0x40] sm:$0xff] %vm4439_vm7, %v4360_v20  ;;  %v4169_v3 = vpop.permute.xlu1 %4168 }
 0x596   : > { %4256 = vst.msk [vmem:[#allocation5 + $0x48] sm:$0xff] %vm4246_vm6, %v4169_v3  ;;  %4379 = vrot.lane.b32.xlu0 %v4297_v50, %s5584_s25 }
 0x597   : > { %4188 = vrot.lane.b32.xlu1 %v4105_v26, %s5583_s11 }
 0x598   : > { %v3784_v1 = vpop.permute.xlu0 %3783 }
 0x599   : > { %3870 = vst.msk [vmem:[#allocation5 + $0x50] sm:$0xff] %vm3859_vm4, %v3784_v1  ;;  %v3593_v61 = vpop.permute.xlu1 %3592 }
 0x59a   : > { %3678 = vst.msk [vmem:[#allocation5 + $0x58] sm:$0xff] %vm3666_vm3, %v3593_v61  ;;  %3803 = vrot.lane.b32.xlu0 %v4297_v50, %s5581_s12  ;;  %v3726_v50 = vld [vmem:[#allocation4 + $0x15a] sm:$0xff]  ;;  %v3920_v61 = vld [vmem:[#allocation4 + $0x170] sm:$0xff] }
 0x59b   : > { %3612 = vrot.lane.b32.xlu1 %v4105_v26, %s5580_s0 }
 0x59c   : > { %v3786_v43 = vpop.permute.xlu0 %3785  ;;  %v4480_v49 = vld [vmem:[#allocation5 + $0x40] sm:$0xff] }
 0x59d   : > { %3871 = vst.msk [vmem:[#allocation5 + $0x58] sm:$0xff] %vm3859_vm4, %v3786_v43  ;;  %5367 = vmatprep.mubr.msk.f32.mxu1 %vm4513_vm8, %v4480_v49  ;;  %v4362_v41 = vpop.permute.xlu1 %4361  ;;  %v3919_v43 = vld [vmem:[#allocation4 + $0x168] sm:$0xff] }
 0x59e   : > { %4449 = vst.msk [vmem:[#allocation5 + $0x48] sm:$0xff] %vm4439_vm7, %v4362_v41  ;;  %3805 = vrot.lane.b32.xlu0 %v3720_v33, %s5581_s12 }
 0x59f   : > { %4381 = vrot.lane.b32.xlu1 %v3720_v33, %s5584_s25 }
 0x5a0   : > { %v3980_v16 = vpop.permute.xlu0 %3979 }
 0x5a1   : > { %4065 = vst.msk [vmem:[#allocation5 + $0x58] sm:$0xff] %vm4053_vm5, %v3980_v16  ;;  %v3978_v59 = vpop.permute.xlu1 %3977  ;;  %v3534_v16 = vld [vmem:[#allocation4 + $0x169] sm:$0xff] }
 0x5a2   : > { %4064 = vst.msk [vmem:[#allocation5 + $0x50] sm:$0xff] %vm4053_vm5, %v3978_v59  ;;  %3999 = vrot.lane.b32.xlu0 %v3914_v63, %s5582_s27 }
 0x5a3   : > { %3997 = vrot.lane.b32.xlu1 %v3913_v22, %s5582_s27  ;;  %v4305_v22 = vld [vmem:[#allocation4 + $0x16a] sm:$0xff] }
 0x5a4   : > { %v3595_v5 = vpop.permute.xlu0 %3594 }
 0x5a5   : > { %3679 = vst.msk [vmem:[#allocation5 + $0x60] sm:$0xff] %vm3666_vm3, %v3595_v5  ;;  %v4171_v34 = vpop.permute.xlu1 %4170  ;;  %v4481_v15 = vld [vmem:[#allocation5 + $0x48] sm:$0xff] }
 0x5a6   : > { %4257 = vst.msk [vmem:[#allocation5 + $0x50] sm:$0xff] %vm4246_vm6, %v4171_v34  ;;  %3614 = vrot.lane.b32.xlu0 %v3528_v37, %s5580_s0  ;;  %5368 = vmatmul.mubr.msk.f32.gmra.mrb[8].mxu1 %vm4513_vm8, %v4481_v15  ;;  %v4113_v5 = vld [vmem:[#allocation4 + $0x171] sm:$0xff] }
 0x5a7   : > { %4190 = vrot.lane.b32.xlu1 %v3528_v37, %s5583_s11 }
 0x5a8   : > { %v4364_v52 = vpop.permute.xlu0 %4363 }
 0x5a9   : > { %4450 = vst.msk [vmem:[#allocation5 + $0x50] sm:$0xff] %vm4439_vm7, %v4364_v52  ;;  %v4173_v57 = vpop.permute.xlu1 %4172 }
 0x5aa   : > { %4258 = vst.msk [vmem:[#allocation5 + $0x58] sm:$0xff] %vm4246_vm6, %v4173_v57  ;;  %4383 = vrot.lane.b32.xlu0 %v4299_v40, %s5584_s25  ;;  %v3728_v57 = vld [vmem:[#allocation4 + $0x172] sm:$0xff] }
 0x5ab   : > { %4192 = vrot.lane.b32.xlu1 %v4107_v7, %s5583_s11 }
 0x5ac   : > { %v3788_v9 = vpop.permute.xlu0 %3787 }
 0x5ad   : > { %3872 = vst.msk [vmem:[#allocation5 + $0x60] sm:$0xff] %vm3859_vm4, %v3788_v9  ;;  %v3597_v46 = vpop.permute.xlu1 %3596  ;;  %v3922_v9 = vld [vmem:[#allocation4 + $0x188] sm:$0xff] }
 0x5ae   : > { %3680 = vst.msk [vmem:[#allocation5 + $0x68] sm:$0xff] %vm3666_vm3, %v3597_v46  ;;  %3807 = vrot.lane.b32.xlu0 %v4299_v40, %s5581_s12  ;;  %v3921_v46 = vld [vmem:[#allocation4 + $0x180] sm:$0xff] }
 0x5af   : > { %3616 = vrot.lane.b32.xlu1 %v4107_v7, %s5580_s0 }
 0x5b0   : > { %v3790_v28 = vpop.permute.xlu0 %3789  ;;  %v4482_v30 = vld [vmem:[#allocation5 + $0x50] sm:$0xff] }
 0x5b1   : > { %3873 = vst.msk [vmem:[#allocation5 + $0x68] sm:$0xff] %vm3859_vm4, %v3790_v28  ;;  %5370 = vmatprep.mubr.msk.f32.mxu1 %vm4513_vm8, %v4482_v30  ;;  %v4366_v23 = vpop.permute.xlu1 %4365 }
 0x5b2   : > { %4451 = vst.msk [vmem:[#allocation5 + $0x58] sm:$0xff] %vm4439_vm7, %v4366_v23  ;;  %3809 = vrot.lane.b32.xlu0 %v3722_v32, %s5581_s12  ;;  %v3536_v23 = vld [vmem:[#allocation4 + $0x181] sm:$0xff] }
 0x5b3   : > { %4385 = vrot.lane.b32.xlu1 %v3722_v32, %s5584_s25 }
 0x5b4   : > { %v3984_v18 = vpop.permute.xlu0 %3983 }
 0x5b5   : > { %4067 = vst.msk [vmem:[#allocation5 + $0x68] sm:$0xff] %vm4053_vm5, %v3984_v18  ;;  %v3982_v31 = vpop.permute.xlu1 %3981 }
 0x5b6   : > { %4066 = vst.msk [vmem:[#allocation5 + $0x60] sm:$0xff] %vm4053_vm5, %v3982_v31  ;;  %4003 = vrot.lane.b32.xlu0 %v3916_v29, %s5582_s27  ;;  %v4307_v29 = vld [vmem:[#allocation4 + $0x182] sm:$0xff] }
 0x5b7   : > { %4001 = vrot.lane.b32.xlu1 %v3915_v44, %s5582_s27  ;;  %v4115_v44 = vld [vmem:[#allocation4 + $0x189] sm:$0xff] }
 0x5b8   : > { %v3599_v45 = vpop.permute.xlu0 %3598 }
 0x5b9   : > { %3681 = vst.msk [vmem:[#allocation5 + $0x70] sm:$0xff] %vm3666_vm3, %v3599_v45  ;;  %v4175_v58 = vpop.permute.xlu1 %4174  ;;  %v4483_v8 = vld [vmem:[#allocation5 + $0x58] sm:$0xff] }
 0x5ba   : > { %4259 = vst.msk [vmem:[#allocation5 + $0x60] sm:$0xff] %vm4246_vm6, %v4175_v58  ;;  %3618 = vrot.lane.b32.xlu0 %v3530_v25, %s5580_s0  ;;  %5371 = vmatmul.mubr.msk.f32.gmra.mrb[10].mxu1 %vm4513_vm8, %v4483_v8 }
 0x5bb   : > { %4194 = vrot.lane.b32.xlu1 %v3530_v25, %s5583_s11 }
 0x5bc   : > { %v4368_v39 = vpop.permute.xlu0 %4367 }
 0x5bd   : > { %4452 = vst.msk [vmem:[#allocation5 + $0x60] sm:$0xff] %vm4439_vm7, %v4368_v39  ;;  %v4177_v51 = vpop.permute.xlu1 %4176 }
 0x5be   : > { %4260 = vst.msk [vmem:[#allocation5 + $0x68] sm:$0xff] %vm4246_vm6, %v4177_v51  ;;  %4387 = vrot.lane.b32.xlu0 %v4301_v60, %s5584_s25 }
 0x5bf   : > { %4196 = vrot.lane.b32.xlu1 %v4109_v2, %s5583_s11 }
 0x5c0   : > { %v3792_v11 = vpop.permute.xlu0 %3791 }
 0x5c1   : > { %3874 = vst.msk [vmem:[#allocation5 + $0x70] sm:$0xff] %vm3859_vm4, %v3792_v11  ;;  %v3601_v10 = vpop.permute.xlu1 %3600 }
 0x5c2   : > { %3682 = vst.msk [vmem:[#allocation5 + $0x78] sm:$0xff] %vm3666_vm3, %v3601_v10  ;;  %3811 = vrot.lane.b32.xlu0 %v4301_v60, %s5581_s12  ;;  %v3730_v60 = vld [vmem:[#allocation4 + $0x18a] sm:$0xff]  ;;  %v3923_v10 = vld [vmem:[#allocation4 + $0x198] sm:$0xff] }
 0x5c3   : > { %3620 = vrot.lane.b32.xlu1 %v4109_v2, %s5580_s0  ;;  %v3924_v2 = vld [vmem:[#allocation4 + $0x1a0] sm:$0xff] }
 0x5c4   : > { %v3794_v6 = vpop.permute.xlu0 %3793  ;;  %v4484_v55 = vld [vmem:[#allocation5 + $0x60] sm:$0xff] }
 0x5c5   : > { %3875 = vst.msk [vmem:[#allocation5 + $0x78] sm:$0xff] %vm3859_vm4, %v3794_v6  ;;  %5373 = vmatprep.mubr.msk.f32.mxu1 %vm4513_vm8, %v4484_v55  ;;  %v4370_v4 = vpop.permute.xlu1 %4369 }
 0x5c6   : > { %4453 = vst.msk [vmem:[#allocation5 + $0x68] sm:$0xff] %vm4439_vm7, %v4370_v4  ;;  %3813 = vrot.lane.b32.xlu0 %v3724_v47, %s5581_s12  ;;  %v4117_v4 = vld [vmem:[#allocation4 + $0x1a1] sm:$0xff] }
 0x5c7   : > { %4389 = vrot.lane.b32.xlu1 %v3724_v47, %s5584_s25 }
 0x5c8   : > { %v3988_v42 = vpop.permute.xlu0 %3987 }
 0x5c9   : > { %4069 = vst.msk [vmem:[#allocation5 + $0x78] sm:$0xff] %vm4053_vm5, %v3988_v42  ;;  %v3986_v17 = vpop.permute.xlu1 %3985  ;;  %v4116_v42 = vld [vmem:[#allocation4 + $0x199] sm:$0xff] }
 0x5ca   : > { %4068 = vst.msk [vmem:[#allocation5 + $0x70] sm:$0xff] %vm4053_vm5, %v3986_v17  ;;  %4007 = vrot.lane.b32.xlu0 %v3918_v48, %s5582_s27  ;;  %v4310_v48 = vld [vmem:[#allocation4 + $0x1a2] sm:$0xff] }
 0x5cb   : > { %4005 = vrot.lane.b32.xlu1 %v3917_v38, %s5582_s27 }
 0x5cc   : > { %v3603_v24 = vpop.permute.xlu0 %3602 }
 0x5cd   : > { %3683 = vst.msk [vmem:[#allocation5 + $0x80] sm:$0xff] %vm3666_vm3, %v3603_v24  ;;  %v4179_v19 = vpop.permute.xlu1 %4178  ;;  %v4485_v36 = vld [vmem:[#allocation5 + $0x68] sm:$0xff] }
 0x5ce   : > { %4261 = vst.msk [vmem:[#allocation5 + $0x70] sm:$0xff] %vm4246_vm6, %v4179_v19  ;;  %3622 = vrot.lane.b32.xlu0 %v3532_v54, %s5580_s0  ;;  %5374 = vmatmul.mubr.msk.f32.gmra.mrb[12].mxu1 %vm4513_vm8, %v4485_v36  ;;  %v4309_v24 = vld [vmem:[#allocation4 + $0x19a] sm:$0xff] }
 0x5cf   : > { %4198 = vrot.lane.b32.xlu1 %v3532_v54, %s5583_s11 }
 0x5d0   : > { %v4372_v56 = vpop.permute.xlu0 %4371 }
 0x5d1   : > { %4454 = vst.msk [vmem:[#allocation5 + $0x70] sm:$0xff] %vm4439_vm7, %v4372_v56  ;;  %v4181_v27 = vpop.permute.xlu1 %4180 }
 0x5d2   : > { %4262 = vst.msk [vmem:[#allocation5 + $0x78] sm:$0xff] %vm4246_vm6, %v4181_v27  ;;  %4391 = vrot.lane.b32.xlu0 %v4303_v53, %s5584_s25 }
 0x5d3   : > { %4200 = vrot.lane.b32.xlu1 %v4111_v21, %s5583_s11 }
 0x5d4   : > { %v3764_v14 = vpop.permute.xlu0 %3763 }
 0x5d5   : > { %3860 = vst.msk [vmem:[#allocation5] sm:$0xff] %vm3859_vm4, %v3764_v14  ;;  %v3605_v62 = vpop.permute.xlu1 %3604 }
 0x5d6   : > { %3684 = vst.msk [vmem:[#allocation5 + $0x88] sm:$0xff] %vm3666_vm3, %v3605_v62  ;;  %3815 = vrot.lane.b32.xlu0 %v4303_v53, %s5581_s12 }
 0x5d7   : > { %3624 = vrot.lane.b32.xlu1 %v4111_v21, %s5580_s0 }
 0x5d8   : > { %v4374_v13 = vpop.permute.xlu0 %4373  ;;  %v4486_v20 = vld [vmem:[#allocation5 + $0x70] sm:$0xff] }
 0x5d9   : > { %4455 = vst.msk [vmem:[#allocation5 + $0x78] sm:$0xff] %vm4439_vm7, %v4374_v13  ;;  %5376 = vmatprep.mubr.msk.f32.mxu1 %vm4513_vm8, %v4486_v20  ;;  %v3796_v3 = vpop.permute.xlu1 %3795 }
 0x5da   : > { %3876 = vst.msk [vmem:[#allocation5 + $0x80] sm:$0xff] %vm3859_vm4, %v3796_v3  ;;  %3817 = vrot.lane.b32.xlu0 %v3726_v50, %s5581_s12 }
 0x5db   : > { %4393 = vrot.lane.b32.xlu1 %v3726_v50, %s5584_s25 }
 0x5dc   : > { %v3798_v26 = vpop.permute.xlu0 %3797 }
 0x5dd   : > { %3877 = vst.msk [vmem:[#allocation5 + $0x88] sm:$0xff] %vm3859_vm4, %v3798_v26  ;;  %v3766_v1 = vpop.permute.xlu1 %3765 }
 0x5de   : > { %3861 = vst.msk [vmem:[#allocation5 + $0x8] sm:$0xff] %vm3859_vm4, %v3766_v1  ;;  %4011 = vrot.lane.b32.xlu0 %v3920_v61, %s5582_s27 }
 0x5df   : > { %4009 = vrot.lane.b32.xlu1 %v3919_v43, %s5582_s27 }
 0x5e0   : > { %v3990_v49 = vpop.permute.xlu0 %3989  ;;  %v4487_v41 = vld [vmem:[#allocation5 + $0x78] sm:$0xff] }
 0x5e1   : > { %4070 = vst.msk [vmem:[#allocation5 + $0x80] sm:$0xff] %vm4053_vm5, %v3990_v49  ;;  %5377 = vmatmul.mubr.msk.f32.gmra.mrb[14].mxu1 %vm4513_vm8, %v4487_v41  ;;  %v3958_v33 = vpop.permute.xlu1 %3957 }
 0x5e2   : > { %4054 = vst.msk [vmem:[#allocation5] sm:$0xff] %vm4053_vm5, %v3958_v33  ;;  %3626 = vrot.lane.b32.xlu0 %v3534_v16, %s5580_s0 }
 0x5e3   : > { %4202 = vrot.lane.b32.xlu1 %v3534_v16, %s5583_s11 }
 0x5e4   : > { %v3992_v59 = vpop.permute.xlu0 %3991 }
 0x5e5   : > { %4071 = vst.msk [vmem:[#allocation5 + $0x88] sm:$0xff] %vm4053_vm5, %v3992_v59  ;;  %v3960_v63 = vpop.permute.xlu1 %3959 }
 0x5e6   : > { %4055 = vst.msk [vmem:[#allocation5 + $0x8] sm:$0xff] %vm4053_vm5, %v3960_v63  ;;  %4395 = vrot.lane.b32.xlu0 %v4305_v22, %s5584_s25 }
 0x5e7   : > { %4204 = vrot.lane.b32.xlu1 %v4113_v5, %s5583_s11 }
 0x5e8   : > { %v4183_v34 = vpop.permute.xlu0 %4182 }
 0x5e9   : > { %4263 = vst.msk [vmem:[#allocation5 + $0x80] sm:$0xff] %vm4246_vm6, %v4183_v34  ;;  %v4151_v37 = vpop.permute.xlu1 %4150 }
 0x5ea   : > { %4247 = vst.msk [vmem:[#allocation5] sm:$0xff] %vm4246_vm6, %v4151_v37  ;;  %3819 = vrot.lane.b32.xlu0 %v4305_v22, %s5581_s12 }
 0x5eb   : > { %3628 = vrot.lane.b32.xlu1 %v4113_v5, %s5580_s0 }
 0x5ec   : > { %v4153_v15 = vpop.permute.xlu0 %4152 }
 0x5ed   : > { %4248 = vst.msk [vmem:[#allocation5 + $0x8] sm:$0xff] %vm4246_vm6, %v4153_v15  ;;  %v3607_v52 = vpop.permute.xlu1 %3606 }
 0x5ee   : > { %3685 = vst.msk [vmem:[#allocation5 + $0x90] sm:$0xff] %vm3666_vm3, %v3607_v52  ;;  %3821 = vrot.lane.b32.xlu0 %v3728_v57, %s5581_s12 }
 0x5ef   : > { %4397 = vrot.lane.b32.xlu1 %v3728_v57, %s5584_s25 }
 0x5f0   : > { %v4344_v40 = vpop.permute.xlu0 %4343 }
 0x5f1   : > { %4440 = vst.msk [vmem:[#allocation5] sm:$0xff] %vm4439_vm7, %v4344_v40  ;;  %v4185_v7 = vpop.permute.xlu1 %4184 }
 0x5f2   : > { %4264 = vst.msk [vmem:[#allocation5 + $0x88] sm:$0xff] %vm4246_vm6, %v4185_v7  ;;  %4015 = vrot.lane.b32.xlu0 %v3922_v9, %s5582_s27 }
 0x5f3   : > { %4013 = vrot.lane.b32.xlu1 %v3921_v46, %s5582_s27 }
 0x5f4   : > { %v3609_v28 = vpop.permute.xlu0 %3608 }
 0x5f5   : > { %3686 = vst.msk [vmem:[#allocation5 + $0x98] sm:$0xff] %vm3666_vm3, %v3609_v28  ;;  %v4376_v30 = vpop.permute.xlu1 %4375 }
 0x5f6   : > { %4456 = vst.msk [vmem:[#allocation5 + $0x80] sm:$0xff] %vm4439_vm7, %v4376_v30  ;;  %3630 = vrot.lane.b32.xlu0 %v3536_v23, %s5580_s0 }
 0x5f7   : > { %4206 = vrot.lane.b32.xlu1 %v3536_v23, %s5583_s11 }
 0x5f8   : > { %v4346_v32 = vpop.permute.xlu0 %4345  ;;  %v4472_v18 = vld [vmem:[#allocation5] sm:$0xff] }
 0x5f9   : > { %4441 = vst.msk [vmem:[#allocation5 + $0x8] sm:$0xff] %vm4439_vm7, %v4346_v32  ;;  %5355 = vmatprep.mubr.msk.f32.mxu0 %vm4513_vm8, %v4472_v18  ;;  %v3800_v31 = vpop.permute.xlu1 %3799 }
 0x5fa   : > { %3878 = vst.msk [vmem:[#allocation5 + $0x90] sm:$0xff] %vm3859_vm4, %v3800_v31  ;;  %4399 = vrot.lane.b32.xlu0 %v4307_v29, %s5584_s25 }
 0x5fb   : > { %4208 = vrot.lane.b32.xlu1 %v4115_v44, %s5583_s11 }
 0x5fc   : > { %v3802_v45 = vpop.permute.xlu0 %3801 }
 0x5fd   : > { %3879 = vst.msk [vmem:[#allocation5 + $0x98] sm:$0xff] %vm3859_vm4, %v3802_v45  ;;  %v4378_v58 = vpop.permute.xlu1 %4377  ;;  %v4488_v25 = vld [vmem:[#allocation5 + $0x80] sm:$0xff] }
 0x5fe   : > { %4457 = vst.msk [vmem:[#allocation5 + $0x88] sm:$0xff] %vm4439_vm7, %v4378_v58  ;;  %3823 = vrot.lane.b32.xlu0 %v4307_v29, %s5581_s12  ;;  %5379 = vmatprep.mubr.msk.f32.mxu1 %vm4513_vm8, %v4488_v25 }
 0x5ff   : > { %3632 = vrot.lane.b32.xlu1 %v4115_v44, %s5580_s0  ;;  %s5585_s0 = smov [#allocation6]  }
 0x600   : > { %v3996_v8 = vpop.permute.xlu0 %3995  ;;  %v4473_v39 = vld [vmem:[#allocation5 + $0x8] sm:$0xff]  ;;  %s5509_s17 = sshll.u32 %s5585_s0, 4  ;;  %s5510_s17 = int_to_ptr.vmem [resolvable:$false] %s5509_s17 }
 0x601   : > { %4073 = vst.msk [vmem:[#allocation5 + $0x98] sm:$0xff] %vm4053_vm5, %v3996_v8  ;;  %5356 = vmatmul.mubr.msk.f32.vlgmr.msra.gmra.mrb[34].mxu0 %vm4513_vm8, %v4473_v39  ;;  %v3994_v51 = vpop.permute.xlu1 %3993 }
 0x602   : > { %4072 = vst.msk [vmem:[#allocation5 + $0x90] sm:$0xff] %vm4053_vm5, %v3994_v51  ;;  %3825 = vrot.lane.b32.xlu0 %v3730_v60, %s5581_s12  ;;  %s5511_s12 = scalar_lea.vmem %s5510_s17, 512 }
 0x603   : > { %4401 = vrot.lane.b32.xlu1 %v3730_v60, %s5584_s25 }
 0x604   : > { %v3611_v11 = vpop.permute.xlu0 %3610 }
 0x605   : > { %3687 = vst.msk [vmem:[#allocation5 + $0xa0] sm:$0xff] %vm3666_vm3, %v3611_v11  ;;  %v4187_v6 = vpop.permute.xlu1 %4186  ;;  %v4489_v55 = vld [vmem:[#allocation5 + $0x88] sm:$0xff] }
 0x606   : > { %4265 = vst.msk [vmem:[#allocation5 + $0x90] sm:$0xff] %vm4246_vm6, %v4187_v6  ;;  %5380 = vmatmul.mubr.msk.f32.gmra.mrb[16].mxu1 %vm4513_vm8, %v4489_v55  ;;  %4019 = vrot.lane.b32.xlu0 %v3924_v2, %s5582_s27 }
 0x607   : > { %4017 = vrot.lane.b32.xlu1 %v3923_v10, %s5582_s27  ;;  %s5092_s27 = sshll.u32 %s361_s29, 4 }
 0x608   : > { %v4380_v47 = vpop.permute.xlu0 %4379  ;;  %s363_s20 = scalar_lea.vmem [#allocation6], %s5092_s27 }
 0x609   : > { %4458 = vst.msk [vmem:[#allocation5 + $0x90] sm:$0xff] %vm4439_vm7, %v4380_v47  ;;  %v4189_v17 = vpop.permute.xlu1 %4188  ;;  %s5020_s21 = sshll.u32 %s363_s20, 4  ;;  %s8092_s21 = int_to_ptr.vmem [resolvable:$true] %s5020_s21 }
 0x60a   : > { %4266 = vst.msk [vmem:[#allocation5 + $0x98] sm:$0xff] %vm4246_vm6, %v4189_v17  ;;  %4212 = vrot.lane.b32.xlu0 %v4117_v4, %s5583_s11  ;;  %p5512_p0 = scmp.lt.s32.totalorder %s8092_s21, %s5510_s17 }
 0x60b   : > { %4210 = vrot.lane.b32.xlu1 %v4116_v42, %s5583_s11 }
 0x60c   : > { %v3804_v38 = vpop.permute.xlu0 %3803 }
 0x60d   : > { %3880 = vst.msk [vmem:[#allocation5 + $0xa0] sm:$0xff] %vm3859_vm4, %v3804_v38  ;;  %v3613_v19 = vpop.permute.xlu1 %3612 }
 0x60e   : > { %3688 = vst.msk [vmem:[#allocation5 + $0xa8] sm:$0xff] %vm3666_vm3, %v3613_v19  ;;  %4405 = vrot.lane.b32.xlu0 %v4310_v48, %s5584_s25 }
 0x60f   : > { %4403 = vrot.lane.b32.xlu1 %v4309_v24, %s5584_s25  ;;  %s5505_s25 = scalar_lea.vmem %s8092_s21, 256 }
 0x610   : > { %v3806_v54 = vpop.permute.xlu0 %3805  ;;  %v4490_v36 = vld [vmem:[#allocation5 + $0x90] sm:$0xff]  ;;  %p5506_p11 = scmp.ne.s32.totalorder %s8092_s21, %s5505_s25  ;;  %p5513_p1 = scmp.lt.s32.totalorder %s5511_s12, %s5505_s25 }
 0x611   : > { %3881 = vst.msk [vmem:[#allocation5 + $0xa8] sm:$0xff] %vm3859_vm4, %v3806_v54  ;;  %5382 = vmatprep.mubr.msk.f32.mxu1 %vm4513_vm8, %v4490_v36  ;;  %v4382_v56 = vpop.permute.xlu1 %4381 }
 0x612   : > { %4459 = vst.msk [vmem:[#allocation5 + $0x98] sm:$0xff] %vm4439_vm7, %v4382_v56  ;;  %p5507_p12 = pnand %p5506_p11, %p5679_p5  ;;  %p5514_p2 = por %p5513_p1, %p5512_p0 }
 0x614   : > { %v4000_v27 = vpop.permute.xlu0 %3999  ;;  %p5508_p13 = pneg %p5507_p12 }
 0x615   : > { %4075 = vst.msk [vmem:[#allocation5 + $0xa8] sm:$0xff] %vm4053_vm5, %v4000_v27  ;;  %v3998_v53 = vpop.permute.xlu1 %3997 }
 0x616   : > { %4074 = vst.msk [vmem:[#allocation5 + $0xa0] sm:$0xff] %vm4053_vm5, %v3998_v53  ;;  %p5515_p3 = pnand %p5514_p2, %p5508_p13 }
 0x618   : > { %v3615_v21 = vpop.permute.xlu0 %3614 }
 0x619   : > { %3689 = vst.msk [vmem:[#allocation5 + $0xb0] sm:$0xff] %vm3666_vm3, %v3615_v21  ;;  %v4191_v14 = vpop.permute.xlu1 %4190  ;;  %v4491_v62 = vld [vmem:[#allocation5 + $0x98] sm:$0xff] }
 0x61a   : > { %4267 = vst.msk [vmem:[#allocation5 + $0xa0] sm:$0xff] %vm4246_vm6, %v4191_v14  ;;  %5383 = vmatmul.mubr.msk.f32.gmra.mrb[18].mxu1 %vm4513_vm8, %v4491_v62 }
 0x61c   : > { %v4384_v13 = vpop.permute.xlu0 %4383 }
 0x61d   : > { %4460 = vst.msk [vmem:[#allocation5 + $0xa0] sm:$0xff] %vm4439_vm7, %v4384_v13  ;;  %v4193_v20 = vpop.permute.xlu1 %4192 }
 0x61e   : > { %4268 = vst.msk [vmem:[#allocation5 + $0xa8] sm:$0xff] %vm4246_vm6, %v4193_v20 }
 0x620   : > { %v3808_v3 = vpop.permute.xlu0 %3807 }
 0x621   : > { %3882 = vst.msk [vmem:[#allocation5 + $0xb0] sm:$0xff] %vm3859_vm4, %v3808_v3  ;;  %v3617_v50 = vpop.permute.xlu1 %3616 }
 0x622   : > { %3690 = vst.msk [vmem:[#allocation5 + $0xb8] sm:$0xff] %vm3666_vm3, %v3617_v50 }
 0x624   : > { %v3810_v26 = vpop.permute.xlu0 %3809  ;;  %v4492_v1 = vld [vmem:[#allocation5 + $0xa0] sm:$0xff] }
 0x625   : > { %3883 = vst.msk [vmem:[#allocation5 + $0xb8] sm:$0xff] %vm3859_vm4, %v3810_v26  ;;  %5385 = vmatprep.mubr.msk.f32.mxu1 %vm4513_vm8, %v4492_v1  ;;  %v4386_v61 = vpop.permute.xlu1 %4385 }
 0x626   : > { %4461 = vst.msk [vmem:[#allocation5 + $0xa8] sm:$0xff] %vm4439_vm7, %v4386_v61 }
 0x628   : > { %v4004_v43 = vpop.permute.xlu0 %4003 }
 0x629   : > { %4077 = vst.msk [vmem:[#allocation5 + $0xb8] sm:$0xff] %vm4053_vm5, %v4004_v43  ;;  %v4002_v49 = vpop.permute.xlu1 %4001 }
 0x62a   : > { %4076 = vst.msk [vmem:[#allocation5 + $0xb0] sm:$0xff] %vm4053_vm5, %v4002_v49 }
 0x62c   : > { %v3619_v41 = vpop.permute.xlu0 %3618 }
 0x62d   : > { %3691 = vst.msk [vmem:[#allocation5 + $0xc0] sm:$0xff] %vm3666_vm3, %v3619_v41  ;;  %v4195_v33 = vpop.permute.xlu1 %4194  ;;  %v4493_v16 = vld [vmem:[#allocation5 + $0xa8] sm:$0xff] }
 0x62e   : > { %4269 = vst.msk [vmem:[#allocation5 + $0xb0] sm:$0xff] %vm4246_vm6, %v4195_v33  ;;  %5386 = vmatmul.mubr.msk.f32.gmra.mrb[20].mxu1 %vm4513_vm8, %v4493_v16 }
 0x630   : > { %v4388_v59 = vpop.permute.xlu0 %4387 }
 0x631   : > { %4462 = vst.msk [vmem:[#allocation5 + $0xb0] sm:$0xff] %vm4439_vm7, %v4388_v59  ;;  %v4197_v63 = vpop.permute.xlu1 %4196 }
 0x632   : > { %4270 = vst.msk [vmem:[#allocation5 + $0xb8] sm:$0xff] %vm4246_vm6, %v4197_v63 }
 0x634   : > { %v3812_v22 = vpop.permute.xlu0 %3811 }
 0x635   : > { %3884 = vst.msk [vmem:[#allocation5 + $0xc0] sm:$0xff] %vm3859_vm4, %v3812_v22  ;;  %v3621_v5 = vpop.permute.xlu1 %3620 }
 0x636   : > { %3692 = vst.msk [vmem:[#allocation5 + $0xc8] sm:$0xff] %vm3666_vm3, %v3621_v5 }
 0x638   : > { %v3814_v34 = vpop.permute.xlu0 %3813  ;;  %v4494_v37 = vld [vmem:[#allocation5 + $0xb0] sm:$0xff] }
 0x639   : > { %3885 = vst.msk [vmem:[#allocation5 + $0xc8] sm:$0xff] %vm3859_vm4, %v3814_v34  ;;  %5388 = vmatprep.mubr.msk.f32.mxu1 %vm4513_vm8, %v4494_v37  ;;  %v4390_v15 = vpop.permute.xlu1 %4389  ;;  %v534_v37 = vld [vmem:[%s8144_s7] sm:$0x1] }
 0x63a   : > { %4463 = vst.msk [vmem:[#allocation5 + $0xb8] sm:$0xff] %vm4439_vm7, %v4390_v15  ;;  %v535_v15 = vmul.f32 %v534_v37, %v6351_v0 }
 0x63c   : > { %v4008_v52 = vpop.permute.xlu0 %4007  ;;  %v7927_v57 = vpop.f32.mrb[2].mxu1 }
 0x63d   : > { %4079 = vst.msk [vmem:[#allocation5 + $0xc8] sm:$0xff] %vm4053_vm5, %v4008_v52  ;;  %v7930_v40 = vpop.f32.mrb[3].mxu1  ;;  %v4006_v7 = vpop.permute.xlu1 %4005  ;;  %v540_v52 = vadd.f32 %v6538_v35, %v535_v15 }
 0x63e   : > { %4078 = vst.msk [vmem:[#allocation5 + $0xc0] sm:$0xff] %vm4053_vm5, %v4006_v7  ;;  %v8007_v7 = vrot.slane %v6351_v0, %v7020_v12 }
 0x640   : > { %v3623_v9 = vpop.permute.xlu0 %3622 }
 0x641   : > { %3693 = vst.msk [vmem:[#allocation5 + $0xd0] sm:$0xff] %vm3666_vm3, %v3623_v9  ;;  %v4199_v46 = vpop.permute.xlu1 %4198  ;;  %v4495_v28 = vld [vmem:[#allocation5 + $0xb8] sm:$0xff] }
 0x642   : > { %4271 = vst.msk [vmem:[#allocation5 + $0xc0] sm:$0xff] %vm4246_vm6, %v4199_v46  ;;  %5389 = vmatmul.mubr.msk.f32.gmra.mrb[22].mxu1 %vm4513_vm8, %v4495_v28  ;;  %v8010_v28 = vrot.slane %v540_v52, %v7020_v12 }
 0x644   : > { %v4392_v30 = vpop.permute.xlu0 %4391 }
 0x645   : > { %4464 = vst.msk [vmem:[#allocation5 + $0xc0] sm:$0xff] %vm4439_vm7, %v4392_v30  ;;  %v4201_v23 = vpop.permute.xlu1 %4200 }
 0x646   : > { %4272 = vst.msk [vmem:[#allocation5 + $0xc8] sm:$0xff] %vm4246_vm6, %v4201_v23 }
 0x648   : > { %v3816_v32 = vpop.permute.xlu0 %3815 }
 0x649   : > { %3886 = vst.msk [vmem:[#allocation5 + $0xd0] sm:$0xff] %vm3859_vm4, %v3816_v32  ;;  %v3625_v18 = vpop.permute.xlu1 %3624 }
 0x64a   : > { %3694 = vst.msk [vmem:[#allocation5 + $0xd8] sm:$0xff] %vm3666_vm3, %v3625_v18 }
 0x64c   : > { %v3818_v31 = vpop.permute.xlu0 %3817  ;;  %v4496_v29 = vld [vmem:[#allocation5 + $0xc0] sm:$0xff] }
 0x64d   : > { %3887 = vst.msk [vmem:[#allocation5 + $0xd8] sm:$0xff] %vm3859_vm4, %v3818_v31  ;;  %5391 = vmatprep.mubr.msk.f32.mxu1 %vm4513_vm8, %v4496_v29  ;;  %v4394_v44 = vpop.permute.xlu1 %4393  ;;  %v4841_v31 = vmul.f32 %v8007_v7, %v7930_v40 }
 0x64e   : > { %4465 = vst.msk [vmem:[#allocation5 + $0xc8] sm:$0xff] %vm4439_vm7, %v4394_v44 }
 0x650   : > { %v4012_v45 = vpop.permute.xlu0 %4011 }
 0x651   : > { %4081 = vst.msk [vmem:[#allocation5 + $0xd8] sm:$0xff] %vm4053_vm5, %v4012_v45  ;;  %v7944_v58 = vpop.f32.mrb[4].mxu1  ;;  %v4010_v25 = vpop.permute.xlu1 %4009 }
 0x652   : > { %4080 = vst.msk [vmem:[#allocation5 + $0xd0] sm:$0xff] %vm4053_vm5, %v4010_v25  ;;  %v7947_v8 = vpop.f32.mrb[5].mxu1  ;;  %v4842_v25 = vmul.f32 %v7927_v57, %v8007_v7  ;;  %v4844_v57 = vmul.f32 %v7944_v58, %v8007_v7 }
 0x654   : > { %v3627_v39 = vpop.permute.xlu0 %3626 }
 0x655   : > { %3695 = vst.msk [vmem:[#allocation5 + $0xe0] sm:$0xff] %vm3666_vm3, %v3627_v39  ;;  %v4203_v51 = vpop.permute.xlu1 %4202  ;;  %v4497_v60 = vld [vmem:[#allocation5 + $0xc8] sm:$0xff]  ;;  %v4877_v39 = vadd.f32 %v8010_v28, %v4841_v31 }
 0x656   : > { %4273 = vst.msk [vmem:[#allocation5 + $0xd0] sm:$0xff] %vm4246_vm6, %v4203_v51  ;;  %5392 = vmatmul.mubr.msk.f32.gmra.mrb[24].mxu1 %vm4513_vm8, %v4497_v60 }
 0x658   : > { %v4396_v2 = vpop.permute.xlu0 %4395 }
 0x659   : > { %4466 = vst.msk [vmem:[#allocation5 + $0xd0] sm:$0xff] %vm4439_vm7, %v4396_v2  ;;  %v4205_v11 = vpop.permute.xlu1 %4204  ;;  %v4878_v2 = vadd.f32 %v8010_v28, %v4842_v25 }
 0x65a   : > { %4274 = vst.msk [vmem:[#allocation5 + $0xd8] sm:$0xff] %vm4246_vm6, %v4205_v11  ;;  %v4909_v11 = vmax.f32 %v4877_v39, 0.0 }
 0x65c   : > { %v3820_v10 = vpop.permute.xlu0 %3819 }
 0x65d   : > { %3888 = vst.msk [vmem:[#allocation5 + $0xe0] sm:$0xff] %vm3859_vm4, %v3820_v10  ;;  %v3629_v6 = vpop.permute.xlu1 %3628  ;;  %v4843_v10 = vmul.f32 %v8007_v7, %v7947_v8 }
 0x65e   : > { %3696 = vst.msk [vmem:[#allocation5 + $0xe8] sm:$0xff] %vm3666_vm3, %v3629_v6 }
 0x660   : > { %v3822_v55 = vpop.permute.xlu0 %3821  ;;  %v4498_v4 = vld [vmem:[#allocation5 + $0xd0] sm:$0xff] }
 0x661   : > { %3889 = vst.msk [vmem:[#allocation5 + $0xe8] sm:$0xff] %vm3859_vm4, %v3822_v55  ;;  %5394 = vmatprep.mubr.msk.f32.mxu1 %vm4513_vm8, %v4498_v4  ;;  %v4398_v47 = vpop.permute.xlu1 %4397  ;;  %v4910_v55 = vmax.f32 %v4878_v2, 0.0  ;;  %v4879_v4 = vadd.f32 %v8010_v28, %v4843_v10 }
 0x662   : > { %4467 = vst.msk [vmem:[#allocation5 + $0xd8] sm:$0xff] %vm4439_vm7, %v4398_v47  ;;  %v4880_v47 = vadd.f32 %v8010_v28, %v4844_v57 }
 0x664   : > { %v4016_v42 = vpop.permute.xlu0 %4015 }
 0x665   : > { %4083 = vst.msk [vmem:[#allocation5 + $0xe8] sm:$0xff] %vm4053_vm5, %v4016_v42  ;;  %v7960_v17 = vpop.f32.mrb[6].mxu1  ;;  %v4014_v48 = vpop.permute.xlu1 %4013  ;;  %v4911_v42 = vmax.f32 %v4879_v4, 0.0 }
 0x666   : > { %4082 = vst.msk [vmem:[#allocation5 + $0xe0] sm:$0xff] %vm4053_vm5, %v4014_v48  ;;  %v7963_v38 = vpop.f32.mrb[7].mxu1  ;;  %v4846_v8 = vmul.f32 %v7960_v17, %v8007_v7 }
 0x667   : > { %v4845_v48 = vmul.f32 %v8007_v7, %v7963_v38 }
 0x668   : > { %v3631_v24 = vpop.permute.xlu0 %3630 }
 0x669   : > { %3697 = vst.msk [vmem:[#allocation5 + $0xf0] sm:$0xff] %vm3666_vm3, %v3631_v24  ;;  %v4207_v19 = vpop.permute.xlu1 %4206  ;;  %v4499_v54 = vld [vmem:[#allocation5 + $0xd8] sm:$0xff] }
 0x66a   : > { %4275 = vst.msk [vmem:[#allocation5 + $0xe0] sm:$0xff] %vm4246_vm6, %v4207_v19  ;;  %5395 = vmatmul.mubr.msk.f32.gmra.mrb[26].mxu1 %vm4513_vm8, %v4499_v54  ;;  %v4912_v19 = vmax.f32 %v4880_v47, 0.0  ;;  %v4881_v54 = vadd.f32 %v8010_v28, %v4845_v48 }
 0x66c   : > { %v4400_v36 = vpop.permute.xlu0 %4399 }
 0x66d   : > { %4468 = vst.msk [vmem:[#allocation5 + $0xe0] sm:$0xff] %vm4439_vm7, %v4400_v36  ;;  %v4209_v56 = vpop.permute.xlu1 %4208 }
 0x66e   : > { %4276 = vst.msk [vmem:[#allocation5 + $0xe8] sm:$0xff] %vm4246_vm6, %v4209_v56 }
 0x670   : > { %v3824_v27 = vpop.permute.xlu0 %3823 }
 0x671   : > { %3890 = vst.msk [vmem:[#allocation5 + $0xf0] sm:$0xff] %vm3859_vm4, %v3824_v27  ;;  %v3633_v53 = vpop.permute.xlu1 %3632 }
 0x672   : > { %3698 = vst.msk [vmem:[#allocation5 + $0xf8] sm:$0xff] %vm3666_vm3, %v3633_v53  ;;  %v4882_v53 = vadd.f32 %v8010_v28, %v4846_v8 }
 0x674   : > { %v3826_v21 = vpop.permute.xlu0 %3825  ;;  %v4500_v14 = vld [vmem:[#allocation5 + $0xe0] sm:$0xff]  ;;  %v4914_v17 = vmax.f32 %v4882_v53, 0.0 }
 0x675   : > { %3891 = vst.msk [vmem:[#allocation5 + $0xf8] sm:$0xff] %vm3859_vm4, %v3826_v21  ;;  %5397 = vmatprep.mubr.msk.f32.mxu1 %vm4513_vm8, %v4500_v14  ;;  %v4402_v62 = vpop.permute.xlu1 %4401  ;;  %v4913_v21 = vmax.f32 %v4881_v54, 0.0 }
 0x676   : > { %4469 = vst.msk [vmem:[#allocation5 + $0xe8] sm:$0xff] %vm4439_vm7, %v4402_v62 }
 0x678   : > { %v4020_v13 = vpop.permute.xlu0 %4019 }
 0x679   : > { %v7975_v20 = vpop.f32.mrb[8].mxu1  ;;  %v4018_v3 = vpop.permute.xlu1 %4017  ;;  %4085 = vst.msk [vmem:[#allocation5 + $0xf8] sm:$0xff] %vm4053_vm5, %v4020_v13 }
 0x67a   : > { %4084 = vst.msk [vmem:[#allocation5 + $0xf0] sm:$0xff] %vm4053_vm5, %v4018_v3  ;;  %v7979_v50 = vpop.f32.mrb[9].mxu1  ;;  %v4848_v13 = vmul.f32 %v7975_v20, %v8007_v7 }
 0x67b   : > { %v4847_v38 = vmul.f32 %v8007_v7, %v7979_v50 }
 0x67c   : > { %v4213_v26 = vpop.permute.xlu0 %4212 }
 0x67d   : > { %v4211_v1 = vpop.permute.xlu1 %4210  ;;  %4278 = vst.msk [vmem:[#allocation5 + $0xf8] sm:$0xff] %vm4246_vm6, %v4213_v26  ;;  %v4501_v61 = vld [vmem:[#allocation5 + $0xe8] sm:$0xff]  ;;  %v4883_v3 = vadd.f32 %v8010_v28, %v4847_v38 }
 0x67e   : > { %4277 = vst.msk [vmem:[#allocation5 + $0xf0] sm:$0xff] %vm4246_vm6, %v4211_v1  ;;  %5398 = vmatmul.mubr.msk.f32.gmra.mrb[28].mxu1 %vm4513_vm8, %v4501_v61  ;;  %v4884_v1 = vadd.f32 %v8010_v28, %v4848_v13 }
 0x67f   : > { %v4915_v61 = vmax.f32 %v4883_v3, 0.0 }
 0x680   : > { %v4406_v43 = vpop.permute.xlu0 %4405 }
 0x681   : > { %v4404_v49 = vpop.permute.xlu1 %4403  ;;  %4471 = vst.msk [vmem:[#allocation5 + $0xf8] sm:$0xff] %vm4439_vm7, %v4406_v43  ;;  %v4916_v43 = vmax.f32 %v4884_v1, 0.0 }
 0x682   : > { %4470 = vst.msk [vmem:[#allocation5 + $0xf0] sm:$0xff] %vm4439_vm7, %v4404_v49 }
 0x688   : > { %v4503_v41 = vld [vmem:[#allocation5 + $0xf8] sm:$0xff] }
 0x689   : > { %v4502_v33 = vld [vmem:[#allocation5 + $0xf0] sm:$0xff] }
 0x68a   : > { %5400 = vmatprep.mubr.msk.f32.mxu1 %vm4513_vm8, %v4502_v33 }
 0x68b   : > { %5401 = vmatmul.mubr.msk.f32.gmra.mrb[30].mxu1 %vm4513_vm8, %v4503_v41 }
 0x68d   : > { %v7988_v16 = vpop.f32.mrb[10].mxu1 }
 0x68e   : > { %v7990_v59 = vpop.f32.mrb[11].mxu1  ;;  %v4850_v49 = vmul.f32 %v7988_v16, %v8007_v7 }
 0x68f   : > { %v4849_v50 = vmul.f32 %v8007_v7, %v7990_v59 }
 0x690   : > { %v4886_v33 = vadd.f32 %v8010_v28, %v4850_v49 }
 0x691   : > { %v4885_v41 = vadd.f32 %v8010_v28, %v4849_v50 }
 0x693   : > { %v4917_v37 = vmax.f32 %v4885_v41, 0.0 }
 0x6a1   : > { %v7992_v63 = vpop.f32.mrb[12].mxu1 }
 0x6a2   : > { %v7994_v22 = vpop.f32.mrb[13].mxu1  ;;  %v4852_v16 = vmul.f32 %v7992_v63, %v8007_v7 }
 0x6a3   : > { %v4851_v15 = vmul.f32 %v8007_v7, %v7994_v22 }
 0x6a4   : > { %v4888_v22 = vadd.f32 %v8010_v28, %v4852_v16 }
 0x6b4   : > { %v7996_v5 = vpop.f32.mrb[14].mxu1 }
 0x6b5   : > { %v7998_v34 = vpop.f32.mrb[15].mxu1  ;;  %v4854_v63 = vmul.f32 %v7996_v5, %v8007_v7 }
 0x6d4   : > { %v5357_v9 = vpop.f32.mrb[34].mxu0 }
 0x6d5   : > { %v4676_v46 = vpop.f32.mrb[35].mxu0  ;;  %v4840_v30 = vmul.f32 %v5357_v9, %v8007_v7 }
 0x6d6   : > { %v4839_v23 = vmul.f32 %v8007_v7, %v4676_v46 }
 0x6d7   : > { %v4876_v35 = vadd.f32 %v8010_v28, %v4840_v30  ;;  %v4918_v30 = vmax.f32 %v4886_v33, 0.0 }
 0x6d8   : > { %v4875_v32 = vadd.f32 %v8010_v28, %v4839_v23  ;;  %v4887_v23 = vadd.f32 %v8010_v28, %v4851_v15 }
 0x6d9   : > { %v5381_v18 = vpop.f32.mrb[16].mxu1  ;;  %v4908_v51 = vmax.f32 %v4876_v35, 0.0  ;;  %v4853_v35 = vmul.f32 %v8007_v7, %v7998_v34 }
 0x6da   : > { %v4907_v29 = vmax.f32 %v4875_v32, 0.0  ;;  %v4756_v0 = vpop.f32.mrb[17].mxu1  ;;  %v4856_v44 = vmul.f32 %v5381_v18, %v8007_v7  ;;  %v4919_v31 = vmax.f32 %v4887_v23, 0.0 }
 0x6db   : > { %v4855_v45 = vmul.f32 %v8007_v7, %v4756_v0  ;;  %v4920_v0 = vmax.f32 %v4888_v22, 0.0 }
 0x6dc   : > { %4939 = vxpose.xlu1.b32.start [1/16] (narrow) %v4907_v29, 8  ;;  %v4892_v60 = vadd.f32 %v8010_v28, %v4856_v44  ;;  %v4889_v44 = vadd.f32 %v8010_v28, %v4853_v35 }
 0x6dd   : > { %v4891_v12 = vadd.f32 %v8010_v28, %v4855_v45  ;;  %v4890_v45 = vadd.f32 %v8010_v28, %v4854_v63 }
 0x6de   : > { %v4924_v6 = vmax.f32 %v4892_v60, 0.0 }
 0x6df   : > { %v4923_v40 = vmax.f32 %v4891_v12, 0.0  ;;  %v4921_v12 = vmax.f32 %v4889_v44, 0.0  ;;  %v4922_v39 = vmax.f32 %v4890_v45, 0.0 }
 0x6e0   : > { %4940 = vxpose.xlu1.b32.cont [2/16] (narrow) %v4908_v51, 8 }
 0x6e1   : > { %4971 = vxpose.xlu0.b32.start [1/16] (narrow) %v4923_v40, 8 }
 0x6e4   : > { %4941 = vxpose.xlu1.b32.cont [3/16] (narrow) %v4909_v11, 8 }
 0x6e5   : > { %4972 = vxpose.xlu0.b32.cont [2/16] (narrow) %v4924_v6, 8 }
 0x6e8   : > { %4942 = vxpose.xlu1.b32.cont [4/16] (narrow) %v4910_v55, 8 }
 0x6ec   : > { %4943 = vxpose.xlu1.b32.cont [5/16] (narrow) %v4911_v42, 8 }
 0x6ed   : > { %v5384_v24 = vpop.f32.mrb[18].mxu1 }
 0x6ee   : > { %v4766_v36 = vpop.f32.mrb[19].mxu1  ;;  %v4858_v58 = vmul.f32 %v5384_v24, %v8007_v7 }
 0x6ef   : > { %v4857_v56 = vmul.f32 %v8007_v7, %v4766_v36 }
 0x6f0   : > { %4944 = vxpose.xlu1.b32.cont [6/16] (narrow) %v4912_v19, 8  ;;  %v4894_v14 = vadd.f32 %v8010_v28, %v4858_v58 }
 0x6f1   : > { %v4893_v27 = vadd.f32 %v8010_v28, %v4857_v56 }
 0x6f2   : > { %v4926_v26 = vmax.f32 %v4894_v14, 0.0 }
 0x6f3   : > { %v4925_v62 = vmax.f32 %v4893_v27, 0.0 }
 0x6f4   : > { %4945 = vxpose.xlu1.b32.cont [7/16] (narrow) %v4913_v21, 8 }
 0x6f5   : > { %4973 = vxpose.xlu0.b32.cont [3/16] (narrow) %v4925_v62, 8 }
 0x6f8   : > { %4946 = vxpose.xlu1.b32.cont [8/16] (narrow) %v4914_v17, 8 }
 0x6f9   : > { %4974 = vxpose.xlu0.b32.cont [4/16] (narrow) %v4926_v26, 8 }
 0x6fc   : > { %4947 = vxpose.xlu1.b32.cont [9/16] (narrow) %v4915_v61, 8 }
 0x700   : > { %4948 = vxpose.xlu1.b32.cont [10/16] (narrow) %v4916_v43, 8 }
 0x701   : > { %v5387_v20 = vpop.f32.mrb[20].mxu1 }
 0x702   : > { %v4776_v52 = vpop.f32.mrb[21].mxu1  ;;  %v4860_v9 = vmul.f32 %v5387_v20, %v8007_v7 }
 0x703   : > { %v4859_v59 = vmul.f32 %v8007_v7, %v4776_v52 }
 0x704   : > { %4949 = vxpose.xlu1.b32.cont [11/16] (narrow) %v4917_v37, 8  ;;  %v4896_v32 = vadd.f32 %v8010_v28, %v4860_v9 }
 0x705   : > { %v4895_v46 = vadd.f32 %v8010_v28, %v4859_v59 }
 0x706   : > { %v4928_v29 = vmax.f32 %v4896_v32, 0.0 }
 0x707   : > { %v4927_v18 = vmax.f32 %v4895_v46, 0.0 }
 0x708   : > { %4950 = vxpose.xlu1.b32.cont [12/16] (narrow) %v4918_v30, 8 }
 0x709   : > { %4975 = vxpose.xlu0.b32.cont [5/16] (narrow) %v4927_v18, 8 }
 0x70c   : > { %4951 = vxpose.xlu1.b32.cont [13/16] (narrow) %v4919_v31, 8 }
 0x70d   : > { %4976 = vxpose.xlu0.b32.cont [6/16] (narrow) %v4928_v29, 8 }
 0x710   : > { %4952 = vxpose.xlu1.b32.cont [14/16] (narrow) %v4920_v0, 8 }
 0x714   : > { %4953 = vxpose.xlu1.b32.cont [15/16] (narrow) %v4921_v12, 8 }
 0x715   : > { %v5390_v25 = vpop.f32.mrb[22].mxu1 }
 0x716   : > { %v4786_v51 = vpop.f32.mrb[23].mxu1  ;;  %v4862_v60 = vmul.f32 %v5390_v25, %v8007_v7 }
 0x717   : > { %v4861_v34 = vmul.f32 %v8007_v7, %v4786_v51 }
 0x718   : > { %4954 = vxpose.xlu1.b32.end [16/16] (narrow) %v4922_v39, 8  ;;  %v4898_v2 = vadd.f32 %v8010_v28, %v4862_v60 }
 0x719   : > { %v4897_v40 = vadd.f32 %v8010_v28, %v4861_v34 }
 0x71a   : > { %v4930_v11 = vmax.f32 %v4898_v2, 0.0 }
 0x71b   : > { %v4929_v5 = vmax.f32 %v4897_v40, 0.0 }
 0x71d   : > { %4977 = vxpose.xlu0.b32.cont [7/16] (narrow) %v4929_v5, 8 }
 0x721   : > { %4978 = vxpose.xlu0.b32.cont [8/16] (narrow) %v4930_v11, 8 }
 0x729   : > { %v5393_v10 = vpop.f32.mrb[24].mxu1 }
 0x72a   : > { %v4796_v6 = vpop.f32.mrb[25].mxu1  ;;  %v4864_v55 = vmul.f32 %v5393_v10, %v8007_v7 }
 0x72b   : > { %v4863_v57 = vmul.f32 %v8007_v7, %v4796_v6 }
 0x72c   : > { %v4900_v47 = vadd.f32 %v8010_v28, %v4864_v55 }
 0x72d   : > { %v4899_v4 = vadd.f32 %v8010_v28, %v4863_v57 }
 0x72e   : > { %v4932_v48 = vmax.f32 %v4900_v47, 0.0 }
 0x72f   : > { %v4931_v42 = vmax.f32 %v4899_v4, 0.0 }
 0x731   : > { %4979 = vxpose.xlu0.b32.cont [9/16] (narrow) %v4931_v42, 8 }
 0x735   : > { %4980 = vxpose.xlu0.b32.cont [10/16] (narrow) %v4932_v48, 8 }
 0x73d   : > { %v5396_v24 = vpop.f32.mrb[26].mxu1 }
 0x73e   : > { %v4806_v19 = vpop.f32.mrb[27].mxu1  ;;  %v4866_v8 = vmul.f32 %v5396_v24, %v8007_v7 }
 0x73f   : > { %v4865_v54 = vmul.f32 %v8007_v7, %v4806_v19 }
 0x740   : > { %v4902_v58 = vadd.f32 %v8010_v28, %v4866_v8 }
 0x741   : > { %v4901_v36 = vadd.f32 %v8010_v28, %v4865_v54 }
 0x742   : > { %v4934_v27 = vmax.f32 %v4902_v58, 0.0 }
 0x743   : > { %v4933_v56 = vmax.f32 %v4901_v36, 0.0 }
 0x745   : > { %4981 = vxpose.xlu0.b32.cont [11/16] (narrow) %v4933_v56, 8 }
 0x749   : > { %4982 = vxpose.xlu0.b32.cont [12/16] (narrow) %v4934_v27, 8 }
 0x751   : > { %v5399_v53 = vpop.f32.mrb[28].mxu1 }
 0x752   : > { %v4816_v21 = vpop.f32.mrb[29].mxu1  ;;  %v4868_v38 = vmul.f32 %v5399_v53, %v8007_v7 }
 0x753   : > { %v4867_v14 = vmul.f32 %v8007_v7, %v4816_v21 }
 0x754   : > { %v4904_v17 = vadd.f32 %v8010_v28, %v4868_v38 }
 0x755   : > { %v4903_v62 = vadd.f32 %v8010_v28, %v4867_v14 }
 0x756   : > { %v4936_v3 = vmax.f32 %v4904_v17, 0.0 }
 0x757   : > { %v4935_v13 = vmax.f32 %v4903_v62, 0.0 }
 0x759   : > { %4983 = vxpose.xlu0.b32.cont [13/16] (narrow) %v4935_v13, 8 }
 0x75c   : > { %v4955_v26 = vpop.trf.xlu1 }
 0x75d   : > { %4984 = vxpose.xlu0.b32.cont [14/16] (narrow) %v4936_v3, 8  ;;  %5003 = vst [vmem:[%s363_s20] sm:$0xff] %v4955_v26 }
 0x75e   : > { %v5402_v1 = vpop.f32.mrb[30].mxu1 }
 0x75f   : > { %v4826_v61 = vpop.f32.mrb[31].mxu1  ;;  %v4870_v50 = vmul.f32 %v5402_v1, %v8007_v7 }
 0x760   : > { %v4869_v43 = vmul.f32 %v8007_v7, %v4826_v61 }
 0x761   : > { %v4906_v41 = vadd.f32 %v8010_v28, %v4870_v50 }
 0x762   : > { %v4905_v49 = vadd.f32 %v8010_v28, %v4869_v43 }
 0x763   : > { %v4938_v33 = vmax.f32 %v4906_v41, 0.0 }
 0x764   : > { %v4937_v20 = vmax.f32 %v4905_v49, 0.0 }
 0x766   : > { %4985 = vxpose.xlu0.b32.cont [15/16] (narrow) %v4937_v20, 8 }
 0x76a   : > { %4986 = vxpose.xlu0.b32.end [16/16] (narrow) %v4938_v33, 8 }
 0x7ae   : > { %v4987_v7 = vpop.trf.xlu0 }
 0x7af   : > { %5004 = vst [vmem:[%s363_s20 + $0x8] sm:$0xff] %v4987_v7 }
 0x7b0   : > { %5518 = shalt.err (!%p5515_p3)
}
 0x7b1   : > { %s5519_s29 = scalar_lea.hbm %s8097_s28, 256  ;;  %s5523_s26 = scalar_lea.hbm %s8147_s10, 512 }
 0x7b2   : > { %p5520_p4 = scmp.ne.s32.totalorder %s8097_s28, %s5519_s29  ;;  %p5524_p9 = scmp.lt.u32.totalorder %s8097_s28, %s8147_s10 }
 0x7b3   : > { %p5525_p10 = scmp.lt.u32.totalorder %s5523_s26, %s5519_s29  ;;  %p5527_p12 = scmp.lt.u32.totalorder %s5519_s29, %s8097_s28 }
 0x7b4   : > { %p5521_p7 = pnand %p5520_p4, %p5679_p5 }
 0x7b5   : > { %p5526_p11 = por %p5525_p10, %p5524_p9 }
 0x7b6   : > { %p5522_p8 = pneg %p5521_p7 }
 0x7b7   : > { %p5528_p13 = por %p5527_p12, %p5526_p11 }
 0x7b9   : > { %p5529_p0 = pnand %p5528_p13, %p5522_p8 }
 0x7bb   : > { %5532 = shalt.err (!%p5529_p0)
}
 0x7bc   : > { %5449 = dma.vmem_to_hbm [thread:$0]  (%p5679_p5), %s8092_s21, 256, %s8097_s28, %s5006_s18  }
 0x7bd PF: > { %p5455_p1 = scmp.ge.s32.totalorder %s5567_s16, 2  ;;  %s5032_s25 = sand.u32 1, %s5555_s13  }
 0x7be   : > { %s5033_s0 = scalar_lea.sflag [#allocation7], %s5032_s25 }
 0x7bf   : > { %p5452_p2 = pnand %p5455_p1, %p5683_p6 }
 0x7c1   : > { %5550 = dma.done.wait (!%p5452_p2), %s5033_s0, 256  }
 0x7c2   : > { %5552 = vsyncadd (!%p5452_p2), %s5033_s0, 4294967040  ;;  %p20_p3 = scmp.ge.s32.totalorder %s5666_s19, 4   ;;  %s8245_s13 = smov %s5559_s14 }
 0x7c3   : > { %s8246_s14 = smov %s5563_s15  ;;  %s8247_s15 = smov %s5677_s22 }
 0x7c4   : > { %s8248_s16 = smov %s5666_s19  ;;  %22 = sbr.rel (!%p20_p3) target bundleno = 5 (0x5), region = 102 }
 0x7cb   :  { %5038 = vsyncpa [#allocation7], 1 }
 0x7cc   :  { %5040 = vsyncpa [#allocation7 + $0x1], 1 }

</bundles_post_ra>
